<compile_context>
chip_gen: v7x
topology: tpu7x:2x2x1
jax: 0.10.0
libtpu: 0.0.40
codegen_flags: <defaults>
</compile_context>

<pallas_src>
import math
from functools import partial

import numpy as np
import jax
import jax.numpy as jnp
from jax import lax
from jax.experimental import pallas as pl
from jax.experimental.pallas import tpu as pltpu


# ----------------------------------------------------------------------------
# Tiling / VMEM policy
# ----------------------------------------------------------------------------

def _default_vmem_limit():
    # v5e / v6e have 128 MiB physical VMEM -> raise the scoped limit so the big
    # linears can use large, pipeline-friendly tiles.  v7x only has 64 MiB per
    # TensorCore, so stay at the conservative 32 MiB default there.
    try:
        cap = pltpu.get_tpu_info().vmem_capacity_bytes
        if cap >= 128 * 1024 * 1024:
            return 96 * 1024 * 1024
    except Exception:
        pass
    return 32 * 1024 * 1024


VMEM_LIMIT = _default_vmem_limit()

# Generic-linear tiles (vocab projection, attention out-proj).
TM_LINEAR, TN_LINEAR, TK_LINEAR = 512, 512, 1024
# Fused LN + projection tiles (QKV / cross K,V).
TM_PROJ, TN_PROJ = 256, 256
# Fused LN + FeedForward tiles: modest row tile + hidden-dim chunk keep the
# live f32 intermediates (h1 / gelu) bounded so the compiler does not spill.
TM_FF, TH_FF = 128, 512
# Attention query-row tile.
TQ_ATTN = 256


def _pick_tile(dim, target, mult):
    """Largest tile <= target that is a multiple of `mult` and divides `dim`;
    falls back to the full dimension (full-extent blocks are always legal)."""
    if dim <= target:
        return dim
    t = (target // mult) * mult
    while t >= mult:
        if dim % t == 0:
            return t
        t -= mult
    return dim


def _round_up(x, m):
    return ((x + m - 1) // m) * m


# ----------------------------------------------------------------------------
# Pallas kernels
# ----------------------------------------------------------------------------

def _matmul_bias_kernel(x_ref, w_ref, b_ref, o_ref, acc_ref):
    # Tiled y = x @ w + b; bf16 MXU operands, f32 accumulator over the K axis.
    @pl.when(pl.program_id(2) == 0)
    def _():
        acc_ref[...] = jnp.zeros_like(acc_ref)

    acc_ref[...] += jnp.dot(x_ref[...].astype(jnp.bfloat16),
                            w_ref[...].astype(jnp.bfloat16),
                            preferred_element_type=jnp.float32)

    @pl.when(pl.program_id(2) == pl.num_programs(2) - 1)
    def _():
        o_ref[...] = (acc_ref[...]
                      + b_ref[...].astype(jnp.float32)).astype(o_ref.dtype)


def _matmul_bias_res_kernel(x_ref, w_ref, b_ref, res_ref, o_ref, acc_ref):
    # Tiled y = x @ w + b + residual (residual add fused into the epilogue;
    # the residual input is aliased to the output buffer by the wrapper).
    @pl.when(pl.program_id(2) == 0)
    def _():
        acc_ref[...] = jnp.zeros_like(acc_ref)

    acc_ref[...] += jnp.dot(x_ref[...].astype(jnp.bfloat16),
                            w_ref[...].astype(jnp.bfloat16),
                            preferred_element_type=jnp.float32)

    @pl.when(pl.program_id(2) == pl.num_programs(2) - 1)
    def _():
        o_ref[...] = (acc_ref[...] + b_ref[...].astype(jnp.float32)
                      + res_ref[...].astype(jnp.float32)).astype(o_ref.dtype)


def _layernorm_kernel(x_ref, s_ref, b_ref, o_ref):
    x = x_ref[...].astype(jnp.float32)
    mean = jnp.mean(x, axis=-1, keepdims=True)
    var = jnp.mean((x - mean) ** 2, axis=-1, keepdims=True)   # unbiased=False
    norm = (x - mean) * lax.rsqrt(var + 1e-5)
    o_ref[...] = (norm * s_ref[...] + b_ref[...]).astype(o_ref.dtype)


def _make_ln_multiproj_kernel(n_w):
    # LayerNorm fused with n_w bias-less projections; the output columns are
    # tiled by grid axis 1 (weights never fully VMEM-resident).
    def kernel(x_ref, s_ref, sh_ref, *rest):
        w_refs = rest[:n_w]
        o_refs = rest[n_w:]
        x = x_ref[...].astype(jnp.float32)
        mean = jnp.mean(x, axis=-1, keepdims=True)
        var = jnp.mean((x - mean) ** 2, axis=-1, keepdims=True)
        h = ((x - mean) * lax.rsqrt(var + 1e-5) * s_ref[...] + sh_ref[...])
        h = h.astype(jnp.bfloat16)
        for w_ref, o_ref in zip(w_refs, o_refs):
            o_ref[...] = jnp.dot(h, w_ref[...].astype(jnp.bfloat16),
                                 preferred_element_type=jnp.float32
                                 ).astype(o_ref.dtype)
    return kernel


def _make_multiproj_kernel(n_w):
    # n_w bias-less projections sharing one x-tile load (cross-attention K/V),
    # column-tiled like the LN variant.
    def kernel(x_ref, *rest):
        w_refs = rest[:n_w]
        o_refs = rest[n_w:]
        x = x_ref[...].astype(jnp.bfloat16)
        for w_ref, o_ref in zip(w_refs, o_refs):
            o_ref[...] = jnp.dot(x, w_ref[...].astype(jnp.bfloat16),
                                 preferred_element_type=jnp.float32
                                 ).astype(o_ref.dtype)
    return kernel


def _ln_ff_res_kernel(x_ref, s_ref, sh_ref, w1_ref, b1_ref, w2_ref, b2_ref,
                      o_ref, h_ref, acc_ref):
    # out = x + W2(GELU_tanh(W1(LayerNorm(x)) + b1)) + b2.  The FF hidden dim
    # is tiled over grid axis 1: LN(x) is computed once into a bf16 scratch at
    # step 0 and the residual is preloaded into the f32 accumulator; each step
    # processes a (D, th)/(th, D) weight slice so W1/W2 tiles stay small
    # (v7x 64 MiB VMEM safe) and the (tm, th) intermediates stay bounded.
    @pl.when(pl.program_id(1) == 0)
    def _():
        x = x_ref[...].astype(jnp.float32)
        mean = jnp.mean(x, axis=-1, keepdims=True)
        var = jnp.mean((x - mean) ** 2, axis=-1, keepdims=True)
        h_ref[...] = ((x - mean) * lax.rsqrt(var + 1e-5)
                      * s_ref[...] + sh_ref[...]).astype(jnp.bfloat16)
        acc_ref[...] = x           # residual pre-loaded into the accumulator

    h1 = jnp.dot(h_ref[...], w1_ref[...].astype(jnp.bfloat16),
                 preferred_element_type=jnp.float32) + b1_ref[...]
    c = jnp.float32(math.sqrt(2.0 / math.pi))
    g = 0.5 * h1 * (1.0 + jnp.tanh(c * (h1 + 0.044715 * h1 * h1 * h1)))
    acc_ref[...] += jnp.dot(g.astype(jnp.bfloat16),
                            w2_ref[...].astype(jnp.bfloat16),
                            preferred_element_type=jnp.float32)

    @pl.when(pl.program_id(1) == pl.num_programs(1) - 1)
    def _():
        o_ref[...] = (acc_ref[...] + b2_ref[...]).astype(o_ref.dtype)


def _attn_kernel(q_ref, k_ref, v_ref, o_ref, *, num_heads, is_causal, scale):
    # One (batch, q-tile) per grid step; all heads resident; lane-dense output.
    tq, D = q_ref.shape[1], q_ref.shape[2]
    Tk = k_ref.shape[1]
    hd = D // num_heads

    q = q_ref[0]                       # (tq, D)  f32 activations
    k = k_ref[0]                       # (Tk, D)
    v = v_ref[0]                       # (Tk, D)

    if is_causal:
        q_start = pl.program_id(1) * tq
        row = lax.broadcasted_iota(jnp.int32, (tq, Tk), 0) + q_start
        col = lax.broadcasted_iota(jnp.int32, (tq, Tk), 1)
        causal_mask = col > row

    # TODO(synk): flash-style K/V streaming (online softmax) over an extra grid
    # axis for long contexts; full (tq, Tk) scores are fine at these sizes.
    # TODO(synk): head_dim < 128 under-uses the MXU contraction width; pad the
    # head dim (or batch heads per MXU pass) for real model widths.
    for h in range(num_heads):
        hs, he = h * hd, (h + 1) * hd
        qh = q[:, hs:he].astype(jnp.bfloat16)
        kh = k[:, hs:he].astype(jnp.bfloat16)
        vh = v[:, hs:he].astype(jnp.bfloat16)

        s = lax.dot_general(qh, kh, (((1,), (1,)), ((), ())),
                            preferred_element_type=jnp.float32) * scale
        if is_causal:
            s = jnp.where(causal_mask, jnp.float32(-1e30), s)   # finite mask
        m = jnp.max(s, axis=-1, keepdims=True)
        e = jnp.exp(s - m)
        l = jnp.sum(e, axis=-1, keepdims=True)
        # PV matmul first, then scale by 1/l over (tq, hd) only.
        ctx_h = jnp.dot(e.astype(jnp.bfloat16), vh,
                        preferred_element_type=jnp.float32)
        ctx_h = ctx_h * pl.reciprocal(l, approx=False)           # exact
        o_ref[0, :, hs:he] = ctx_h.astype(o_ref.dtype)


# ----------------------------------------------------------------------------
# Pallas wrappers
# ----------------------------------------------------------------------------

def pallas_linear(x2d, w, b, residual=None):
    """Tiled y = x @ w + b (+ residual), grid=(M/tm, N/tn, K/tk)."""
    M, K = x2d.shape
    N = n_orig = int(w.shape[1])

    # Pad N to a multiple of 128 so a bounded, lane-dense weight/output tile
    # always exists (real vocab sizes like 50257 would otherwise force a
    # full-N weight tile and masked partial stores).
    if N > 128 and N % 128 != 0:
        N = _round_up(N, 128)
        w = jnp.pad(w, ((0, 0), (0, N - n_orig)))
        b = jnp.pad(b, ((0, 0), (0, N - n_orig)))
        if residual is not None:
            residual = jnp.pad(residual, ((0, 0), (0, N - n_orig)))

    tm = _pick_tile(M, TM_LINEAR, 8)
    tn = _pick_tile(N, TN_LINEAR, 128)
    tk = _pick_tile(K, TK_LINEAR, 128)
    # NOTE: for v7x megacore, parallel axes ideally have >= 2 steps each.
    grid = (M // tm, N // tn, K // tk)

    in_specs = [
        pl.BlockSpec((tm, tk), lambda i, j, k: (i, k)),
        pl.BlockSpec((tk, tn), lambda i, j, k: (k, j)),
        pl.BlockSpec((1, tn), lambda i, j, k: (0, j)),
    ]
    args = [x2d, w, b]
    io_aliases = {}
    if residual is not None:
        in_specs.append(pl.BlockSpec((tm, tn), lambda i, j, k: (i, j)))
        args.append(residual)
        kernel = _matmul_bias_res_kernel
        io_aliases = {3: 0}          # alias residual buffer to the output
    else:
        kernel = _matmul_bias_kernel

    out = pl.pallas_call(
        kernel,
        out_shape=jax.ShapeDtypeStruct((M, N), x2d.dtype),
        grid=grid,
        in_specs=in_specs,
        out_specs=pl.BlockSpec((tm, tn), lambda i, j, k: (i, j)),
        scratch_shapes=[pltpu.VMEM((tm, tn), jnp.float32)],
        input_output_aliases=io_aliases,
        compiler_params=pltpu.CompilerParams(
            dimension_semantics=("parallel", "parallel", "arbitrary"),
            vmem_limit_bytes=VMEM_LIMIT),
    )(*args)
    return out if N == n_orig else out[:, :n_orig]


def pallas_layernorm(x2d, scale, shift):
    M, D = x2d.shape
    tm = _pick_tile(M, 1024, 8)
    return pl.pallas_call(
        _layernorm_kernel,
        out_shape=jax.ShapeDtypeStruct((M, D), x2d.dtype),
        grid=(M // tm,),
        in_specs=[pl.BlockSpec((tm, D), lambda i: (i, 0)),
                  pl.BlockSpec((1, D), lambda i: (0, 0)),
                  pl.BlockSpec((1, D), lambda i: (0, 0))],
        out_specs=pl.BlockSpec((tm, D), lambda i: (i, 0)),
        compiler_params=pltpu.CompilerParams(
            dimension_semantics=("parallel",),
            vmem_limit_bytes=VMEM_LIMIT),
    )(x2d, scale, shift)


def pallas_ln_multiproj(x2d, scale, shift, weights):
    """LayerNorm(x) @ W_i for each W_i (bias-less), one pallas_call, N-tiled."""
    M, D = x2d.shape
    n_w = len(weights)
    N = int(weights[0].shape[1])
    assert all(int(wt.shape[1]) == N for wt in weights)
    tm = _pick_tile(M, TM_PROJ, 8)
    tn = _pick_tile(N, TN_PROJ, 128)
    outs = pl.pallas_call(
        _make_ln_multiproj_kernel(n_w),
        out_shape=tuple(jax.ShapeDtypeStruct((M, N), x2d.dtype)
                        for _ in range(n_w)),
        grid=(M // tm, N // tn),
        in_specs=[pl.BlockSpec((tm, D), lambda i, j: (i, 0)),
                  pl.BlockSpec((1, D), lambda i, j: (0, 0)),
                  pl.BlockSpec((1, D), lambda i, j: (0, 0))]
                 + [pl.BlockSpec((D, tn), lambda i, j: (0, j))
                    for _ in range(n_w)],
        out_specs=tuple(pl.BlockSpec((tm, tn), lambda i, j: (i, j))
                        for _ in range(n_w)),
        compiler_params=pltpu.CompilerParams(
            dimension_semantics=("parallel", "parallel"),
            vmem_limit_bytes=VMEM_LIMIT),
    )(x2d, scale, shift, *weights)
    if not isinstance(outs, (tuple, list)):
        outs = (outs,)
    return tuple(outs)


def pallas_multiproj(x2d, weights):
    """x @ W_i for each W_i (bias-less), sharing one x load, N-tiled."""
    M, D = x2d.shape
    n_w = len(weights)
    N = int(weights[0].shape[1])
    assert all(int(wt.shape[1]) == N for wt in weights)
    tm = _pick_tile(M, TM_PROJ, 8)
    tn = _pick_tile(N, TN_PROJ, 128)
    outs = pl.pallas_call(
        _make_multiproj_kernel(n_w),
        out_shape=tuple(jax.ShapeDtypeStruct((M, N), x2d.dtype)
                        for _ in range(n_w)),
        grid=(M // tm, N // tn),
        in_specs=[pl.BlockSpec((tm, D), lambda i, j: (i, 0))]
                 + [pl.BlockSpec((D, tn), lambda i, j: (0, j))
                    for _ in range(n_w)],
        out_specs=tuple(pl.BlockSpec((tm, tn), lambda i, j: (i, j))
                        for _ in range(n_w)),
        compiler_params=pltpu.CompilerParams(
            dimension_semantics=("parallel", "parallel"),
            vmem_limit_bytes=VMEM_LIMIT),
    )(x2d, *weights)
    if not isinstance(outs, (tuple, list)):
        outs = (outs,)
    return tuple(outs)


def pallas_ln_ff_res(x2d, scale, shift, w1, b1, w2, b2):
    """out = x + FF(LayerNorm(x)); LN, both linears, GELU, residual fused,
    with the FF hidden dim tiled over a grid axis."""
    M, D = x2d.shape
    H = int(w1.shape[1])
    tm = _pick_tile(M, TM_FF, 8)
    th = _pick_tile(H, TH_FF, 128)
    return pl.pallas_call(
        _ln_ff_res_kernel,
        out_shape=jax.ShapeDtypeStruct((M, D), x2d.dtype),
        grid=(M // tm, H // th),
        in_specs=[pl.BlockSpec((tm, D), lambda i, h: (i, 0)),
                  pl.BlockSpec((1, D), lambda i, h: (0, 0)),
                  pl.BlockSpec((1, D), lambda i, h: (0, 0)),
                  pl.BlockSpec((D, th), lambda i, h: (0, h)),
                  pl.BlockSpec((1, th), lambda i, h: (0, h)),
                  pl.BlockSpec((th, D), lambda i, h: (h, 0)),
                  pl.BlockSpec((1, D), lambda i, h: (0, 0))],
        out_specs=pl.BlockSpec((tm, D), lambda i, h: (i, 0)),
        scratch_shapes=[pltpu.VMEM((tm, D), jnp.bfloat16),
                        pltpu.VMEM((tm, D), jnp.float32)],
        compiler_params=pltpu.CompilerParams(
            dimension_semantics=("parallel", "arbitrary"),
            vmem_limit_bytes=VMEM_LIMIT),
    )(x2d, scale, shift, w1, b1, w2, b2)


def pallas_attention(q, k, v, num_heads, is_causal):
    """q/k/v in (B, T, D) layout (no head transposes); grid=(B, Tq tiles)."""
    B, Tq, D = q.shape
    Tk = k.shape[1]
    hd = D // num_heads
    tq = _pick_tile(Tq, TQ_ATTN, 8)
    scale = 1.0 / math.sqrt(hd)
    kernel = partial(_attn_kernel, num_heads=num_heads,
                     is_causal=is_causal, scale=scale)
    return pl.pallas_call(
        kernel,
        out_shape=jax.ShapeDtypeStruct((B, Tq, D), q.dtype),
        grid=(B, Tq // tq),
        in_specs=[pl.BlockSpec((1, tq, D), lambda b, qi: (b, qi, 0)),
                  pl.BlockSpec((1, Tk, D), lambda b, qi: (b, 0, 0)),
                  pl.BlockSpec((1, Tk, D), lambda b, qi: (b, 0, 0))],
        out_specs=pl.BlockSpec((1, tq, D), lambda b, qi: (b, qi, 0)),
        compiler_params=pltpu.CompilerParams(
            dimension_semantics=("parallel", "parallel"),
            vmem_limit_bytes=VMEM_LIMIT),
    )(q, k, v)


# ----------------------------------------------------------------------------
# Model glue (plain JAX): embeddings, positional encoding, block wiring
# ----------------------------------------------------------------------------

def make_pos_encoding(max_len, d):
    pos = np.arange(max_len, dtype=np.float32)[:, None]
    div = np.exp(np.arange(0, d, 2, dtype=np.float32) * (-np.log(10000.0) / d))
    pe = np.zeros((max_len, d), dtype=np.float32)
    pe[:, 0::2] = np.sin(pos * div)
    pe[:, 1::2] = np.cos(pos * div)
    return jnp.asarray(pe)


def encoder_block_forward(p, x, num_heads):
    B, T, D = x.shape
    x2d = x.reshape(B * T, D)
    a = p["self_att"]

    # self-attention sub-layer: LN fused into the QKV projection, residual
    # fused (and aliased) into the output-projection epilogue.
    q, k, v = pallas_ln_multiproj(x2d, p["n1_s"], p["n1_b"],
                                  (a["wq"], a["wk"], a["wv"]))
    ctx = pallas_attention(q.reshape(B, T, D), k.reshape(B, T, D),
                           v.reshape(B, T, D), num_heads, is_causal=False)
    x2d = pallas_linear(ctx.reshape(B * T, D), a["wo"], a["bo"], residual=x2d)

    # feed-forward sub-layer: LN + FF + residual fully fused (H-tiled).
    x2d = pallas_ln_ff_res(x2d, p["n2_s"], p["n2_b"],
                           p["ff_w1"], p["ff_b1"], p["ff_w2"], p["ff_b2"])
    return x2d.reshape(B, T, D)


def decoder_block_forward(p, x, enc_out, num_heads):
    B, T, D = x.shape
    S = enc_out.shape[1]
    x2d = x.reshape(B * T, D)
    enc2d = enc_out.reshape(B * S, D)

    # causal self-attention
    a = p["self_att"]
    q, k, v = pallas_ln_multiproj(x2d, p["n1_s"], p["n1_b"],
                                  (a["wq"], a["wk"], a["wv"]))
    ctx = pallas_attention(q.reshape(B, T, D), k.reshape(B, T, D),
                           v.reshape(B, T, D), num_heads, is_causal=True)
    x2d = pallas_linear(ctx.reshape(B * T, D), a["wo"], a["bo"], residual=x2d)

    # cross-attention: Q from LN(x); K/V from the (already-normed) encoder out.
    c = p["cross_att"]
    (q,) = pallas_ln_multiproj(x2d, p["n2_s"], p["n2_b"], (c["wq"],))
    k, v = pallas_multiproj(enc2d, (c["wk"], c["wv"]))
    ctx = pallas_attention(q.reshape(B, T, D), k.reshape(B, S, D),
                           v.reshape(B, S, D), num_heads, is_causal=False)
    x2d = pallas_linear(ctx.reshape(B * T, D), c["wo"], c["bo"], residual=x2d)

    # feed-forward
    x2d = pallas_ln_ff_res(x2d, p["n3_s"], p["n3_b"],
                           p["ff_w1"], p["ff_b1"], p["ff_w2"], p["ff_b2"])
    return x2d.reshape(B, T, D)


def transformer_forward(params, src, tgt, num_heads):
    D = params["src_emb"].shape[1]
    sqrt_d = np.float32(np.sqrt(D))
    B, S = src.shape
    T = tgt.shape[1]

    # ---- encode ----  (embedding gather + PE add left to XLA)
    x = params["src_emb"][src] * sqrt_d + params["pe"][None, :S, :]
    for p in params["enc_blocks"]:
        x = encoder_block_forward(p, x, num_heads)
    enc2d = pallas_layernorm(x.reshape(B * S, D),
                             params["enc_norm_s"], params["enc_norm_b"])
    enc_out = enc2d.reshape(B, S, D)

    # ---- decode ----
    y = params["tgt_emb"][tgt] * sqrt_d + params["pe"][None, :T, :]
    for p in params["dec_blocks"]:
        y = decoder_block_forward(p, y, enc_out, num_heads)
    y2d = pallas_layernorm(y.reshape(B * T, D),
                           params["dec_norm_s"], params["dec_norm_b"])

    # ---- output projection (tiled over the vocab, padded to lane-dense) ----
    logits = pallas_linear(y2d, params["out_w"], params["out_b"])
    return logits.reshape(B, T, -1)


# ----------------------------------------------------------------------------
# Deterministic parameter initialization (matmul weights stored bf16)
# ----------------------------------------------------------------------------

def init_params(cfg, key):
    D = cfg["emb_dim"]
    H4 = 4 * D
    keys = iter(jax.random.split(key, 256))

    def w(shape, scale=0.02):
        return jax.random.normal(next(keys), shape, jnp.float32) * scale

    def wb(shape, scale=0.02):                 # bf16 matmul weight
        return w(shape, scale).astype(jnp.bfloat16)

    def mha_params():
        return {
            "wq": wb((D, D)), "wk": wb((D, D)), "wv": wb((D, D)),
            "wo": wb((D, D)), "bo": w((1, D), 0.01),
        }

    def enc_block():
        return {
            "n1_s": jnp.ones((1, D), jnp.float32), "n1_b": jnp.zeros((1, D), jnp.float32),
            "n2_s": jnp.ones((1, D), jnp.float32), "n2_b": jnp.zeros((1, D), jnp.float32),
            "self_att": mha_params(),
            "ff_w1": wb((D, H4)), "ff_b1": w((1, H4), 0.01),
            "ff_w2": wb((H4, D)), "ff_b2": w((1, D), 0.01),
        }

    def dec_block():
        p = enc_block()
        p["n3_s"] = jnp.ones((1, D), jnp.float32)
        p["n3_b"] = jnp.zeros((1, D), jnp.float32)
        p["cross_att"] = mha_params()
        return p

    return {
        "src_emb": w((cfg["src_vocab_size"], D), 0.05),
        "tgt_emb": w((cfg["tgt_vocab_size"], D), 0.05),
        "pe": make_pos_encoding(cfg["context_length"], D),
        "enc_blocks": [enc_block() for _ in range(cfg["n_encoder_layers"])],
        "dec_blocks": [dec_block() for _ in range(cfg["n_decoder_layers"])],
        "enc_norm_s": jnp.ones((1, D), jnp.float32), "enc_norm_b": jnp.zeros((1, D), jnp.float32),
        "dec_norm_s": jnp.ones((1, D), jnp.float32), "dec_norm_b": jnp.zeros((1, D), jnp.float32),
        "out_w": wb((D, cfg["tgt_vocab_size"])),
        "out_b": w((1, cfg["tgt_vocab_size"]), 0.01),
    }


# ----------------------------------------------------------------------------
# Main
# ----------------------------------------------------------------------------

if __name__ == "__main__":
    cfg = dict(
        src_vocab_size=64,
        tgt_vocab_size=64,
        emb_dim=32,
        context_length=16,
        n_heads=4,
        n_encoder_layers=2,
        n_decoder_layers=2,
        drop_rate=0.0,       # dropout = identity (inference)
        qkv_bias=False,
    )
    # TODO(synk): at this toy width (D=32) per-call overhead dominates; real
    # deployments should pad D to 128+ or fuse whole blocks into one kernel.

    key = jax.random.PRNGKey(0)
    pkey, skey, tkey = jax.random.split(key, 3)
    params = init_params(cfg, pkey)

    B, S_src, S_tgt = 2, 8, 8
    src = jax.random.randint(skey, (B, S_src), 0, cfg["src_vocab_size"], dtype=jnp.int32)
    tgt = jax.random.randint(tkey, (B, S_tgt), 0, cfg["tgt_vocab_size"], dtype=jnp.int32)

    fwd = jax.jit(partial(transformer_forward, num_heads=cfg["n_heads"]))
    logits = fwd(params, src, tgt)
    jax.block_until_ready(logits)

    assert logits.shape == (B, S_tgt, cfg["tgt_vocab_size"])
    assert bool(jnp.all(jnp.isfinite(logits)))
    print("KERNEL_OK")
</pallas_src>

<mosaic_0001>
module attributes {stable_mosaic.version = 11 : i64} {
  func.func @kernel(%arg0: i32, %arg1: i32, %arg2: memref<16x32xf32, #tpu.memory_space<vmem>>, %arg3: memref<1x32xf32, #tpu.memory_space<vmem>>, %arg4: memref<1x32xf32, #tpu.memory_space<vmem>>, %arg5: memref<32x32xbf16, #tpu.memory_space<vmem>>, %arg6: memref<32x32xbf16, #tpu.memory_space<vmem>>, %arg7: memref<32x32xbf16, #tpu.memory_space<vmem>>, %arg8: memref<16x32xf32, #tpu.memory_space<vmem>>, %arg9: memref<16x32xf32, #tpu.memory_space<vmem>>, %arg10: memref<16x32xf32, #tpu.memory_space<vmem>>) attributes {dimension_semantics = [#tpu.dimension_semantics<parallel>, #tpu.dimension_semantics<parallel>], iteration_bounds = array<i64: 1, 1>, scalar_prefetch = 0 : i64, scratch_operands = 0 : i64, tpu.core_type = #tpu.core_type<tc>, window_params = [{transform_indices = @transform_0, window_bounds = array<i64: 16, 32>}, {pipeline_mode = #tpu.pipeline_mode<synchronous>, transform_indices = @transform_1, window_bounds = array<i64: 1, 32>}, {pipeline_mode = #tpu.pipeline_mode<synchronous>, transform_indices = @transform_2, window_bounds = array<i64: 1, 32>}, {transform_indices = @transform_3, window_bounds = array<i64: 32, 32>}, {transform_indices = @transform_4, window_bounds = array<i64: 32, 32>}, {transform_indices = @transform_5, window_bounds = array<i64: 32, 32>}, {transform_indices = @transform_6, window_bounds = array<i64: 16, 32>}, {transform_indices = @transform_7, window_bounds = array<i64: 16, 32>}, {transform_indices = @transform_8, window_bounds = array<i64: 16, 32>}]} {
    %c0 = arith.constant 0 : index
    %c0_0 = arith.constant 0 : index
    %0 = vector.load %arg2[%c0, %c0_0] : memref<16x32xf32, #tpu.memory_space<vmem>>, vector<16x32xf32>
    %cst = arith.constant dense<0.000000e+00> : vector<16xf32>
    %1 = vector.multi_reduction <add>, %0, %cst [1] : vector<16x32xf32> to vector<16xf32>
    %2 = vector.shape_cast %1 : vector<16xf32> to vector<16x1xf32>
    %cst_1 = arith.constant 3.200000e+01 : f32
    %3 = vector.broadcast %cst_1 : f32 to vector<16x1xf32>
    %4 = arith.divf %2, %3 : vector<16x1xf32>
    %5 = vector.broadcast %4 : vector<16x1xf32> to vector<16x32xf32>
    %6 = arith.subf %0, %5 : vector<16x32xf32>
    %7 = arith.mulf %6, %6 : vector<16x32xf32>
    %cst_2 = arith.constant dense<0.000000e+00> : vector<16xf32>
    %8 = vector.multi_reduction <add>, %7, %cst_2 [1] : vector<16x32xf32> to vector<16xf32>
    %9 = vector.shape_cast %8 : vector<16xf32> to vector<16x1xf32>
    %cst_3 = arith.constant 3.200000e+01 : f32
    %10 = vector.broadcast %cst_3 : f32 to vector<16x1xf32>
    %11 = arith.divf %9, %10 : vector<16x1xf32>
    %12 = vector.broadcast %4 : vector<16x1xf32> to vector<16x32xf32>
    %13 = arith.subf %0, %12 : vector<16x32xf32>
    %cst_4 = arith.constant 9.99999974E-6 : f32
    %14 = vector.broadcast %cst_4 : f32 to vector<16x1xf32>
    %15 = arith.addf %11, %14 : vector<16x1xf32>
    %16 = math.rsqrt %15 : vector<16x1xf32>
    %17 = vector.broadcast %16 : vector<16x1xf32> to vector<16x32xf32>
    %18 = arith.mulf %13, %17 : vector<16x32xf32>
    %c0_5 = arith.constant 0 : index
    %c0_6 = arith.constant 0 : index
    %19 = vector.load %arg3[%c0_5, %c0_6] : memref<1x32xf32, #tpu.memory_space<vmem>>, vector<1x32xf32>
    %20 = vector.broadcast %19 : vector<1x32xf32> to vector<16x32xf32>
    %21 = arith.mulf %18, %20 : vector<16x32xf32>
    %c0_7 = arith.constant 0 : index
    %c0_8 = arith.constant 0 : index
    %22 = vector.load %arg4[%c0_7, %c0_8] : memref<1x32xf32, #tpu.memory_space<vmem>>, vector<1x32xf32>
    %23 = vector.broadcast %22 : vector<1x32xf32> to vector<16x32xf32>
    %24 = arith.addf %21, %23 : vector<16x32xf32>
    %25 = arith.truncf %24 : vector<16x32xf32> to vector<16x32xbf16>
    %c0_9 = arith.constant 0 : index
    %c0_10 = arith.constant 0 : index
    %26 = vector.load %arg5[%c0_9, %c0_10] : memref<32x32xbf16, #tpu.memory_space<vmem>>, vector<32x32xbf16>
    %cst_11 = arith.constant dense<0.000000e+00> : vector<16x32xf32>
    %27 = tpu.matmul %25, %26, %cst_11 {dimension_numbers = #tpu.dot_dimension_numbers<[1], [0], [0], [1], [0, 0, 1, 1], [], []>} : vector<16x32xbf16>, vector<32x32xbf16>, vector<16x32xf32> -> vector<16x32xf32>
    %c0_12 = arith.constant 0 : index
    %c0_13 = arith.constant 0 : index
    %28 = vector.load %arg8[%c0_12, %c0_13] : memref<16x32xf32, #tpu.memory_space<vmem>>, vector<16x32xf32>
    tpu.vector_store %arg8[%c0_12, %c0_13], %27 {strides = array<i32>} : memref<16x32xf32, #tpu.memory_space<vmem>>, vector<16x32xf32>,
    %c0_14 = arith.constant 0 : index
    %c0_15 = arith.constant 0 : index
    %29 = vector.load %arg6[%c0_14, %c0_15] : memref<32x32xbf16, #tpu.memory_space<vmem>>, vector<32x32xbf16>
    %cst_16 = arith.constant dense<0.000000e+00> : vector<16x32xf32>
    %30 = tpu.matmul %25, %29, %cst_16 {dimension_numbers = #tpu.dot_dimension_numbers<[1], [0], [0], [1], [0, 0, 1, 1], [], []>} : vector<16x32xbf16>, vector<32x32xbf16>, vector<16x32xf32> -> vector<16x32xf32>
    %c0_17 = arith.constant 0 : index
    %c0_18 = arith.constant 0 : index
    %31 = vector.load %arg9[%c0_17, %c0_18] : memref<16x32xf32, #tpu.memory_space<vmem>>, vector<16x32xf32>
    tpu.vector_store %arg9[%c0_17, %c0_18], %30 {strides = array<i32>} : memref<16x32xf32, #tpu.memory_space<vmem>>, vector<16x32xf32>,
    %c0_19 = arith.constant 0 : index
    %c0_20 = arith.constant 0 : index
    %32 = vector.load %arg7[%c0_19, %c0_20] : memref<32x32xbf16, #tpu.memory_space<vmem>>, vector<32x32xbf16>
    %cst_21 = arith.constant dense<0.000000e+00> : vector<16x32xf32>
    %33 = tpu.matmul %25, %32, %cst_21 {dimension_numbers = #tpu.dot_dimension_numbers<[1], [0], [0], [1], [0, 0, 1, 1], [], []>} : vector<16x32xbf16>, vector<32x32xbf16>, vector<16x32xf32> -> vector<16x32xf32>
    %c0_22 = arith.constant 0 : index
    %c0_23 = arith.constant 0 : index
    %34 = vector.load %arg10[%c0_22, %c0_23] : memref<16x32xf32, #tpu.memory_space<vmem>>, vector<16x32xf32>
    tpu.vector_store %arg10[%c0_22, %c0_23], %33 {strides = array<i32>} : memref<16x32xf32, #tpu.memory_space<vmem>>, vector<16x32xf32>,
    return
  }
  func.func @transform_0(%arg0: i32, %arg1: i32) -> (i32, i32) {
    %c0_i32 = arith.constant 0 : i32
    %c0_i32_0 = arith.constant 0 : i32
    return %arg0, %c0_i32 : i32, i32
  }
  func.func @transform_1(%arg0: i32, %arg1: i32) -> (i32, i32) {
    %c0_i32 = arith.constant 0 : i32
    %c0_i32_0 = arith.constant 0 : i32
    %c0_i32_1 = arith.constant 0 : i32
    return %c0_i32, %c0_i32_0 : i32, i32
  }
  func.func @transform_2(%arg0: i32, %arg1: i32) -> (i32, i32) {
    %c0_i32 = arith.constant 0 : i32
    %c0_i32_0 = arith.constant 0 : i32
    %c0_i32_1 = arith.constant 0 : i32
    return %c0_i32, %c0_i32_0 : i32, i32
  }
  func.func @transform_3(%arg0: i32, %arg1: i32) -> (i32, i32) {
    %c0_i32 = arith.constant 0 : i32
    %c0_i32_0 = arith.constant 0 : i32
    return %c0_i32, %arg1 : i32, i32
  }
  func.func @transform_4(%arg0: i32, %arg1: i32) -> (i32, i32) {
    %c0_i32 = arith.constant 0 : i32
    %c0_i32_0 = arith.constant 0 : i32
    return %c0_i32, %arg1 : i32, i32
  }
  func.func @transform_5(%arg0: i32, %arg1: i32) -> (i32, i32) {
    %c0_i32 = arith.constant 0 : i32
    %c0_i32_0 = arith.constant 0 : i32
    return %c0_i32, %arg1 : i32, i32
  }
  func.func @transform_6(%arg0: i32, %arg1: i32) -> (i32, i32) {
    %c0_i32 = arith.constant 0 : i32
    return %arg0, %arg1 : i32, i32
  }
  func.func @transform_7(%arg0: i32, %arg1: i32) -> (i32, i32) {
    %c0_i32 = arith.constant 0 : i32
    return %arg0, %arg1 : i32, i32
  }
  func.func @transform_8(%arg0: i32, %arg1: i32) -> (i32, i32) {
    %c0_i32 = arith.constant 0 : i32
    return %arg0, %arg1 : i32, i32
  }
}

module attributes {stable_mosaic.version = 11 : i64} {
  func.func @_matmul_bias_res_kernel(%arg0: i32, %arg1: i32, %arg2: i32, %arg3: memref<16x32xf32, #tpu.memory_space<vmem>>, %arg4: memref<32x32xbf16, #tpu.memory_space<vmem>>, %arg5: memref<1x32xf32, #tpu.memory_space<vmem>>, %arg6: memref<16x32xf32, #tpu.memory_space<vmem>>, %arg7: memref<16x32xf32, #tpu.memory_space<vmem>>, %arg8: memref<16x32xf32, #tpu.memory_space<vmem>>) attributes {dimension_semantics = [#tpu.dimension_semantics<parallel>, #tpu.dimension_semantics<parallel>, #tpu.dimension_semantics<arbitrary>], iteration_bounds = array<i64: 1, 1, 1>, scalar_prefetch = 0 : i64, scratch_operands = 1 : i64, tpu.core_type = #tpu.core_type<tc>, window_params = [{transform_indices = @transform_0, window_bounds = array<i64: 16, 32>}, {transform_indices = @transform_1, window_bounds = array<i64: 32, 32>}, {transform_indices = @transform_2, window_bounds = array<i64: 1, 32>}, {transform_indices = @transform_3, window_bounds = array<i64: 16, 32>}, {transform_indices = @transform_4, window_bounds = array<i64: 16, 32>}]} {
    %c0_i32 = arith.constant 0 : i32
    %0 = arith.cmpi eq, %arg2, %c0_i32 : i32
    %1 = arith.extui %0 : i1 to i32
    %c0_i32_0 = arith.constant 0 : i32
    %2 = arith.cmpi ne, %1, %c0_i32_0 : i32
    scf.if %2 {
      %cst_10 = arith.constant 0.000000e+00 : f32
      %13 = vector.broadcast %cst_10 : f32 to vector<16x32xf32>
      %c0_11 = arith.constant 0 : index
      %c0_12 = arith.constant 0 : index
      %14 = vector.load %arg8[%c0_11, %c0_12] : memref<16x32xf32, #tpu.memory_space<vmem>>, vector<16x32xf32>
      tpu.vector_store %arg8[%c0_11, %c0_12], %13 {strides = array<i32>} : memref<16x32xf32, #tpu.memory_space<vmem>>, vector<16x32xf32>,
    } else {
    }
    %c0 = arith.constant 0 : index
    %c0_1 = arith.constant 0 : index
    %3 = vector.load %arg8[%c0, %c0_1] : memref<16x32xf32, #tpu.memory_space<vmem>>, vector<16x32xf32>
    %c0_2 = arith.constant 0 : index
    %c0_3 = arith.constant 0 : index
    %4 = vector.load %arg3[%c0_2, %c0_3] : memref<16x32xf32, #tpu.memory_space<vmem>>, vector<16x32xf32>
    %5 = arith.truncf %4 : vector<16x32xf32> to vector<16x32xbf16>
    %c0_4 = arith.constant 0 : index
    %c0_5 = arith.constant 0 : index
    %6 = vector.load %arg4[%c0_4, %c0_5] : memref<32x32xbf16, #tpu.memory_space<vmem>>, vector<32x32xbf16>
    %cst = arith.constant dense<0.000000e+00> : vector<16x32xf32>
    %7 = tpu.matmul %5, %6, %cst {dimension_numbers = #tpu.dot_dimension_numbers<[1], [0], [0], [1], [0, 0, 1, 1], [], []>} : vector<16x32xbf16>, vector<32x32xbf16>, vector<16x32xf32> -> vector<16x32xf32>
    %8 = arith.addf %3, %7 : vector<16x32xf32>
    %c0_6 = arith.constant 0 : index
    %c0_7 = arith.constant 0 : index
    %9 = vector.load %arg8[%c0_6, %c0_7] : memref<16x32xf32, #tpu.memory_space<vmem>>, vector<16x32xf32>
    tpu.vector_store %arg8[%c0_6, %c0_7], %8 {strides = array<i32>} : memref<16x32xf32, #tpu.memory_space<vmem>>, vector<16x32xf32>,
    %c0_i32_8 = arith.constant 0 : i32
    %10 = arith.cmpi eq, %arg2, %c0_i32_8 : i32
    %11 = arith.extui %10 : i1 to i32
    %c0_i32_9 = arith.constant 0 : i32
    %12 = arith.cmpi ne, %11, %c0_i32_9 : i32
    scf.if %12 {
      %c0_10 = arith.constant 0 : index
      %c0_11 = arith.constant 0 : index
      %13 = vector.load %arg8[%c0_10, %c0_11] : memref<16x32xf32, #tpu.memory_space<vmem>>, vector<16x32xf32>
      %c0_12 = arith.constant 0 : index
      %c0_13 = arith.constant 0 : index
      %14 = vector.load %arg5[%c0_12, %c0_13] : memref<1x32xf32, #tpu.memory_space<vmem>>, vector<1x32xf32>
      %15 = vector.broadcast %14 : vector<1x32xf32> to vector<16x32xf32>
      %16 = arith.addf %13, %15 : vector<16x32xf32>
      %c0_14 = arith.constant 0 : index
      %c0_15 = arith.constant 0 : index
      %17 = vector.load %arg6[%c0_14, %c0_15] : memref<16x32xf32, #tpu.memory_space<vmem>>, vector<16x32xf32>
      %18 = arith.addf %16, %17 : vector<16x32xf32>
      %c0_16 = arith.constant 0 : index
      %c0_17 = arith.constant 0 : index
      %19 = vector.load %arg7[%c0_16, %c0_17] : memref<16x32xf32, #tpu.memory_space<vmem>>, vector<16x32xf32>
      tpu.vector_store %arg7[%c0_16, %c0_17], %18 {strides = array<i32>} : memref<16x32xf32, #tpu.memory_space<vmem>>, vector<16x32xf32>,
    } else {
    }
    return
  }
  func.func @transform_0(%arg0: i32, %arg1: i32, %arg2: i32) -> (i32, i32) {
    %c0_i32 = arith.constant 0 : i32
    return %arg0, %arg2 : i32, i32
  }
  func.func @transform_1(%arg0: i32, %arg1: i32, %arg2: i32) -> (i32, i32) {
    %c0_i32 = arith.constant 0 : i32
    return %arg2, %arg1 : i32, i32
  }
  func.func @transform_2(%arg0: i32, %arg1: i32, %arg2: i32) -> (i32, i32) {
    %c0_i32 = arith.constant 0 : i32
    %c0_i32_0 = arith.constant 0 : i32
    return %c0_i32, %arg1 : i32, i32
  }
  func.func @transform_3(%arg0: i32, %arg1: i32, %arg2: i32) -> (i32, i32) {
    %c0_i32 = arith.constant 0 : i32
    return %arg0, %arg1 : i32, i32
  }
  func.func @transform_4(%arg0: i32, %arg1: i32, %arg2: i32) -> (i32, i32) {
    %c0_i32 = arith.constant 0 : i32
    return %arg0, %arg1 : i32, i32
  }
}

module attributes {stable_mosaic.version = 11 : i64} {
  func.func @_attn_kernel(%arg0: i32, %arg1: i32, %arg2: memref<1x8x32xf32, #tpu.memory_space<vmem>>, %arg3: memref<1x8x32xf32, #tpu.memory_space<vmem>>, %arg4: memref<1x8x32xf32, #tpu.memory_space<vmem>>, %arg5: memref<1x8x32xf32, #tpu.memory_space<vmem>>) attributes {dimension_semantics = [#tpu.dimension_semantics<parallel>, #tpu.dimension_semantics<parallel>], iteration_bounds = array<i64: 2, 1>, scalar_prefetch = 0 : i64, scratch_operands = 0 : i64, tpu.core_type = #tpu.core_type<tc>, window_params = [{transform_indices = @transform_0, window_bounds = array<i64: 1, 8, 32>}, {transform_indices = @transform_1, window_bounds = array<i64: 1, 8, 32>}, {transform_indices = @transform_2, window_bounds = array<i64: 1, 8, 32>}, {transform_indices = @transform_3, window_bounds = array<i64: 1, 8, 32>}]} {
    %c0 = arith.constant 0 : index
    %c0_0 = arith.constant 0 : index
    %c0_1 = arith.constant 0 : index
    %0 = vector.load %arg2[%c0, %c0_0, %c0_1] : memref<1x8x32xf32, #tpu.memory_space<vmem>>, vector<1x8x32xf32>
    %1 = vector.shape_cast %0 : vector<1x8x32xf32> to vector<8x32xf32>
    %c0_2 = arith.constant 0 : index
    %c0_3 = arith.constant 0 : index
    %c0_4 = arith.constant 0 : index
    %2 = vector.load %arg3[%c0_2, %c0_3, %c0_4] : memref<1x8x32xf32, #tpu.memory_space<vmem>>, vector<1x8x32xf32>
    %3 = vector.shape_cast %2 : vector<1x8x32xf32> to vector<8x32xf32>
    %c0_5 = arith.constant 0 : index
    %c0_6 = arith.constant 0 : index
    %c0_7 = arith.constant 0 : index
    %4 = vector.load %arg4[%c0_5, %c0_6, %c0_7] : memref<1x8x32xf32, #tpu.memory_space<vmem>>, vector<1x8x32xf32>
    %5 = vector.shape_cast %4 : vector<1x8x32xf32> to vector<8x32xf32>
    %6 = vector.extract_strided_slice %1 {offsets = [0, 0], sizes = [8, 8], strides = [1, 1]} : vector<8x32xf32> to vector<8x8xf32>
    %7 = arith.truncf %6 : vector<8x8xf32> to vector<8x8xbf16>
    %8 = vector.extract_strided_slice %3 {offsets = [0, 0], sizes = [8, 8], strides = [1, 1]} : vector<8x32xf32> to vector<8x8xf32>
    %9 = arith.truncf %8 : vector<8x8xf32> to vector<8x8xbf16>
    %10 = vector.extract_strided_slice %5 {offsets = [0, 0], sizes = [8, 8], strides = [1, 1]} : vector<8x32xf32> to vector<8x8xf32>
    %11 = arith.truncf %10 : vector<8x8xf32> to vector<8x8xbf16>
    %cst = arith.constant dense<0.000000e+00> : vector<8x8xf32>
    %12 = tpu.matmul %7, %9, %cst {dimension_numbers = #tpu.dot_dimension_numbers<[1], [1], [0], [0], [0, 0, 1, 0], [], []>} : vector<8x8xbf16>, vector<8x8xbf16>, vector<8x8xf32> -> vector<8x8xf32>
    %cst_8 = arith.constant 0.353553385 : f32
    %13 = vector.broadcast %cst_8 : f32 to vector<8x8xf32>
    %14 = arith.mulf %12, %13 : vector<8x8xf32>
    %cst_9 = arith.constant dense<0xFF800000> : vector<8xf32>
    %15 = vector.multi_reduction <maximumf>, %14, %cst_9 [1] : vector<8x8xf32> to vector<8xf32>
    %16 = vector.shape_cast %15 : vector<8xf32> to vector<8x1xf32>
    %17 = vector.broadcast %16 : vector<8x1xf32> to vector<8x8xf32>
    %18 = arith.subf %14, %17 : vector<8x8xf32>
    %19 = math.exp %18 : vector<8x8xf32>
    %cst_10 = arith.constant dense<0.000000e+00> : vector<8xf32>
    %20 = vector.multi_reduction <add>, %19, %cst_10 [1] : vector<8x8xf32> to vector<8xf32>
    %21 = vector.shape_cast %20 : vector<8xf32> to vector<8x1xf32>
    %22 = arith.truncf %19 : vector<8x8xf32> to vector<8x8xbf16>
    %cst_11 = arith.constant dense<0.000000e+00> : vector<8x8xf32>
    %23 = tpu.matmul %22, %11, %cst_11 {dimension_numbers = #tpu.dot_dimension_numbers<[1], [0], [0], [1], [0, 0, 1, 1], [], []>} : vector<8x8xbf16>, vector<8x8xbf16>, vector<8x8xf32> -> vector<8x8xf32>
    %24 = tpu.reciprocal %21 : vector<8x1xf32> -> vector<8x1xf32>
    %25 = vector.broadcast %24 : vector<8x1xf32> to vector<8x8xf32>
    %26 = arith.mulf %23, %25 : vector<8x8xf32>
    %c0_12 = arith.constant 0 : index
    %c0_13 = arith.constant 0 : index
    %c0_14 = arith.constant 0 : index
    %27 = vector.load %arg5[%c0_12, %c0_13, %c0_14] : memref<1x8x32xf32, #tpu.memory_space<vmem>>, vector<1x8x8xf32>
    %28 = vector.shape_cast %27 : vector<1x8x8xf32> to vector<8x8xf32>
    %29 = vector.shape_cast %26 : vector<8x8xf32> to vector<1x8x8xf32>
    tpu.vector_store %arg5[%c0_12, %c0_13, %c0_14], %29 {strides = array<i32>} : memref<1x8x32xf32, #tpu.memory_space<vmem>>, vector<1x8x8xf32>,
    %30 = vector.extract_strided_slice %1 {offsets = [0, 8], sizes = [8, 8], strides = [1, 1]} : vector<8x32xf32> to vector<8x8xf32>
    %31 = arith.truncf %30 : vector<8x8xf32> to vector<8x8xbf16>
    %32 = vector.extract_strided_slice %3 {offsets = [0, 8], sizes = [8, 8], strides = [1, 1]} : vector<8x32xf32> to vector<8x8xf32>
    %33 = arith.truncf %32 : vector<8x8xf32> to vector<8x8xbf16>
    %34 = vector.extract_strided_slice %5 {offsets = [0, 8], sizes = [8, 8], strides = [1, 1]} : vector<8x32xf32> to vector<8x8xf32>
    %35 = arith.truncf %34 : vector<8x8xf32> to vector<8x8xbf16>
    %cst_15 = arith.constant dense<0.000000e+00> : vector<8x8xf32>
    %36 = tpu.matmul %31, %33, %cst_15 {dimension_numbers = #tpu.dot_dimension_numbers<[1], [1], [0], [0], [0, 0, 1, 0], [], []>} : vector<8x8xbf16>, vector<8x8xbf16>, vector<8x8xf32> -> vector<8x8xf32>
    %cst_16 = arith.constant 0.353553385 : f32
    %37 = vector.broadcast %cst_16 : f32 to vector<8x8xf32>
    %38 = arith.mulf %36, %37 : vector<8x8xf32>
    %cst_17 = arith.constant dense<0xFF800000> : vector<8xf32>
    %39 = vector.multi_reduction <maximumf>, %38, %cst_17 [1] : vector<8x8xf32> to vector<8xf32>
    %40 = vector.shape_cast %39 : vector<8xf32> to vector<8x1xf32>
    %41 = vector.broadcast %40 : vector<8x1xf32> to vector<8x8xf32>
    %42 = arith.subf %38, %41 : vector<8x8xf32>
    %43 = math.exp %42 : vector<8x8xf32>
    %cst_18 = arith.constant dense<0.000000e+00> : vector<8xf32>
    %44 = vector.multi_reduction <add>, %43, %cst_18 [1] : vector<8x8xf32> to vector<8xf32>
    %45 = vector.shape_cast %44 : vector<8xf32> to vector<8x1xf32>
    %46 = arith.truncf %43 : vector<8x8xf32> to vector<8x8xbf16>
    %cst_19 = arith.constant dense<0.000000e+00> : vector<8x8xf32>
    %47 = tpu.matmul %46, %35, %cst_19 {dimension_numbers = #tpu.dot_dimension_numbers<[1], [0], [0], [1], [0, 0, 1, 1], [], []>} : vector<8x8xbf16>, vector<8x8xbf16>, vector<8x8xf32> -> vector<8x8xf32>
    %48 = tpu.reciprocal %45 : vector<8x1xf32> -> vector<8x1xf32>
    %49 = vector.broadcast %48 : vector<8x1xf32> to vector<8x8xf32>
    %50 = arith.mulf %47, %49 : vector<8x8xf32>
    %c0_20 = arith.constant 0 : index
    %c0_21 = arith.constant 0 : index
    %c8 = arith.constant 8 : index
    %51 = vector.load %arg5[%c0_20, %c0_21, %c8] : memref<1x8x32xf32, #tpu.memory_space<vmem>>, vector<1x8x8xf32>
    %52 = vector.shape_cast %51 : vector<1x8x8xf32> to vector<8x8xf32>
    %53 = vector.shape_cast %50 : vector<8x8xf32> to vector<1x8x8xf32>
    tpu.vector_store %arg5[%c0_20, %c0_21, %c8], %53 {strides = array<i32>} : memref<1x8x32xf32, #tpu.memory_space<vmem>>, vector<1x8x8xf32>,
    %54 = vector.extract_strided_slice %1 {offsets = [0, 16], sizes = [8, 8], strides = [1, 1]} : vector<8x32xf32> to vector<8x8xf32>
    %55 = arith.truncf %54 : vector<8x8xf32> to vector<8x8xbf16>
    %56 = vector.extract_strided_slice %3 {offsets = [0, 16], sizes = [8, 8], strides = [1, 1]} : vector<8x32xf32> to vector<8x8xf32>
    %57 = arith.truncf %56 : vector<8x8xf32> to vector<8x8xbf16>
    %58 = vector.extract_strided_slice %5 {offsets = [0, 16], sizes = [8, 8], strides = [1, 1]} : vector<8x32xf32> to vector<8x8xf32>
    %59 = arith.truncf %58 : vector<8x8xf32> to vector<8x8xbf16>
    %cst_22 = arith.constant dense<0.000000e+00> : vector<8x8xf32>
    %60 = tpu.matmul %55, %57, %cst_22 {dimension_numbers = #tpu.dot_dimension_numbers<[1], [1], [0], [0], [0, 0, 1, 0], [], []>} : vector<8x8xbf16>, vector<8x8xbf16>, vector<8x8xf32> -> vector<8x8xf32>
    %cst_23 = arith.constant 0.353553385 : f32
    %61 = vector.broadcast %cst_23 : f32 to vector<8x8xf32>
    %62 = arith.mulf %60, %61 : vector<8x8xf32>
    %cst_24 = arith.constant dense<0xFF800000> : vector<8xf32>
    %63 = vector.multi_reduction <maximumf>, %62, %cst_24 [1] : vector<8x8xf32> to vector<8xf32>
    %64 = vector.shape_cast %63 : vector<8xf32> to vector<8x1xf32>
    %65 = vector.broadcast %64 : vector<8x1xf32> to vector<8x8xf32>
    %66 = arith.subf %62, %65 : vector<8x8xf32>
    %67 = math.exp %66 : vector<8x8xf32>
    %cst_25 = arith.constant dense<0.000000e+00> : vector<8xf32>
    %68 = vector.multi_reduction <add>, %67, %cst_25 [1] : vector<8x8xf32> to vector<8xf32>
    %69 = vector.shape_cast %68 : vector<8xf32> to vector<8x1xf32>
    %70 = arith.truncf %67 : vector<8x8xf32> to vector<8x8xbf16>
    %cst_26 = arith.constant dense<0.000000e+00> : vector<8x8xf32>
    %71 = tpu.matmul %70, %59, %cst_26 {dimension_numbers = #tpu.dot_dimension_numbers<[1], [0], [0], [1], [0, 0, 1, 1], [], []>} : vector<8x8xbf16>, vector<8x8xbf16>, vector<8x8xf32> -> vector<8x8xf32>
    %72 = tpu.reciprocal %69 : vector<8x1xf32> -> vector<8x1xf32>
    %73 = vector.broadcast %72 : vector<8x1xf32> to vector<8x8xf32>
    %74 = arith.mulf %71, %73 : vector<8x8xf32>
    %c0_27 = arith.constant 0 : index
    %c0_28 = arith.constant 0 : index
    %c16 = arith.constant 16 : index
    %75 = vector.load %arg5[%c0_27, %c0_28, %c16] : memref<1x8x32xf32, #tpu.memory_space<vmem>>, vector<1x8x8xf32>
    %76 = vector.shape_cast %75 : vector<1x8x8xf32> to vector<8x8xf32>
    %77 = vector.shape_cast %74 : vector<8x8xf32> to vector<1x8x8xf32>
    tpu.vector_store %arg5[%c0_27, %c0_28, %c16], %77 {strides = array<i32>} : memref<1x8x32xf32, #tpu.memory_space<vmem>>, vector<1x8x8xf32>,
    %78 = vector.extract_strided_slice %1 {offsets = [0, 24], sizes = [8, 8], strides = [1, 1]} : vector<8x32xf32> to vector<8x8xf32>
    %79 = arith.truncf %78 : vector<8x8xf32> to vector<8x8xbf16>
    %80 = vector.extract_strided_slice %3 {offsets = [0, 24], sizes = [8, 8], strides = [1, 1]} : vector<8x32xf32> to vector<8x8xf32>
    %81 = arith.truncf %80 : vector<8x8xf32> to vector<8x8xbf16>
    %82 = vector.extract_strided_slice %5 {offsets = [0, 24], sizes = [8, 8], strides = [1, 1]} : vector<8x32xf32> to vector<8x8xf32>
    %83 = arith.truncf %82 : vector<8x8xf32> to vector<8x8xbf16>
    %cst_29 = arith.constant dense<0.000000e+00> : vector<8x8xf32>
    %84 = tpu.matmul %79, %81, %cst_29 {dimension_numbers = #tpu.dot_dimension_numbers<[1], [1], [0], [0], [0, 0, 1, 0], [], []>} : vector<8x8xbf16>, vector<8x8xbf16>, vector<8x8xf32> -> vector<8x8xf32>
    %cst_30 = arith.constant 0.353553385 : f32
    %85 = vector.broadcast %cst_30 : f32 to vector<8x8xf32>
    %86 = arith.mulf %84, %85 : vector<8x8xf32>
    %cst_31 = arith.constant dense<0xFF800000> : vector<8xf32>
    %87 = vector.multi_reduction <maximumf>, %86, %cst_31 [1] : vector<8x8xf32> to vector<8xf32>
    %88 = vector.shape_cast %87 : vector<8xf32> to vector<8x1xf32>
    %89 = vector.broadcast %88 : vector<8x1xf32> to vector<8x8xf32>
    %90 = arith.subf %86, %89 : vector<8x8xf32>
    %91 = math.exp %90 : vector<8x8xf32>
    %cst_32 = arith.constant dense<0.000000e+00> : vector<8xf32>
    %92 = vector.multi_reduction <add>, %91, %cst_32 [1] : vector<8x8xf32> to vector<8xf32>
    %93 = vector.shape_cast %92 : vector<8xf32> to vector<8x1xf32>
    %94 = arith.truncf %91 : vector<8x8xf32> to vector<8x8xbf16>
    %cst_33 = arith.constant dense<0.000000e+00> : vector<8x8xf32>
    %95 = tpu.matmul %94, %83, %cst_33 {dimension_numbers = #tpu.dot_dimension_numbers<[1], [0], [0], [1], [0, 0, 1, 1], [], []>} : vector<8x8xbf16>, vector<8x8xbf16>, vector<8x8xf32> -> vector<8x8xf32>
    %96 = tpu.reciprocal %93 : vector<8x1xf32> -> vector<8x1xf32>
    %97 = vector.broadcast %96 : vector<8x1xf32> to vector<8x8xf32>
    %98 = arith.mulf %95, %97 : vector<8x8xf32>
    %c0_34 = arith.constant 0 : index
    %c0_35 = arith.constant 0 : index
    %c24 = arith.constant 24 : index
    %99 = vector.load %arg5[%c0_34, %c0_35, %c24] : memref<1x8x32xf32, #tpu.memory_space<vmem>>, vector<1x8x8xf32>
    %100 = vector.shape_cast %99 : vector<1x8x8xf32> to vector<8x8xf32>
    %101 = vector.shape_cast %98 : vector<8x8xf32> to vector<1x8x8xf32>
    tpu.vector_store %arg5[%c0_34, %c0_35, %c24], %101 {strides = array<i32>} : memref<1x8x32xf32, #tpu.memory_space<vmem>>, vector<1x8x8xf32>,
    return
  }
  func.func @transform_0(%arg0: i32, %arg1: i32) -> (i32, i32, i32) {
    %c0_i32 = arith.constant 0 : i32
    %c0_i32_0 = arith.constant 0 : i32
    return %arg0, %arg1, %c0_i32 : i32, i32, i32
  }
  func.func @transform_1(%arg0: i32, %arg1: i32) -> (i32, i32, i32) {
    %c0_i32 = arith.constant 0 : i32
    %c0_i32_0 = arith.constant 0 : i32
    %c0_i32_1 = arith.constant 0 : i32
    return %arg0, %c0_i32, %c0_i32_0 : i32, i32, i32
  }
  func.func @transform_2(%arg0: i32, %arg1: i32) -> (i32, i32, i32) {
    %c0_i32 = arith.constant 0 : i32
    %c0_i32_0 = arith.constant 0 : i32
    %c0_i32_1 = arith.constant 0 : i32
    return %arg0, %c0_i32, %c0_i32_0 : i32, i32, i32
  }
  func.func @transform_3(%arg0: i32, %arg1: i32) -> (i32, i32, i32) {
    %c0_i32 = arith.constant 0 : i32
    %c0_i32_0 = arith.constant 0 : i32
    return %arg0, %arg1, %c0_i32 : i32, i32, i32
  }
}

module attributes {stable_mosaic.version = 11 : i64} {
  func.func @_ln_ff_res_kernel(%arg0: i32, %arg1: i32, %arg2: memref<16x32xf32, #tpu.memory_space<vmem>>, %arg3: memref<1x32xf32, #tpu.memory_space<vmem>>, %arg4: memref<1x32xf32, #tpu.memory_space<vmem>>, %arg5: memref<32x128xbf16, #tpu.memory_space<vmem>>, %arg6: memref<1x128xf32, #tpu.memory_space<vmem>>, %arg7: memref<128x32xbf16, #tpu.memory_space<vmem>>, %arg8: memref<1x32xf32, #tpu.memory_space<vmem>>, %arg9: memref<16x32xf32, #tpu.memory_space<vmem>>, %arg10: memref<16x32xbf16, #tpu.memory_space<vmem>>, %arg11: memref<16x32xf32, #tpu.memory_space<vmem>>) attributes {dimension_semantics = [#tpu.dimension_semantics<parallel>, #tpu.dimension_semantics<arbitrary>], iteration_bounds = array<i64: 1, 1>, scalar_prefetch = 0 : i64, scratch_operands = 2 : i64, tpu.core_type = #tpu.core_type<tc>, window_params = [{transform_indices = @transform_0, window_bounds = array<i64: 16, 32>}, {pipeline_mode = #tpu.pipeline_mode<synchronous>, transform_indices = @transform_1, window_bounds = array<i64: 1, 32>}, {pipeline_mode = #tpu.pipeline_mode<synchronous>, transform_indices = @transform_2, window_bounds = array<i64: 1, 32>}, {transform_indices = @transform_3, window_bounds = array<i64: 32, 128>}, {transform_indices = @transform_4, window_bounds = array<i64: 1, 128>}, {transform_indices = @transform_5, window_bounds = array<i64: 128, 32>}, {pipeline_mode = #tpu.pipeline_mode<synchronous>, transform_indices = @transform_6, window_bounds = array<i64: 1, 32>}, {transform_indices = @transform_7, window_bounds = array<i64: 16, 32>}]} {
    %c0_i32 = arith.constant 0 : i32
    %0 = arith.cmpi eq, %arg1, %c0_i32 : i32
    %1 = arith.extui %0 : i1 to i32
    %c0_i32_0 = arith.constant 0 : i32
    %2 = arith.cmpi ne, %1, %c0_i32_0 : i32
    scf.if %2 {
      %c0_19 = arith.constant 0 : index
      %c0_20 = arith.constant 0 : index
      %31 = vector.load %arg2[%c0_19, %c0_20] : memref<16x32xf32, #tpu.memory_space<vmem>>, vector<16x32xf32>
      %cst_21 = arith.constant dense<0.000000e+00> : vector<16xf32>
      %32 = vector.multi_reduction <add>, %31, %cst_21 [1] : vector<16x32xf32> to vector<16xf32>
      %33 = vector.shape_cast %32 : vector<16xf32> to vector<16x1xf32>
      %cst_22 = arith.constant 3.200000e+01 : f32
      %34 = vector.broadcast %cst_22 : f32 to vector<16x1xf32>
      %35 = arith.divf %33, %34 : vector<16x1xf32>
      %36 = vector.broadcast %35 : vector<16x1xf32> to vector<16x32xf32>
      %37 = arith.subf %31, %36 : vector<16x32xf32>
      %38 = arith.mulf %37, %37 : vector<16x32xf32>
      %cst_23 = arith.constant dense<0.000000e+00> : vector<16xf32>
      %39 = vector.multi_reduction <add>, %38, %cst_23 [1] : vector<16x32xf32> to vector<16xf32>
      %40 = vector.shape_cast %39 : vector<16xf32> to vector<16x1xf32>
      %cst_24 = arith.constant 3.200000e+01 : f32
      %41 = vector.broadcast %cst_24 : f32 to vector<16x1xf32>
      %42 = arith.divf %40, %41 : vector<16x1xf32>
      %43 = vector.broadcast %35 : vector<16x1xf32> to vector<16x32xf32>
      %44 = arith.subf %31, %43 : vector<16x32xf32>
      %cst_25 = arith.constant 9.99999974E-6 : f32
      %45 = vector.broadcast %cst_25 : f32 to vector<16x1xf32>
      %46 = arith.addf %42, %45 : vector<16x1xf32>
      %47 = math.rsqrt %46 : vector<16x1xf32>
      %48 = vector.broadcast %47 : vector<16x1xf32> to vector<16x32xf32>
      %49 = arith.mulf %44, %48 : vector<16x32xf32>
      %c0_26 = arith.constant 0 : index
      %c0_27 = arith.constant 0 : index
      %50 = vector.load %arg3[%c0_26, %c0_27] : memref<1x32xf32, #tpu.memory_space<vmem>>, vector<1x32xf32>
      %51 = vector.broadcast %50 : vector<1x32xf32> to vector<16x32xf32>
      %52 = arith.mulf %49, %51 : vector<16x32xf32>
      %c0_28 = arith.constant 0 : index
      %c0_29 = arith.constant 0 : index
      %53 = vector.load %arg4[%c0_28, %c0_29] : memref<1x32xf32, #tpu.memory_space<vmem>>, vector<1x32xf32>
      %54 = vector.broadcast %53 : vector<1x32xf32> to vector<16x32xf32>
      %55 = arith.addf %52, %54 : vector<16x32xf32>
      %56 = arith.truncf %55 : vector<16x32xf32> to vector<16x32xbf16>
      %c0_30 = arith.constant 0 : index
      %c0_31 = arith.constant 0 : index
      %57 = vector.load %arg10[%c0_30, %c0_31] : memref<16x32xbf16, #tpu.memory_space<vmem>>, vector<16x32xbf16>
      tpu.vector_store %arg10[%c0_30, %c0_31], %56 {strides = array<i32>} : memref<16x32xbf16, #tpu.memory_space<vmem>>, vector<16x32xbf16>,
      %c0_32 = arith.constant 0 : index
      %c0_33 = arith.constant 0 : index
      %58 = vector.load %arg11[%c0_32, %c0_33] : memref<16x32xf32, #tpu.memory_space<vmem>>, vector<16x32xf32>
      tpu.vector_store %arg11[%c0_32, %c0_33], %31 {strides = array<i32>} : memref<16x32xf32, #tpu.memory_space<vmem>>, vector<16x32xf32>,
    } else {
    }
    %c0 = arith.constant 0 : index
    %c0_1 = arith.constant 0 : index
    %3 = vector.load %arg10[%c0, %c0_1] : memref<16x32xbf16, #tpu.memory_space<vmem>>, vector<16x32xbf16>
    %c0_2 = arith.constant 0 : index
    %c0_3 = arith.constant 0 : index
    %4 = vector.load %arg5[%c0_2, %c0_3] : memref<32x128xbf16, #tpu.memory_space<vmem>>, vector<32x128xbf16>
    %cst = arith.constant dense<0.000000e+00> : vector<16x128xf32>
    %5 = tpu.matmul %3, %4, %cst {dimension_numbers = #tpu.dot_dimension_numbers<[1], [0], [0], [1], [0, 0, 1, 1], [], []>} : vector<16x32xbf16>, vector<32x128xbf16>, vector<16x128xf32> -> vector<16x128xf32>
    %c0_4 = arith.constant 0 : index
    %c0_5 = arith.constant 0 : index
    %6 = vector.load %arg6[%c0_4, %c0_5] : memref<1x128xf32, #tpu.memory_space<vmem>>, vector<1x128xf32>
    %7 = vector.broadcast %6 : vector<1x128xf32> to vector<16x128xf32>
    %8 = arith.addf %5, %7 : vector<16x128xf32>
    %cst_6 = arith.constant 5.000000e-01 : f32
    %9 = vector.broadcast %cst_6 : f32 to vector<16x128xf32>
    %10 = arith.mulf %9, %8 : vector<16x128xf32>
    %cst_7 = arith.constant 4.471500e-02 : f32
    %11 = vector.broadcast %cst_7 : f32 to vector<16x128xf32>
    %12 = arith.mulf %11, %8 : vector<16x128xf32>
    %13 = arith.mulf %12, %8 : vector<16x128xf32>
    %14 = arith.mulf %13, %8 : vector<16x128xf32>
    %15 = arith.addf %8, %14 : vector<16x128xf32>
    %cst_8 = arith.constant 0.797884583 : f32
    %16 = vector.broadcast %cst_8 : f32 to vector<16x128xf32>
    %17 = arith.mulf %16, %15 : vector<16x128xf32>
    %18 = math.tanh %17 : vector<16x128xf32>
    %cst_9 = arith.constant 1.000000e+00 : f32
    %19 = vector.broadcast %cst_9 : f32 to vector<16x128xf32>
    %20 = arith.addf %19, %18 : vector<16x128xf32>
    %21 = arith.mulf %10, %20 : vector<16x128xf32>
    %c0_10 = arith.constant 0 : index
    %c0_11 = arith.constant 0 : index
    %22 = vector.load %arg11[%c0_10, %c0_11] : memref<16x32xf32, #tpu.memory_space<vmem>>, vector<16x32xf32>
    %23 = arith.truncf %21 : vector<16x128xf32> to vector<16x128xbf16>
    %c0_12 = arith.constant 0 : index
    %c0_13 = arith.constant 0 : index
    %24 = vector.load %arg7[%c0_12, %c0_13] : memref<128x32xbf16, #tpu.memory_space<vmem>>, vector<128x32xbf16>
    %cst_14 = arith.constant dense<0.000000e+00> : vector<16x32xf32>
    %25 = tpu.matmul %23, %24, %cst_14 {dimension_numbers = #tpu.dot_dimension_numbers<[1], [0], [0], [1], [0, 0, 1, 1], [], []>} : vector<16x128xbf16>, vector<128x32xbf16>, vector<16x32xf32> -> vector<16x32xf32>
    %26 = arith.addf %22, %25 : vector<16x32xf32>
    %c0_15 = arith.constant 0 : index
    %c0_16 = arith.constant 0 : index
    %27 = vector.load %arg11[%c0_15, %c0_16] : memref<16x32xf32, #tpu.memory_space<vmem>>, vector<16x32xf32>
    tpu.vector_store %arg11[%c0_15, %c0_16], %26 {strides = array<i32>} : memref<16x32xf32, #tpu.memory_space<vmem>>, vector<16x32xf32>,
    %c0_i32_17 = arith.constant 0 : i32
    %28 = arith.cmpi eq, %arg1, %c0_i32_17 : i32
    %29 = arith.extui %28 : i1 to i32
    %c0_i32_18 = arith.constant 0 : i32
    %30 = arith.cmpi ne, %29, %c0_i32_18 : i32
    scf.if %30 {
      %c0_19 = arith.constant 0 : index
      %c0_20 = arith.constant 0 : index
      %31 = vector.load %arg11[%c0_19, %c0_20] : memref<16x32xf32, #tpu.memory_space<vmem>>, vector<16x32xf32>
      %c0_21 = arith.constant 0 : index
      %c0_22 = arith.constant 0 : index
      %32 = vector.load %arg8[%c0_21, %c0_22] : memref<1x32xf32, #tpu.memory_space<vmem>>, vector<1x32xf32>
      %33 = vector.broadcast %32 : vector<1x32xf32> to vector<16x32xf32>
      %34 = arith.addf %31, %33 : vector<16x32xf32>
      %c0_23 = arith.constant 0 : index
      %c0_24 = arith.constant 0 : index
      %35 = vector.load %arg9[%c0_23, %c0_24] : memref<16x32xf32, #tpu.memory_space<vmem>>, vector<16x32xf32>
      tpu.vector_store %arg9[%c0_23, %c0_24], %34 {strides = array<i32>} : memref<16x32xf32, #tpu.memory_space<vmem>>, vector<16x32xf32>,
    } else {
    }
    return
  }
  func.func @transform_0(%arg0: i32, %arg1: i32) -> (i32, i32) {
    %c0_i32 = arith.constant 0 : i32
    %c0_i32_0 = arith.constant 0 : i32
    return %arg0, %c0_i32 : i32, i32
  }
  func.func @transform_1(%arg0: i32, %arg1: i32) -> (i32, i32) {
    %c0_i32 = arith.constant 0 : i32
    %c0_i32_0 = arith.constant 0 : i32
    %c0_i32_1 = arith.constant 0 : i32
    return %c0_i32, %c0_i32_0 : i32, i32
  }
  func.func @transform_2(%arg0: i32, %arg1: i32) -> (i32, i32) {
    %c0_i32 = arith.constant 0 : i32
    %c0_i32_0 = arith.constant 0 : i32
    %c0_i32_1 = arith.constant 0 : i32
    return %c0_i32, %c0_i32_0 : i32, i32
  }
  func.func @transform_3(%arg0: i32, %arg1: i32) -> (i32, i32) {
    %c0_i32 = arith.constant 0 : i32
    %c0_i32_0 = arith.constant 0 : i32
    return %c0_i32, %arg1 : i32, i32
  }
  func.func @transform_4(%arg0: i32, %arg1: i32) -> (i32, i32) {
    %c0_i32 = arith.constant 0 : i32
    %c0_i32_0 = arith.constant 0 : i32
    return %c0_i32, %arg1 : i32, i32
  }
  func.func @transform_5(%arg0: i32, %arg1: i32) -> (i32, i32) {
    %c0_i32 = arith.constant 0 : i32
    %c0_i32_0 = arith.constant 0 : i32
    return %arg1, %c0_i32 : i32, i32
  }
  func.func @transform_6(%arg0: i32, %arg1: i32) -> (i32, i32) {
    %c0_i32 = arith.constant 0 : i32
    %c0_i32_0 = arith.constant 0 : i32
    %c0_i32_1 = arith.constant 0 : i32
    return %c0_i32, %c0_i32_0 : i32, i32
  }
  func.func @transform_7(%arg0: i32, %arg1: i32) -> (i32, i32) {
    %c0_i32 = arith.constant 0 : i32
    %c0_i32_0 = arith.constant 0 : i32
    return %arg0, %c0_i32 : i32, i32
  }
}

module attributes {stable_mosaic.version = 11 : i64} {
  func.func @_layernorm_kernel(%arg0: i32, %arg1: memref<16x32xf32, #tpu.memory_space<vmem>>, %arg2: memref<1x32xf32, #tpu.memory_space<vmem>>, %arg3: memref<1x32xf32, #tpu.memory_space<vmem>>, %arg4: memref<16x32xf32, #tpu.memory_space<vmem>>) attributes {dimension_semantics = [#tpu.dimension_semantics<parallel>], iteration_bounds = array<i64: 1>, scalar_prefetch = 0 : i64, scratch_operands = 0 : i64, tpu.core_type = #tpu.core_type<tc>, window_params = [{transform_indices = @transform_0, window_bounds = array<i64: 16, 32>}, {pipeline_mode = #tpu.pipeline_mode<synchronous>, transform_indices = @transform_1, window_bounds = array<i64: 1, 32>}, {pipeline_mode = #tpu.pipeline_mode<synchronous>, transform_indices = @transform_2, window_bounds = array<i64: 1, 32>}, {transform_indices = @transform_3, window_bounds = array<i64: 16, 32>}]} {
    %c0 = arith.constant 0 : index
    %c0_0 = arith.constant 0 : index
    %0 = vector.load %arg1[%c0, %c0_0] : memref<16x32xf32, #tpu.memory_space<vmem>>, vector<16x32xf32>
    %cst = arith.constant dense<0.000000e+00> : vector<16xf32>
    %1 = vector.multi_reduction <add>, %0, %cst [1] : vector<16x32xf32> to vector<16xf32>
    %2 = vector.shape_cast %1 : vector<16xf32> to vector<16x1xf32>
    %cst_1 = arith.constant 3.200000e+01 : f32
    %3 = vector.broadcast %cst_1 : f32 to vector<16x1xf32>
    %4 = arith.divf %2, %3 : vector<16x1xf32>
    %5 = vector.broadcast %4 : vector<16x1xf32> to vector<16x32xf32>
    %6 = arith.subf %0, %5 : vector<16x32xf32>
    %7 = arith.mulf %6, %6 : vector<16x32xf32>
    %cst_2 = arith.constant dense<0.000000e+00> : vector<16xf32>
    %8 = vector.multi_reduction <add>, %7, %cst_2 [1] : vector<16x32xf32> to vector<16xf32>
    %9 = vector.shape_cast %8 : vector<16xf32> to vector<16x1xf32>
    %cst_3 = arith.constant 3.200000e+01 : f32
    %10 = vector.broadcast %cst_3 : f32 to vector<16x1xf32>
    %11 = arith.divf %9, %10 : vector<16x1xf32>
    %12 = vector.broadcast %4 : vector<16x1xf32> to vector<16x32xf32>
    %13 = arith.subf %0, %12 : vector<16x32xf32>
    %cst_4 = arith.constant 9.99999974E-6 : f32
    %14 = vector.broadcast %cst_4 : f32 to vector<16x1xf32>
    %15 = arith.addf %11, %14 : vector<16x1xf32>
    %16 = math.rsqrt %15 : vector<16x1xf32>
    %17 = vector.broadcast %16 : vector<16x1xf32> to vector<16x32xf32>
    %18 = arith.mulf %13, %17 : vector<16x32xf32>
    %c0_5 = arith.constant 0 : index
    %c0_6 = arith.constant 0 : index
    %19 = vector.load %arg2[%c0_5, %c0_6] : memref<1x32xf32, #tpu.memory_space<vmem>>, vector<1x32xf32>
    %20 = vector.broadcast %19 : vector<1x32xf32> to vector<16x32xf32>
    %21 = arith.mulf %18, %20 : vector<16x32xf32>
    %c0_7 = arith.constant 0 : index
    %c0_8 = arith.constant 0 : index
    %22 = vector.load %arg3[%c0_7, %c0_8] : memref<1x32xf32, #tpu.memory_space<vmem>>, vector<1x32xf32>
    %23 = vector.broadcast %22 : vector<1x32xf32> to vector<16x32xf32>
    %24 = arith.addf %21, %23 : vector<16x32xf32>
    %c0_9 = arith.constant 0 : index
    %c0_10 = arith.constant 0 : index
    %25 = vector.load %arg4[%c0_9, %c0_10] : memref<16x32xf32, #tpu.memory_space<vmem>>, vector<16x32xf32>
    tpu.vector_store %arg4[%c0_9, %c0_10], %24 {strides = array<i32>} : memref<16x32xf32, #tpu.memory_space<vmem>>, vector<16x32xf32>,
    return
  }
  func.func @transform_0(%arg0: i32) -> (i32, i32) {
    %c0_i32 = arith.constant 0 : i32
    %c0_i32_0 = arith.constant 0 : i32
    return %arg0, %c0_i32 : i32, i32
  }
  func.func @transform_1(%arg0: i32) -> (i32, i32) {
    %c0_i32 = arith.constant 0 : i32
    %c0_i32_0 = arith.constant 0 : i32
    %c0_i32_1 = arith.constant 0 : i32
    return %c0_i32, %c0_i32_0 : i32, i32
  }
  func.func @transform_2(%arg0: i32) -> (i32, i32) {
    %c0_i32 = arith.constant 0 : i32
    %c0_i32_0 = arith.constant 0 : i32
    %c0_i32_1 = arith.constant 0 : i32
    return %c0_i32, %c0_i32_0 : i32, i32
  }
  func.func @transform_3(%arg0: i32) -> (i32, i32) {
    %c0_i32 = arith.constant 0 : i32
    %c0_i32_0 = arith.constant 0 : i32
    return %arg0, %c0_i32 : i32, i32
  }
}

module attributes {stable_mosaic.version = 11 : i64} {
  func.func @kernel(%arg0: i32, %arg1: i32, %arg2: memref<16x32xf32, #tpu.memory_space<vmem>>, %arg3: memref<32x32xbf16, #tpu.memory_space<vmem>>, %arg4: memref<32x32xbf16, #tpu.memory_space<vmem>>, %arg5: memref<16x32xf32, #tpu.memory_space<vmem>>, %arg6: memref<16x32xf32, #tpu.memory_space<vmem>>) attributes {dimension_semantics = [#tpu.dimension_semantics<parallel>, #tpu.dimension_semantics<parallel>], iteration_bounds = array<i64: 1, 1>, scalar_prefetch = 0 : i64, scratch_operands = 0 : i64, tpu.core_type = #tpu.core_type<tc>, window_params = [{transform_indices = @transform_0, window_bounds = array<i64: 16, 32>}, {transform_indices = @transform_1, window_bounds = array<i64: 32, 32>}, {transform_indices = @transform_2, window_bounds = array<i64: 32, 32>}, {transform_indices = @transform_3, window_bounds = array<i64: 16, 32>}, {transform_indices = @transform_4, window_bounds = array<i64: 16, 32>}]} {
    %c0 = arith.constant 0 : index
    %c0_0 = arith.constant 0 : index
    %0 = vector.load %arg2[%c0, %c0_0] : memref<16x32xf32, #tpu.memory_space<vmem>>, vector<16x32xf32>
    %1 = arith.truncf %0 : vector<16x32xf32> to vector<16x32xbf16>
    %c0_1 = arith.constant 0 : index
    %c0_2 = arith.constant 0 : index
    %2 = vector.load %arg3[%c0_1, %c0_2] : memref<32x32xbf16, #tpu.memory_space<vmem>>, vector<32x32xbf16>
    %cst = arith.constant dense<0.000000e+00> : vector<16x32xf32>
    %3 = tpu.matmul %1, %2, %cst {dimension_numbers = #tpu.dot_dimension_numbers<[1], [0], [0], [1], [0, 0, 1, 1], [], []>} : vector<16x32xbf16>, vector<32x32xbf16>, vector<16x32xf32> -> vector<16x32xf32>
    %c0_3 = arith.constant 0 : index
    %c0_4 = arith.constant 0 : index
    %4 = vector.load %arg5[%c0_3, %c0_4] : memref<16x32xf32, #tpu.memory_space<vmem>>, vector<16x32xf32>
    tpu.vector_store %arg5[%c0_3, %c0_4], %3 {strides = array<i32>} : memref<16x32xf32, #tpu.memory_space<vmem>>, vector<16x32xf32>,
    %c0_5 = arith.constant 0 : index
    %c0_6 = arith.constant 0 : index
    %5 = vector.load %arg4[%c0_5, %c0_6] : memref<32x32xbf16, #tpu.memory_space<vmem>>, vector<32x32xbf16>
    %cst_7 = arith.constant dense<0.000000e+00> : vector<16x32xf32>
    %6 = tpu.matmul %1, %5, %cst_7 {dimension_numbers = #tpu.dot_dimension_numbers<[1], [0], [0], [1], [0, 0, 1, 1], [], []>} : vector<16x32xbf16>, vector<32x32xbf16>, vector<16x32xf32> -> vector<16x32xf32>
    %c0_8 = arith.constant 0 : index
    %c0_9 = arith.constant 0 : index
    %7 = vector.load %arg6[%c0_8, %c0_9] : memref<16x32xf32, #tpu.memory_space<vmem>>, vector<16x32xf32>
    tpu.vector_store %arg6[%c0_8, %c0_9], %6 {strides = array<i32>} : memref<16x32xf32, #tpu.memory_space<vmem>>, vector<16x32xf32>,
    return
  }
  func.func @transform_0(%arg0: i32, %arg1: i32) -> (i32, i32) {
    %c0_i32 = arith.constant 0 : i32
    %c0_i32_0 = arith.constant 0 : i32
    return %arg0, %c0_i32 : i32, i32
  }
  func.func @transform_1(%arg0: i32, %arg1: i32) -> (i32, i32) {
    %c0_i32 = arith.constant 0 : i32
    %c0_i32_0 = arith.constant 0 : i32
    return %c0_i32, %arg1 : i32, i32
  }
  func.func @transform_2(%arg0: i32, %arg1: i32) -> (i32, i32) {
    %c0_i32 = arith.constant 0 : i32
    %c0_i32_0 = arith.constant 0 : i32
    return %c0_i32, %arg1 : i32, i32
  }
  func.func @transform_3(%arg0: i32, %arg1: i32) -> (i32, i32) {
    %c0_i32 = arith.constant 0 : i32
    return %arg0, %arg1 : i32, i32
  }
  func.func @transform_4(%arg0: i32, %arg1: i32) -> (i32, i32) {
    %c0_i32 = arith.constant 0 : i32
    return %arg0, %arg1 : i32, i32
  }
}

module attributes {stable_mosaic.version = 11 : i64} {
  func.func @_attn_kernel(%arg0: i32, %arg1: i32, %arg2: memref<1x8x32xf32, #tpu.memory_space<vmem>>, %arg3: memref<1x8x32xf32, #tpu.memory_space<vmem>>, %arg4: memref<1x8x32xf32, #tpu.memory_space<vmem>>, %arg5: memref<1x8x32xf32, #tpu.memory_space<vmem>>) attributes {dimension_semantics = [#tpu.dimension_semantics<parallel>, #tpu.dimension_semantics<parallel>], iteration_bounds = array<i64: 2, 1>, scalar_prefetch = 0 : i64, scratch_operands = 0 : i64, tpu.core_type = #tpu.core_type<tc>, window_params = [{transform_indices = @transform_0, window_bounds = array<i64: 1, 8, 32>}, {transform_indices = @transform_1, window_bounds = array<i64: 1, 8, 32>}, {transform_indices = @transform_2, window_bounds = array<i64: 1, 8, 32>}, {transform_indices = @transform_3, window_bounds = array<i64: 1, 8, 32>}]} {
    %c0 = arith.constant 0 : index
    %c0_0 = arith.constant 0 : index
    %c0_1 = arith.constant 0 : index
    %0 = vector.load %arg2[%c0, %c0_0, %c0_1] : memref<1x8x32xf32, #tpu.memory_space<vmem>>, vector<1x8x32xf32>
    %1 = vector.shape_cast %0 : vector<1x8x32xf32> to vector<8x32xf32>
    %c0_2 = arith.constant 0 : index
    %c0_3 = arith.constant 0 : index
    %c0_4 = arith.constant 0 : index
    %2 = vector.load %arg3[%c0_2, %c0_3, %c0_4] : memref<1x8x32xf32, #tpu.memory_space<vmem>>, vector<1x8x32xf32>
    %3 = vector.shape_cast %2 : vector<1x8x32xf32> to vector<8x32xf32>
    %c0_5 = arith.constant 0 : index
    %c0_6 = arith.constant 0 : index
    %c0_7 = arith.constant 0 : index
    %4 = vector.load %arg4[%c0_5, %c0_6, %c0_7] : memref<1x8x32xf32, #tpu.memory_space<vmem>>, vector<1x8x32xf32>
    %5 = vector.shape_cast %4 : vector<1x8x32xf32> to vector<8x32xf32>
    %c8_i32 = arith.constant 8 : i32
    %6 = arith.muli %arg1, %c8_i32 : i32
    %7 = tpu.iota {dimensions = array<i32: 0>} : vector<8x8xi32>
    %8 = vector.broadcast %6 : i32 to vector<8x8xi32>
    %9 = arith.addi %7, %8 : vector<8x8xi32>
    %10 = tpu.iota {dimensions = array<i32: 1>} : vector<8x8xi32>
    %11 = arith.cmpi sgt, %10, %9 : vector<8x8xi32>
    %12 = vector.extract_strided_slice %1 {offsets = [0, 0], sizes = [8, 8], strides = [1, 1]} : vector<8x32xf32> to vector<8x8xf32>
    %13 = arith.truncf %12 : vector<8x8xf32> to vector<8x8xbf16>
    %14 = vector.extract_strided_slice %3 {offsets = [0, 0], sizes = [8, 8], strides = [1, 1]} : vector<8x32xf32> to vector<8x8xf32>
    %15 = arith.truncf %14 : vector<8x8xf32> to vector<8x8xbf16>
    %16 = vector.extract_strided_slice %5 {offsets = [0, 0], sizes = [8, 8], strides = [1, 1]} : vector<8x32xf32> to vector<8x8xf32>
    %17 = arith.truncf %16 : vector<8x8xf32> to vector<8x8xbf16>
    %cst = arith.constant dense<0.000000e+00> : vector<8x8xf32>
    %18 = tpu.matmul %13, %15, %cst {dimension_numbers = #tpu.dot_dimension_numbers<[1], [1], [0], [0], [0, 0, 1, 0], [], []>} : vector<8x8xbf16>, vector<8x8xbf16>, vector<8x8xf32> -> vector<8x8xf32>
    %cst_8 = arith.constant 0.353553385 : f32
    %19 = vector.broadcast %cst_8 : f32 to vector<8x8xf32>
    %20 = arith.mulf %18, %19 : vector<8x8xf32>
    %cst_9 = arith.constant -1.000000e+30 : f32
    %21 = vector.broadcast %cst_9 : f32 to vector<8x8xf32>
    %22 = arith.select %11, %21, %20 : vector<8x8xi1>, vector<8x8xf32>
    %cst_10 = arith.constant dense<0xFF800000> : vector<8xf32>
    %23 = vector.multi_reduction <maximumf>, %22, %cst_10 [1] : vector<8x8xf32> to vector<8xf32>
    %24 = vector.shape_cast %23 : vector<8xf32> to vector<8x1xf32>
    %25 = vector.broadcast %24 : vector<8x1xf32> to vector<8x8xf32>
    %26 = arith.subf %22, %25 : vector<8x8xf32>
    %27 = math.exp %26 : vector<8x8xf32>
    %cst_11 = arith.constant dense<0.000000e+00> : vector<8xf32>
    %28 = vector.multi_reduction <add>, %27, %cst_11 [1] : vector<8x8xf32> to vector<8xf32>
    %29 = vector.shape_cast %28 : vector<8xf32> to vector<8x1xf32>
    %30 = arith.truncf %27 : vector<8x8xf32> to vector<8x8xbf16>
    %cst_12 = arith.constant dense<0.000000e+00> : vector<8x8xf32>
    %31 = tpu.matmul %30, %17, %cst_12 {dimension_numbers = #tpu.dot_dimension_numbers<[1], [0], [0], [1], [0, 0, 1, 1], [], []>} : vector<8x8xbf16>, vector<8x8xbf16>, vector<8x8xf32> -> vector<8x8xf32>
    %32 = tpu.reciprocal %29 : vector<8x1xf32> -> vector<8x1xf32>
    %33 = vector.broadcast %32 : vector<8x1xf32> to vector<8x8xf32>
    %34 = arith.mulf %31, %33 : vector<8x8xf32>
    %c0_13 = arith.constant 0 : index
    %c0_14 = arith.constant 0 : index
    %c0_15 = arith.constant 0 : index
    %35 = vector.load %arg5[%c0_13, %c0_14, %c0_15] : memref<1x8x32xf32, #tpu.memory_space<vmem>>, vector<1x8x8xf32>
    %36 = vector.shape_cast %35 : vector<1x8x8xf32> to vector<8x8xf32>
    %37 = vector.shape_cast %34 : vector<8x8xf32> to vector<1x8x8xf32>
    tpu.vector_store %arg5[%c0_13, %c0_14, %c0_15], %37 {strides = array<i32>} : memref<1x8x32xf32, #tpu.memory_space<vmem>>, vector<1x8x8xf32>,
    %38 = vector.extract_strided_slice %1 {offsets = [0, 8], sizes = [8, 8], strides = [1, 1]} : vector<8x32xf32> to vector<8x8xf32>
    %39 = arith.truncf %38 : vector<8x8xf32> to vector<8x8xbf16>
    %40 = vector.extract_strided_slice %3 {offsets = [0, 8], sizes = [8, 8], strides = [1, 1]} : vector<8x32xf32> to vector<8x8xf32>
    %41 = arith.truncf %40 : vector<8x8xf32> to vector<8x8xbf16>
    %42 = vector.extract_strided_slice %5 {offsets = [0, 8], sizes = [8, 8], strides = [1, 1]} : vector<8x32xf32> to vector<8x8xf32>
    %43 = arith.truncf %42 : vector<8x8xf32> to vector<8x8xbf16>
    %cst_16 = arith.constant dense<0.000000e+00> : vector<8x8xf32>
    %44 = tpu.matmul %39, %41, %cst_16 {dimension_numbers = #tpu.dot_dimension_numbers<[1], [1], [0], [0], [0, 0, 1, 0], [], []>} : vector<8x8xbf16>, vector<8x8xbf16>, vector<8x8xf32> -> vector<8x8xf32>
    %cst_17 = arith.constant 0.353553385 : f32
    %45 = vector.broadcast %cst_17 : f32 to vector<8x8xf32>
    %46 = arith.mulf %44, %45 : vector<8x8xf32>
    %cst_18 = arith.constant -1.000000e+30 : f32
    %47 = vector.broadcast %cst_18 : f32 to vector<8x8xf32>
    %48 = arith.select %11, %47, %46 : vector<8x8xi1>, vector<8x8xf32>
    %cst_19 = arith.constant dense<0xFF800000> : vector<8xf32>
    %49 = vector.multi_reduction <maximumf>, %48, %cst_19 [1] : vector<8x8xf32> to vector<8xf32>
    %50 = vector.shape_cast %49 : vector<8xf32> to vector<8x1xf32>
    %51 = vector.broadcast %50 : vector<8x1xf32> to vector<8x8xf32>
    %52 = arith.subf %48, %51 : vector<8x8xf32>
    %53 = math.exp %52 : vector<8x8xf32>
    %cst_20 = arith.constant dense<0.000000e+00> : vector<8xf32>
    %54 = vector.multi_reduction <add>, %53, %cst_20 [1] : vector<8x8xf32> to vector<8xf32>
    %55 = vector.shape_cast %54 : vector<8xf32> to vector<8x1xf32>
    %56 = arith.truncf %53 : vector<8x8xf32> to vector<8x8xbf16>
    %cst_21 = arith.constant dense<0.000000e+00> : vector<8x8xf32>
    %57 = tpu.matmul %56, %43, %cst_21 {dimension_numbers = #tpu.dot_dimension_numbers<[1], [0], [0], [1], [0, 0, 1, 1], [], []>} : vector<8x8xbf16>, vector<8x8xbf16>, vector<8x8xf32> -> vector<8x8xf32>
    %58 = tpu.reciprocal %55 : vector<8x1xf32> -> vector<8x1xf32>
    %59 = vector.broadcast %58 : vector<8x1xf32> to vector<8x8xf32>
    %60 = arith.mulf %57, %59 : vector<8x8xf32>
    %c0_22 = arith.constant 0 : index
    %c0_23 = arith.constant 0 : index
    %c8 = arith.constant 8 : index
    %61 = vector.load %arg5[%c0_22, %c0_23, %c8] : memref<1x8x32xf32, #tpu.memory_space<vmem>>, vector<1x8x8xf32>
    %62 = vector.shape_cast %61 : vector<1x8x8xf32> to vector<8x8xf32>
    %63 = vector.shape_cast %60 : vector<8x8xf32> to vector<1x8x8xf32>
    tpu.vector_store %arg5[%c0_22, %c0_23, %c8], %63 {strides = array<i32>} : memref<1x8x32xf32, #tpu.memory_space<vmem>>, vector<1x8x8xf32>,
    %64 = vector.extract_strided_slice %1 {offsets = [0, 16], sizes = [8, 8], strides = [1, 1]} : vector<8x32xf32> to vector<8x8xf32>
    %65 = arith.truncf %64 : vector<8x8xf32> to vector<8x8xbf16>
    %66 = vector.extract_strided_slice %3 {offsets = [0, 16], sizes = [8, 8], strides = [1, 1]} : vector<8x32xf32> to vector<8x8xf32>
    %67 = arith.truncf %66 : vector<8x8xf32> to vector<8x8xbf16>
    %68 = vector.extract_strided_slice %5 {offsets = [0, 16], sizes = [8, 8], strides = [1, 1]} : vector<8x32xf32> to vector<8x8xf32>
    %69 = arith.truncf %68 : vector<8x8xf32> to vector<8x8xbf16>
    %cst_24 = arith.constant dense<0.000000e+00> : vector<8x8xf32>
    %70 = tpu.matmul %65, %67, %cst_24 {dimension_numbers = #tpu.dot_dimension_numbers<[1], [1], [0], [0], [0, 0, 1, 0], [], []>} : vector<8x8xbf16>, vector<8x8xbf16>, vector<8x8xf32> -> vector<8x8xf32>
    %cst_25 = arith.constant 0.353553385 : f32
    %71 = vector.broadcast %cst_25 : f32 to vector<8x8xf32>
    %72 = arith.mulf %70, %71 : vector<8x8xf32>
    %cst_26 = arith.constant -1.000000e+30 : f32
    %73 = vector.broadcast %cst_26 : f32 to vector<8x8xf32>
    %74 = arith.select %11, %73, %72 : vector<8x8xi1>, vector<8x8xf32>
    %cst_27 = arith.constant dense<0xFF800000> : vector<8xf32>
    %75 = vector.multi_reduction <maximumf>, %74, %cst_27 [1] : vector<8x8xf32> to vector<8xf32>
    %76 = vector.shape_cast %75 : vector<8xf32> to vector<8x1xf32>
    %77 = vector.broadcast %76 : vector<8x1xf32> to vector<8x8xf32>
    %78 = arith.subf %74, %77 : vector<8x8xf32>
    %79 = math.exp %78 : vector<8x8xf32>
    %cst_28 = arith.constant dense<0.000000e+00> : vector<8xf32>
    %80 = vector.multi_reduction <add>, %79, %cst_28 [1] : vector<8x8xf32> to vector<8xf32>
    %81 = vector.shape_cast %80 : vector<8xf32> to vector<8x1xf32>
    %82 = arith.truncf %79 : vector<8x8xf32> to vector<8x8xbf16>
    %cst_29 = arith.constant dense<0.000000e+00> : vector<8x8xf32>
    %83 = tpu.matmul %82, %69, %cst_29 {dimension_numbers = #tpu.dot_dimension_numbers<[1], [0], [0], [1], [0, 0, 1, 1], [], []>} : vector<8x8xbf16>, vector<8x8xbf16>, vector<8x8xf32> -> vector<8x8xf32>
    %84 = tpu.reciprocal %81 : vector<8x1xf32> -> vector<8x1xf32>
    %85 = vector.broadcast %84 : vector<8x1xf32> to vector<8x8xf32>
    %86 = arith.mulf %83, %85 : vector<8x8xf32>
    %c0_30 = arith.constant 0 : index
    %c0_31 = arith.constant 0 : index
    %c16 = arith.constant 16 : index
    %87 = vector.load %arg5[%c0_30, %c0_31, %c16] : memref<1x8x32xf32, #tpu.memory_space<vmem>>, vector<1x8x8xf32>
    %88 = vector.shape_cast %87 : vector<1x8x8xf32> to vector<8x8xf32>
    %89 = vector.shape_cast %86 : vector<8x8xf32> to vector<1x8x8xf32>
    tpu.vector_store %arg5[%c0_30, %c0_31, %c16], %89 {strides = array<i32>} : memref<1x8x32xf32, #tpu.memory_space<vmem>>, vector<1x8x8xf32>,
    %90 = vector.extract_strided_slice %1 {offsets = [0, 24], sizes = [8, 8], strides = [1, 1]} : vector<8x32xf32> to vector<8x8xf32>
    %91 = arith.truncf %90 : vector<8x8xf32> to vector<8x8xbf16>
    %92 = vector.extract_strided_slice %3 {offsets = [0, 24], sizes = [8, 8], strides = [1, 1]} : vector<8x32xf32> to vector<8x8xf32>
    %93 = arith.truncf %92 : vector<8x8xf32> to vector<8x8xbf16>
    %94 = vector.extract_strided_slice %5 {offsets = [0, 24], sizes = [8, 8], strides = [1, 1]} : vector<8x32xf32> to vector<8x8xf32>
    %95 = arith.truncf %94 : vector<8x8xf32> to vector<8x8xbf16>
    %cst_32 = arith.constant dense<0.000000e+00> : vector<8x8xf32>
    %96 = tpu.matmul %91, %93, %cst_32 {dimension_numbers = #tpu.dot_dimension_numbers<[1], [1], [0], [0], [0, 0, 1, 0], [], []>} : vector<8x8xbf16>, vector<8x8xbf16>, vector<8x8xf32> -> vector<8x8xf32>
    %cst_33 = arith.constant 0.353553385 : f32
    %97 = vector.broadcast %cst_33 : f32 to vector<8x8xf32>
    %98 = arith.mulf %96, %97 : vector<8x8xf32>
    %cst_34 = arith.constant -1.000000e+30 : f32
    %99 = vector.broadcast %cst_34 : f32 to vector<8x8xf32>
    %100 = arith.select %11, %99, %98 : vector<8x8xi1>, vector<8x8xf32>
    %cst_35 = arith.constant dense<0xFF800000> : vector<8xf32>
    %101 = vector.multi_reduction <maximumf>, %100, %cst_35 [1] : vector<8x8xf32> to vector<8xf32>
    %102 = vector.shape_cast %101 : vector<8xf32> to vector<8x1xf32>
    %103 = vector.broadcast %102 : vector<8x1xf32> to vector<8x8xf32>
    %104 = arith.subf %100, %103 : vector<8x8xf32>
    %105 = math.exp %104 : vector<8x8xf32>
    %cst_36 = arith.constant dense<0.000000e+00> : vector<8xf32>
    %106 = vector.multi_reduction <add>, %105, %cst_36 [1] : vector<8x8xf32> to vector<8xf32>
    %107 = vector.shape_cast %106 : vector<8xf32> to vector<8x1xf32>
    %108 = arith.truncf %105 : vector<8x8xf32> to vector<8x8xbf16>
    %cst_37 = arith.constant dense<0.000000e+00> : vector<8x8xf32>
    %109 = tpu.matmul %108, %95, %cst_37 {dimension_numbers = #tpu.dot_dimension_numbers<[1], [0], [0], [1], [0, 0, 1, 1], [], []>} : vector<8x8xbf16>, vector<8x8xbf16>, vector<8x8xf32> -> vector<8x8xf32>
    %110 = tpu.reciprocal %107 : vector<8x1xf32> -> vector<8x1xf32>
    %111 = vector.broadcast %110 : vector<8x1xf32> to vector<8x8xf32>
    %112 = arith.mulf %109, %111 : vector<8x8xf32>
    %c0_38 = arith.constant 0 : index
    %c0_39 = arith.constant 0 : index
    %c24 = arith.constant 24 : index
    %113 = vector.load %arg5[%c0_38, %c0_39, %c24] : memref<1x8x32xf32, #tpu.memory_space<vmem>>, vector<1x8x8xf32>
    %114 = vector.shape_cast %113 : vector<1x8x8xf32> to vector<8x8xf32>
    %115 = vector.shape_cast %112 : vector<8x8xf32> to vector<1x8x8xf32>
    tpu.vector_store %arg5[%c0_38, %c0_39, %c24], %115 {strides = array<i32>} : memref<1x8x32xf32, #tpu.memory_space<vmem>>, vector<1x8x8xf32>,
    return
  }
  func.func @transform_0(%arg0: i32, %arg1: i32) -> (i32, i32, i32) {
    %c0_i32 = arith.constant 0 : i32
    %c0_i32_0 = arith.constant 0 : i32
    return %arg0, %arg1, %c0_i32 : i32, i32, i32
  }
  func.func @transform_1(%arg0: i32, %arg1: i32) -> (i32, i32, i32) {
    %c0_i32 = arith.constant 0 : i32
    %c0_i32_0 = arith.constant 0 : i32
    %c0_i32_1 = arith.constant 0 : i32
    return %arg0, %c0_i32, %c0_i32_0 : i32, i32, i32
  }
  func.func @transform_2(%arg0: i32, %arg1: i32) -> (i32, i32, i32) {
    %c0_i32 = arith.constant 0 : i32
    %c0_i32_0 = arith.constant 0 : i32
    %c0_i32_1 = arith.constant 0 : i32
    return %arg0, %c0_i32, %c0_i32_0 : i32, i32, i32
  }
  func.func @transform_3(%arg0: i32, %arg1: i32) -> (i32, i32, i32) {
    %c0_i32 = arith.constant 0 : i32
    %c0_i32_0 = arith.constant 0 : i32
    return %arg0, %arg1, %c0_i32 : i32, i32, i32
  }
}

module attributes {stable_mosaic.version = 11 : i64} {
  func.func @kernel(%arg0: i32, %arg1: i32, %arg2: memref<16x32xf32, #tpu.memory_space<vmem>>, %arg3: memref<1x32xf32, #tpu.memory_space<vmem>>, %arg4: memref<1x32xf32, #tpu.memory_space<vmem>>, %arg5: memref<32x32xbf16, #tpu.memory_space<vmem>>, %arg6: memref<16x32xf32, #tpu.memory_space<vmem>>) attributes {dimension_semantics = [#tpu.dimension_semantics<parallel>, #tpu.dimension_semantics<parallel>], iteration_bounds = array<i64: 1, 1>, scalar_prefetch = 0 : i64, scratch_operands = 0 : i64, tpu.core_type = #tpu.core_type<tc>, window_params = [{transform_indices = @transform_0, window_bounds = array<i64: 16, 32>}, {pipeline_mode = #tpu.pipeline_mode<synchronous>, transform_indices = @transform_1, window_bounds = array<i64: 1, 32>}, {pipeline_mode = #tpu.pipeline_mode<synchronous>, transform_indices = @transform_2, window_bounds = array<i64: 1, 32>}, {transform_indices = @transform_3, window_bounds = array<i64: 32, 32>}, {transform_indices = @transform_4, window_bounds = array<i64: 16, 32>}]} {
    %c0 = arith.constant 0 : index
    %c0_0 = arith.constant 0 : index
    %0 = vector.load %arg2[%c0, %c0_0] : memref<16x32xf32, #tpu.memory_space<vmem>>, vector<16x32xf32>
    %cst = arith.constant dense<0.000000e+00> : vector<16xf32>
    %1 = vector.multi_reduction <add>, %0, %cst [1] : vector<16x32xf32> to vector<16xf32>
    %2 = vector.shape_cast %1 : vector<16xf32> to vector<16x1xf32>
    %cst_1 = arith.constant 3.200000e+01 : f32
    %3 = vector.broadcast %cst_1 : f32 to vector<16x1xf32>
    %4 = arith.divf %2, %3 : vector<16x1xf32>
    %5 = vector.broadcast %4 : vector<16x1xf32> to vector<16x32xf32>
    %6 = arith.subf %0, %5 : vector<16x32xf32>
    %7 = arith.mulf %6, %6 : vector<16x32xf32>
    %cst_2 = arith.constant dense<0.000000e+00> : vector<16xf32>
    %8 = vector.multi_reduction <add>, %7, %cst_2 [1] : vector<16x32xf32> to vector<16xf32>
    %9 = vector.shape_cast %8 : vector<16xf32> to vector<16x1xf32>
    %cst_3 = arith.constant 3.200000e+01 : f32
    %10 = vector.broadcast %cst_3 : f32 to vector<16x1xf32>
    %11 = arith.divf %9, %10 : vector<16x1xf32>
    %12 = vector.broadcast %4 : vector<16x1xf32> to vector<16x32xf32>
    %13 = arith.subf %0, %12 : vector<16x32xf32>
    %cst_4 = arith.constant 9.99999974E-6 : f32
    %14 = vector.broadcast %cst_4 : f32 to vector<16x1xf32>
    %15 = arith.addf %11, %14 : vector<16x1xf32>
    %16 = math.rsqrt %15 : vector<16x1xf32>
    %17 = vector.broadcast %16 : vector<16x1xf32> to vector<16x32xf32>
    %18 = arith.mulf %13, %17 : vector<16x32xf32>
    %c0_5 = arith.constant 0 : index
    %c0_6 = arith.constant 0 : index
    %19 = vector.load %arg3[%c0_5, %c0_6] : memref<1x32xf32, #tpu.memory_space<vmem>>, vector<1x32xf32>
    %20 = vector.broadcast %19 : vector<1x32xf32> to vector<16x32xf32>
    %21 = arith.mulf %18, %20 : vector<16x32xf32>
    %c0_7 = arith.constant 0 : index
    %c0_8 = arith.constant 0 : index
    %22 = vector.load %arg4[%c0_7, %c0_8] : memref<1x32xf32, #tpu.memory_space<vmem>>, vector<1x32xf32>
    %23 = vector.broadcast %22 : vector<1x32xf32> to vector<16x32xf32>
    %24 = arith.addf %21, %23 : vector<16x32xf32>
    %25 = arith.truncf %24 : vector<16x32xf32> to vector<16x32xbf16>
    %c0_9 = arith.constant 0 : index
    %c0_10 = arith.constant 0 : index
    %26 = vector.load %arg5[%c0_9, %c0_10] : memref<32x32xbf16, #tpu.memory_space<vmem>>, vector<32x32xbf16>
    %cst_11 = arith.constant dense<0.000000e+00> : vector<16x32xf32>
    %27 = tpu.matmul %25, %26, %cst_11 {dimension_numbers = #tpu.dot_dimension_numbers<[1], [0], [0], [1], [0, 0, 1, 1], [], []>} : vector<16x32xbf16>, vector<32x32xbf16>, vector<16x32xf32> -> vector<16x32xf32>
    %c0_12 = arith.constant 0 : index
    %c0_13 = arith.constant 0 : index
    %28 = vector.load %arg6[%c0_12, %c0_13] : memref<16x32xf32, #tpu.memory_space<vmem>>, vector<16x32xf32>
    tpu.vector_store %arg6[%c0_12, %c0_13], %27 {strides = array<i32>} : memref<16x32xf32, #tpu.memory_space<vmem>>, vector<16x32xf32>,
    return
  }
  func.func @transform_0(%arg0: i32, %arg1: i32) -> (i32, i32) {
    %c0_i32 = arith.constant 0 : i32
    %c0_i32_0 = arith.constant 0 : i32
    return %arg0, %c0_i32 : i32, i32
  }
  func.func @transform_1(%arg0: i32, %arg1: i32) -> (i32, i32) {
    %c0_i32 = arith.constant 0 : i32
    %c0_i32_0 = arith.constant 0 : i32
    %c0_i32_1 = arith.constant 0 : i32
    return %c0_i32, %c0_i32_0 : i32, i32
  }
  func.func @transform_2(%arg0: i32, %arg1: i32) -> (i32, i32) {
    %c0_i32 = arith.constant 0 : i32
    %c0_i32_0 = arith.constant 0 : i32
    %c0_i32_1 = arith.constant 0 : i32
    return %c0_i32, %c0_i32_0 : i32, i32
  }
  func.func @transform_3(%arg0: i32, %arg1: i32) -> (i32, i32) {
    %c0_i32 = arith.constant 0 : i32
    %c0_i32_0 = arith.constant 0 : i32
    return %c0_i32, %arg1 : i32, i32
  }
  func.func @transform_4(%arg0: i32, %arg1: i32) -> (i32, i32) {
    %c0_i32 = arith.constant 0 : i32
    return %arg0, %arg1 : i32, i32
  }
}

module attributes {stable_mosaic.version = 11 : i64} {
  func.func @_matmul_bias_kernel(%arg0: i32, %arg1: i32, %arg2: i32, %arg3: memref<16x32xf32, #tpu.memory_space<vmem>>, %arg4: memref<32x64xbf16, #tpu.memory_space<vmem>>, %arg5: memref<1x64xf32, #tpu.memory_space<vmem>>, %arg6: memref<16x64xf32, #tpu.memory_space<vmem>>, %arg7: memref<16x64xf32, #tpu.memory_space<vmem>>) attributes {dimension_semantics = [#tpu.dimension_semantics<parallel>, #tpu.dimension_semantics<parallel>, #tpu.dimension_semantics<arbitrary>], iteration_bounds = array<i64: 1, 1, 1>, scalar_prefetch = 0 : i64, scratch_operands = 1 : i64, tpu.core_type = #tpu.core_type<tc>, window_params = [{transform_indices = @transform_0, window_bounds = array<i64: 16, 32>}, {transform_indices = @transform_1, window_bounds = array<i64: 32, 64>}, {transform_indices = @transform_2, window_bounds = array<i64: 1, 64>}, {transform_indices = @transform_3, window_bounds = array<i64: 16, 64>}]} {
    %c0_i32 = arith.constant 0 : i32
    %0 = arith.cmpi eq, %arg2, %c0_i32 : i32
    %1 = arith.extui %0 : i1 to i32
    %c0_i32_0 = arith.constant 0 : i32
    %2 = arith.cmpi ne, %1, %c0_i32_0 : i32
    scf.if %2 {
      %cst_10 = arith.constant 0.000000e+00 : f32
      %13 = vector.broadcast %cst_10 : f32 to vector<16x64xf32>
      %c0_11 = arith.constant 0 : index
      %c0_12 = arith.constant 0 : index
      %14 = vector.load %arg7[%c0_11, %c0_12] : memref<16x64xf32, #tpu.memory_space<vmem>>, vector<16x64xf32>
      tpu.vector_store %arg7[%c0_11, %c0_12], %13 {strides = array<i32>} : memref<16x64xf32, #tpu.memory_space<vmem>>, vector<16x64xf32>,
    } else {
    }
    %c0 = arith.constant 0 : index
    %c0_1 = arith.constant 0 : index
    %3 = vector.load %arg7[%c0, %c0_1] : memref<16x64xf32, #tpu.memory_space<vmem>>, vector<16x64xf32>
    %c0_2 = arith.constant 0 : index
    %c0_3 = arith.constant 0 : index
    %4 = vector.load %arg3[%c0_2, %c0_3] : memref<16x32xf32, #tpu.memory_space<vmem>>, vector<16x32xf32>
    %5 = arith.truncf %4 : vector<16x32xf32> to vector<16x32xbf16>
    %c0_4 = arith.constant 0 : index
    %c0_5 = arith.constant 0 : index
    %6 = vector.load %arg4[%c0_4, %c0_5] : memref<32x64xbf16, #tpu.memory_space<vmem>>, vector<32x64xbf16>
    %cst = arith.constant dense<0.000000e+00> : vector<16x64xf32>
    %7 = tpu.matmul %5, %6, %cst {dimension_numbers = #tpu.dot_dimension_numbers<[1], [0], [0], [1], [0, 0, 1, 1], [], []>} : vector<16x32xbf16>, vector<32x64xbf16>, vector<16x64xf32> -> vector<16x64xf32>
    %8 = arith.addf %3, %7 : vector<16x64xf32>
    %c0_6 = arith.constant 0 : index
    %c0_7 = arith.constant 0 : index
    %9 = vector.load %arg7[%c0_6, %c0_7] : memref<16x64xf32, #tpu.memory_space<vmem>>, vector<16x64xf32>
    tpu.vector_store %arg7[%c0_6, %c0_7], %8 {strides = array<i32>} : memref<16x64xf32, #tpu.memory_space<vmem>>, vector<16x64xf32>,
    %c0_i32_8 = arith.constant 0 : i32
    %10 = arith.cmpi eq, %arg2, %c0_i32_8 : i32
    %11 = arith.extui %10 : i1 to i32
    %c0_i32_9 = arith.constant 0 : i32
    %12 = arith.cmpi ne, %11, %c0_i32_9 : i32
    scf.if %12 {
      %c0_10 = arith.constant 0 : index
      %c0_11 = arith.constant 0 : index
      %13 = vector.load %arg7[%c0_10, %c0_11] : memref<16x64xf32, #tpu.memory_space<vmem>>, vector<16x64xf32>
      %c0_12 = arith.constant 0 : index
      %c0_13 = arith.constant 0 : index
      %14 = vector.load %arg5[%c0_12, %c0_13] : memref<1x64xf32, #tpu.memory_space<vmem>>, vector<1x64xf32>
      %15 = vector.broadcast %14 : vector<1x64xf32> to vector<16x64xf32>
      %16 = arith.addf %13, %15 : vector<16x64xf32>
      %c0_14 = arith.constant 0 : index
      %c0_15 = arith.constant 0 : index
      %17 = vector.load %arg6[%c0_14, %c0_15] : memref<16x64xf32, #tpu.memory_space<vmem>>, vector<16x64xf32>
      tpu.vector_store %arg6[%c0_14, %c0_15], %16 {strides = array<i32>} : memref<16x64xf32, #tpu.memory_space<vmem>>, vector<16x64xf32>,
    } else {
    }
    return
  }
  func.func @transform_0(%arg0: i32, %arg1: i32, %arg2: i32) -> (i32, i32) {
    %c0_i32 = arith.constant 0 : i32
    return %arg0, %arg2 : i32, i32
  }
  func.func @transform_1(%arg0: i32, %arg1: i32, %arg2: i32) -> (i32, i32) {
    %c0_i32 = arith.constant 0 : i32
    return %arg2, %arg1 : i32, i32
  }
  func.func @transform_2(%arg0: i32, %arg1: i32, %arg2: i32) -> (i32, i32) {
    %c0_i32 = arith.constant 0 : i32
    %c0_i32_0 = arith.constant 0 : i32
    return %c0_i32, %arg1 : i32, i32
  }
  func.func @transform_3(%arg0: i32, %arg1: i32, %arg2: i32) -> (i32, i32) {
    %c0_i32 = arith.constant 0 : i32
    return %arg0, %arg1 : i32, i32
  }
}

</mosaic_0001>

<bundles_post_ra>
// kernel: transformer_forward.29
= control target key start
LH: loop header
LB: loop body
LE: loop exit
PB: predicated region body
PF: predicated region fallthrough
CT: control target
= control target key end

     0   :  { %vm22_vm0 = vcmask 261120   ;;  %v138_v0 = vmov 0.0   ;;  %vm139_vm1 = vmmov 0   ;;  %s199_s1 = inlined_call_operand.vmem [shape: bf16[32,32], index: 1, kind: input, shape index: {}]   ;;  %s200_s0 = inlined_call_operand.vmem [shape: f32[16,32], index: 0, kind: input, shape index: {}]   ;;  %s201_s2 = inlined_call_operand.vmem [shape: f32[1,32], index: 2, kind: input, shape index: {}]   ;;  %s202_s3 = inlined_call_operand.vmem [shape: f32[16,32], index: 3, kind: input, shape index: {}, may-alias: {3,4}]   ;;  %s203_s4 = inlined_call_operand.vmem [shape: f32[16,32], index: 4, kind: output, shape index: {}, may-alias: {3,4}]  }
   0x1   :  { %126 = vmatprep.subr.bf16.mxu0 %v138_v0  ;;  %v136_v1 = vld [vmem:[%s199_s1] sm:$0xff]   ;;  %130 = vmatprep.mubr.msk.bf16.mxu0 %vm139_vm1, %v138_v0  ;;  %23 = vst.msk [vmem:[#allocation2] sm:$0xff] %vm22_vm0, %v138_v0  ;;  %24 = vst.msk [vmem:[#allocation2 + $0x8] sm:$0xff] %vm22_vm0, %v138_v0  ;;  %v137_v2 = vld [vmem:[%s199_s1 + $0x8] sm:$0xff]  }
   0x2   :  { %127 = vmatpush3.bf16.msra.mxu0 %v136_v1  ;;  %v27_v3 = vld [vmem:[%s200_s0] sm:$0xff]  ;;  %v28_v4 = vld [vmem:[%s200_s0 + $0x8] sm:$0xff] }
   0x3   :  { %128 = vmatprep.subr.bf16.mxu0 %v138_v0  ;;  %v29_v5 = vpack.c.bf16 %v28_v4, %v27_v3  ;;  %v122_v14 = vld [vmem:[%s201_s2] ss:$0 sm:$0xff]  ;;  %v110_v19 = vld [vmem:[%s202_s3 + $0x8] sm:$0xff] }
   0x4   :  { %v109_v16 = vld [vmem:[%s202_s3] sm:$0xff] }
   0x6   :  { %129 = vmatpush3.bf16.msra.mxu0 %v137_v2 }
   0x8   :  { %v25_v6 = vld [vmem:[#allocation2] sm:$0xff]  ;;  %v26_v8 = vld [vmem:[#allocation2 + $0x8] sm:$0xff] }
   0x9   :  { %131 = vmatmul.mubr.msk.bf16.vlgmr.msra.gmra.mrb[0].mxu0 %vm22_vm0, %v29_v5 }
  0xdc   :  { %v84_v7 = vpop.f32.mrb[0].mxu0 }
  0xdd   :  { %v91_v9 = vadd.f32 %v84_v7, %v25_v6  ;;  %v132_v10 = vpop.f32.mrb[1].mxu0 }
  0xde   :  { %v87_v11 = vpop.f32.mrb[2].mxu0 }
  0xdf   :  { %93 = vst.msk [vmem:[#allocation2] sm:$0xff] %vm22_vm0, %v91_v9  ;;  %v92_v12 = vadd.f32 %v87_v11, %v26_v8  ;;  %v133_v13 = vpop.f32.mrb[3].mxu0 }
  0xe1   :  { %94 = vst.msk [vmem:[#allocation2 + $0x8] sm:$0xff] %vm22_vm0, %v92_v12 }
  0xe6   :  { %v98_v15 = vld [vmem:[#allocation2] sm:$0xff] }
  0xe7   :  { %v107_v17 = vadd.f32 %v122_v14, %v98_v15 }
  0xe8   :  { %v99_v18 = vld [vmem:[#allocation2 + $0x8] sm:$0xff] }
  0xe9   :  { %v111_v20 = vadd.f32 %v109_v16, %v107_v17  ;;  %v108_v21 = vadd.f32 %v122_v14, %v99_v18 }
  0xeb   :  { %113 = vst.msk [vmem:[%s203_s4] sm:$0xff] %vm22_vm0, %v111_v20  ;;  %v112_v22 = vadd.f32 %v110_v19, %v108_v21 }
  0xed   :  { %114 = vst.msk [vmem:[%s203_s4 + $0x8] sm:$0xff] %vm22_vm0, %v112_v22 }

// kernel: transformer_forward.27
= control target key start
LH: loop header
LB: loop body
LE: loop exit
PB: predicated region body
PF: predicated region fallthrough
CT: control target
= control target key end

     0   :  { %vm29_vm0 = vcmask 261120   ;;  %v324_v15 = vmov 0.0   ;;  %vm325_vm1 = vmmov 0   ;;  %s435_s0 = inlined_call_operand.vmem [shape: f32[16,32], index: 0, kind: input, shape index: {}]   ;;  %s436_s3 = inlined_call_operand.vmem [shape: bf16[32,32], index: 3, kind: input, shape index: {}]   ;;  %s437_s4 = inlined_call_operand.vmem [shape: bf16[32,32], index: 4, kind: input, shape index: {}]   ;;  %s438_s5 = inlined_call_operand.vmem [shape: bf16[32,32], index: 5, kind: input, shape index: {}]   ;;  %s439_s1 = inlined_call_operand.vmem [shape: f32[1,32], index: 1, kind: input, shape index: {}]   ;;  %s440_s2 = inlined_call_operand.vmem [shape: f32[1,32], index: 2, kind: input, shape index: {}]   ;;  %s441_s6 = inlined_call_operand.vmem [shape: f32[16,32], index: 6, kind: output, shape index: {0}]   ;;  %s442_s7 = inlined_call_operand.vmem [shape: f32[16,32], index: 7, kind: output, shape index: {1}]   ;;  %s443_s8 = inlined_call_operand.vmem [shape: f32[16,32], index: 8, kind: output, shape index: {2}]  }
   0x1   :  { %v27_v0 = vld [vmem:[%s435_s0] sm:$0xff]  ;;  %v28_v1 = vld [vmem:[%s435_s0 + $0x8] sm:$0xff]  ;;  %288 = vmatprep.subr.bf16.mxu0 %v324_v15  ;;  %296 = vmatprep.subr.bf16.mxu1 %v324_v15 }
   0x2   :  { %v30_v2 = vsel %vm29_vm0, %v27_v0, 0.0  ;;  %v33_v3 = vsel %vm29_vm0, %v28_v1, 0.0  ;;  %v314_v14 = vld [vmem:[%s436_s3] sm:$0xff]   ;;  %v316_v17 = vld [vmem:[%s436_s3 + $0x8] sm:$0xff]   ;;  %292 = vmatprep.mubr.msk.bf16.mxu0 %vm325_vm1, %v324_v15  ;;  %300 = vmatprep.mubr.msk.bf16.mxu1 %vm325_vm1, %v324_v15 }
   0x3   :  { %31 = vadd.xlane.f32.xlu0 %v30_v2  ;;  %v315_v16 = vld [vmem:[%s437_s4] sm:$0xff]   ;;  %289 = vmatpush3.bf16.msra.mxu0 %v314_v14  ;;  %v317_v18 = vld [vmem:[%s437_s4 + $0x8] sm:$0xff]  }
   0x4   :  { %297 = vmatpush3.bf16.msra.mxu1 %v315_v16  ;;  %290 = vmatprep.subr.bf16.mxu0 %v324_v15  ;;  %v268_v27 = vld [vmem:[%s439_s1] ss:$0 sm:$0xff]  ;;  %v319_v37 = vld [vmem:[%s438_s5 + $0x8] sm:$0xff]  }
   0x5   :  { %298 = vmatprep.subr.bf16.mxu1 %v324_v15  ;;  %v269_v31 = vld [vmem:[%s440_s2] ss:$0 sm:$0xff] }
   0x6   :  { %v318_v35 = vld [vmem:[%s438_s5] sm:$0xff]  }
   0x7   :  { %34 = vadd.xlane.f32.xlu0 %v33_v3  ;;  %291 = vmatpush3.bf16.msra.mxu0 %v316_v17 }
   0x8   :  { %299 = vmatpush3.bf16.msra.mxu1 %v317_v18  ;;  %304 = vmatprep.subr.bf16.mxu0 %v324_v15 }
  0x90   :  { %v32_v4 = vpop.xlane.xlu0 %31 }
  0x91   :  { %v37_v5 = vmul.f32 0.03125, %v32_v4 }
  0x93   :  { %v39_v6 = vsub.f32 %v27_v0, %v37_v5 }
  0x94   :  { %v35_v7 = vpop.xlane.xlu0 %34 }
  0x95   :  { %v38_v8 = vmul.f32 0.03125, %v35_v7  ;;  %v41_v9 = vmul.f32 %v39_v6, %v39_v6 }
  0x97   :  { %v40_v10 = vsub.f32 %v28_v1, %v38_v8  ;;  %v43_v11 = vsel %vm29_vm0, %v41_v9, 0.0 }
  0x98   :  { %44 = vadd.xlane.f32.xlu1 %v43_v11 }
  0x99   :  { %v42_v12 = vmul.f32 %v40_v10, %v40_v10 }
  0x9b   :  { %v46_v13 = vsel %vm29_vm0, %v42_v12, 0.0 }
  0x9c   :  { %47 = vadd.xlane.f32.xlu1 %v46_v13 }
 0x125   :  { %v45_v19 = vpop.xlane.xlu1 %44 }
 0x126   :  { %v49_v20 = vmul.f32 0.03125, %v45_v19 }
 0x128   :  { %v51_v21 = vadd.f32 1e-05, %v49_v20 }
 0x129   :  { %v48_v22 = vpop.xlane.xlu1 %47 }
 0x12a   :  { %320 = vrsqrt.f32 %v51_v21  ;;  %v50_v23 = vmul.f32 0.03125, %v48_v22 }
 0x12c   :  { %v52_v24 = vadd.f32 1e-05, %v50_v23 }
 0x12e   :  { %322 = vrsqrt.f32 %v52_v24 }
 0x134   :  { %v321_v25 = vpop.eup %320 }
 0x135   :  { %v55_v26 = vmul.f32 %v321_v25, %v39_v6 }
 0x137   :  { %v64_v30 = vmul.f32 %v268_v27, %v55_v26 }
 0x138   :  { %v323_v28 = vpop.eup %322 }
 0x139   :  { %v56_v29 = vmul.f32 %v323_v28, %v40_v10  ;;  %v73_v33 = vadd.f32 %v269_v31, %v64_v30 }
 0x13b   :  { %v65_v32 = vmul.f32 %v268_v27, %v56_v29 }
 0x13d   :  { %v74_v34 = vadd.f32 %v269_v31, %v65_v32 }
 0x13f   :  { %v75_v36 = vpack.c.bf16 %v74_v34, %v73_v33 }
 0x141   :  { %293 = vmatmul.mubr.msk.bf16.vlgmr.msra.gmra.mrb[0].mxu0 %vm29_vm0, %v75_v36  ;;  %301 = vmatmul.mubr.msk.bf16.vlgmr.msra.gmra.mrb[0].mxu1 %vm29_vm0, %v75_v36 }
 0x142   :  { %305 = vmatpush3.bf16.msra.mxu0 %v318_v35  ;;  %308 = vmatprep.mubr.msk.bf16.mxu0 %vm325_vm1, %v324_v15 }
 0x143   :  { %306 = vmatprep.subr.bf16.mxu0 %v324_v15 }
 0x146   :  { %307 = vmatpush3.bf16.msra.mxu0 %v319_v37 }
 0x149   :  { %309 = vmatmul.mubr.msk.bf16.vlgmr.msra.gmra.mrb[4].mxu0 %vm29_vm0, %v75_v36 }
 0x214   :  { %v129_v38 = vpop.f32.mrb[0].mxu0  ;;  %v188_v39 = vpop.f32.mrb[0].mxu1 }
 0x215   :  { %136 = vst.msk [vmem:[%s441_s6] sm:$0xff] %vm29_vm0, %v129_v38  ;;  %195 = vst.msk [vmem:[%s442_s7] sm:$0xff] %vm29_vm0, %v188_v39  ;;  %v294_v40 = vpop.f32.mrb[1].mxu0  ;;  %v302_v41 = vpop.f32.mrb[1].mxu1 }
 0x216   :  { %v132_v42 = vpop.f32.mrb[2].mxu0  ;;  %v191_v43 = vpop.f32.mrb[2].mxu1 }
 0x217   :  { %137 = vst.msk [vmem:[%s441_s6 + $0x8] sm:$0xff] %vm29_vm0, %v132_v42  ;;  %196 = vst.msk [vmem:[%s442_s7 + $0x8] sm:$0xff] %vm29_vm0, %v191_v43  ;;  %v295_v44 = vpop.f32.mrb[3].mxu0  ;;  %v303_v45 = vpop.f32.mrb[3].mxu1 }
 0x21c   :  { %v247_v46 = vpop.f32.mrb[4].mxu0 }
 0x21d   :  { %254 = vst.msk [vmem:[%s443_s8] sm:$0xff] %vm29_vm0, %v247_v46  ;;  %v310_v47 = vpop.f32.mrb[5].mxu0 }
 0x21e   :  { %v250_v48 = vpop.f32.mrb[6].mxu0 }
 0x21f   :  { %255 = vst.msk [vmem:[%s443_s8 + $0x8] sm:$0xff] %vm29_vm0, %v250_v48  ;;  %v311_v49 = vpop.f32.mrb[7].mxu0 }

// kernel: transformer_forward.30
= control target key start
LH: loop header
LB: loop body
LE: loop exit
PB: predicated region body
PF: predicated region fallthrough
CT: control target
= control target key end

     0   :  { %vm33_vm0 = vcmask 261120   ;;  %v377_v15 = vmov 0.0   ;;  %vm378_vm1 = vmmov 0   ;;  %s485_s0 = inlined_call_operand.vmem [shape: f32[16,32], index: 0, kind: input, shape index: {}]   ;;  %s486_s3 = inlined_call_operand.vmem [shape: bf16[32,128], index: 3, kind: input, shape index: {}]   ;;  %s487_s1 = inlined_call_operand.vmem [shape: f32[1,32], index: 1, kind: input, shape index: {}]   ;;  %s488_s2 = inlined_call_operand.vmem [shape: f32[1,32], index: 2, kind: input, shape index: {}]   ;;  %s489_s5 = inlined_call_operand.vmem [shape: bf16[128,32], index: 5, kind: input, shape index: {}]   ;;  %s490_s4 = inlined_call_operand.vmem [shape: f32[1,128], index: 4, kind: input, shape index: {}]   ;;  %s491_s6 = inlined_call_operand.vmem [shape: f32[1,32], index: 6, kind: input, shape index: {}]   ;;  %s492_s7 = inlined_call_operand.vmem [shape: f32[16,32], index: 7, kind: output, shape index: {}]  }
   0x1   :  { %v31_v0 = vld [vmem:[%s485_s0] sm:$0xff]  ;;  %v32_v1 = vld [vmem:[%s485_s0 + $0x8] sm:$0xff]  ;;  %329 = vmatprep.subr.bf16.mxu0 %v377_v15  ;;  %337 = vmatprep.subr.bf16.mxu1 %v377_v15  ;;  %v363_v37 = vld [vmem:[%s489_s5 + $0x10] sm:$0xff]  }
   0x2   :  { %v34_v2 = vsel %vm33_vm0, %v31_v0, 0.0  ;;  %81 = vst.msk [vmem:[#allocation3] sm:$0xff] %vm33_vm0, %v31_v0  ;;  %82 = vst.msk [vmem:[#allocation3 + $0x8] sm:$0xff] %vm33_vm0, %v32_v1  ;;  %v37_v3 = vsel %vm33_vm0, %v32_v1, 0.0  ;;  %v359_v14 = vld [vmem:[%s486_s3] sm:$0xff]   ;;  %v360_v16 = vld [vmem:[%s486_s3 + $0x8] sm:$0xff]   ;;  %333 = vmatprep.mubr.msk.bf16.mxu0 %vm378_vm1, %v377_v15  ;;  %353 = vmatprep.mubr.msk.bf16.mxu1 %vm378_vm1, %v377_v15 }
   0x3   :  { %35 = vadd.xlane.f32.xlu0 %v34_v2  ;;  %330 = vmatpush3.bf16.msra.mxu0 %v359_v14  ;;  %v302_v25 = vld [vmem:[%s487_s1] ss:$0 sm:$0xff]  ;;  %v362_v36 = vld [vmem:[%s489_s5 + $0x8] sm:$0xff]   ;;  %v364_v38 = vld [vmem:[%s489_s5 + $0x18] sm:$0xff]  }
   0x4   :  { %331 = vmatprep.subr.bf16.mxu0 %v377_v15  ;;  %v303_v29 = vld [vmem:[%s488_s2] ss:$0 sm:$0xff]  ;;  %v366_v40 = vld [vmem:[%s489_s5 + $0x28] sm:$0xff]   ;;  %v367_v41 = vld [vmem:[%s489_s5 + $0x30] sm:$0xff]  }
   0x5   :  { %v361_v35 = vld [vmem:[%s489_s5] sm:$0xff]   ;;  %v368_v42 = vld [vmem:[%s489_s5 + $0x38] sm:$0xff]  }
   0x6   :  { %338 = vmatpush3.bf16.msra.mxu1 %v361_v35  ;;  %v365_v39 = vld [vmem:[%s489_s5 + $0x20] sm:$0xff]  }
   0x7   :  { %38 = vadd.xlane.f32.xlu0 %v37_v3  ;;  %332 = vmatpush3.bf16.msra.mxu0 %v360_v16  ;;  %v304_v43 = vld [vmem:[%s490_s4] ss:$0 sm:$0xff] }
   0x8   :  { %339 = vmatprep.subr.bf16.mxu1 %v377_v15 }
   0xa   :  { %340 = vmatpush3.bf16.msra.mxu1 %v362_v36 }
   0xb   :  { %341 = vmatprep.subr.bf16.mxu1 %v377_v15 }
   0xe   :  { %342 = vmatpush3.bf16.msra.mxu1 %v363_v37 }
   0xf   :  { %343 = vmatprep.subr.bf16.mxu1 %v377_v15 }
  0x12   :  { %344 = vmatpush3.bf16.msra.mxu1 %v364_v38 }
  0x13   :  { %345 = vmatprep.subr.bf16.mxu1 %v377_v15 }
  0x16   :  { %346 = vmatpush3.bf16.msra.mxu1 %v365_v39 }
  0x17   :  { %347 = vmatprep.subr.bf16.mxu1 %v377_v15 }
  0x1a   :  { %348 = vmatpush3.bf16.msra.mxu1 %v366_v40 }
  0x1b   :  { %349 = vmatprep.subr.bf16.mxu1 %v377_v15 }
  0x1e   :  { %350 = vmatpush3.bf16.msra.mxu1 %v367_v41 }
  0x1f   :  { %351 = vmatprep.subr.bf16.mxu1 %v377_v15 }
  0x22   :  { %352 = vmatpush3.bf16.msra.mxu1 %v368_v42 }
  0x90   :  { %v36_v4 = vpop.xlane.xlu0 %35 }
  0x91   :  { %v41_v5 = vmul.f32 0.03125, %v36_v4 }
  0x93   :  { %v43_v6 = vsub.f32 %v31_v0, %v41_v5  ;;  %v170_v5 = vld [vmem:[#allocation3] sm:$0xff] }
  0x94   :  { %v39_v7 = vpop.xlane.xlu0 %38 }
  0x95   :  { %v42_v8 = vmul.f32 0.03125, %v39_v7  ;;  %v45_v9 = vmul.f32 %v43_v6, %v43_v6  ;;  %v171_v7 = vld [vmem:[#allocation3 + $0x8] sm:$0xff] }
  0x97   :  { %v44_v10 = vsub.f32 %v32_v1, %v42_v8  ;;  %v47_v11 = vsel %vm33_vm0, %v45_v9, 0.0 }
  0x98   :  { %48 = vadd.xlane.f32.xlu1 %v47_v11 }
  0x99   :  { %v46_v12 = vmul.f32 %v44_v10, %v44_v10 }
  0x9b   :  { %v50_v13 = vsel %vm33_vm0, %v46_v12, 0.0 }
  0x9c   :  { %51 = vadd.xlane.f32.xlu1 %v50_v13  ;;  %v316_v13 = vld [vmem:[%s491_s6] ss:$0 sm:$0xff] }
 0x125   :  { %v49_v17 = vpop.xlane.xlu1 %48 }
 0x126   :  { %v53_v18 = vmul.f32 0.03125, %v49_v17 }
 0x128   :  { %v55_v19 = vadd.f32 1e-05, %v53_v18 }
 0x129   :  { %v52_v20 = vpop.xlane.xlu1 %51 }
 0x12a   :  { %369 = vrsqrt.f32 %v55_v19  ;;  %v54_v21 = vmul.f32 0.03125, %v52_v20 }
 0x12c   :  { %v56_v22 = vadd.f32 1e-05, %v54_v21 }
 0x12e   :  { %371 = vrsqrt.f32 %v56_v22 }
 0x134   :  { %v370_v23 = vpop.eup %369 }
 0x135   :  { %v59_v24 = vmul.f32 %v370_v23, %v43_v6 }
 0x137   :  { %v68_v27 = vmul.f32 %v302_v25, %v59_v24 }
 0x138   :  { %v372_v26 = vpop.eup %371 }
 0x139   :  { %v60_v28 = vmul.f32 %v372_v26, %v44_v10  ;;  %v77_v31 = vadd.f32 %v303_v29, %v68_v27 }
 0x13b   :  { %v69_v30 = vmul.f32 %v302_v25, %v60_v28 }
 0x13d   :  { %v78_v32 = vadd.f32 %v303_v29, %v69_v30 }
 0x13f   :  { %v79_v33 = vpack.c.bf16 %v78_v32, %v77_v31 }
 0x141   :  { %80 = vst.msk [vmem:[#allocation2] sm:$0xff] %vm33_vm0, %v79_v33 }
 0x148   :  { %v83_v34 = vld [vmem:[#allocation2] sm:$0xff] }
 0x149   :  { %334 = vmatmul.mubr.msk.bf16.vlgmr.msra.gmra.mrb[0].mxu0 %vm33_vm0, %v83_v34 }
 0x21c   :  { %v145_v44 = vpop.f32.mrb[0].mxu0 }
 0x21d   :  { %v146_v45 = vadd.f32 %v304_v43, %v145_v44  ;;  %v335_v46 = vpop.f32.mrb[1].mxu0 }
 0x21e   :  { %v148_v47 = vpop.f32.mrb[2].mxu0 }
 0x21f   :  { %v154_v48 = vmul.f32 0.044715, %v146_v45  ;;  %v149_v49 = vadd.f32 %v304_v43, %v148_v47  ;;  %v336_v50 = vpop.f32.mrb[3].mxu0  ;;  %v152_v63 = vmul.f32 0.5, %v146_v45 }
 0x221   :  { %v156_v51 = vmul.f32 %v154_v48, %v146_v45  ;;  %v155_v52 = vmul.f32 0.044715, %v149_v49  ;;  %v153_v0 = vmul.f32 0.5, %v149_v49 }
 0x223   :  { %v158_v53 = vmul.f32 %v156_v51, %v146_v45  ;;  %v157_v54 = vmul.f32 %v155_v52, %v149_v49 }
 0x225   :  { %v159_v55 = vmul.f32 %v157_v54, %v149_v49  ;;  %v160_v56 = vadd.f32 %v158_v53, %v146_v45 }
 0x227   :  { %v161_v57 = vadd.f32 %v159_v55, %v149_v49  ;;  %v162_v58 = vmul.f32 0.7978846, %v160_v56 }
 0x229   :  { %v163_v59 = vmul.f32 0.7978846, %v161_v57  ;;  %373 = vtanh.f32 %v162_v58 }
 0x22b   :  { %375 = vtanh.f32 %v163_v59 }
 0x233   :  { %v374_v60 = vpop.eup %373 }
 0x234   :  { %v166_v61 = vadd.f32 1.0, %v374_v60 }
 0x235   :  { %v376_v62 = vpop.eup %375 }
 0x236   :  { %v167_v1 = vadd.f32 1.0, %v376_v62  ;;  %v168_v2 = vmul.f32 %v166_v61, %v152_v63 }
 0x238   :  { %v169_v3 = vmul.f32 %v167_v1, %v153_v0 }
 0x23a   :  { %v172_v4 = vpack.c.bf16 %v169_v3, %v168_v2 }
 0x23c   :  { %354 = vmatmul.mubr.bf16.vlgmr.msra.gmra.mrb[0].mxu1 %v172_v4 }
 0x30f   :  { %v271_v6 = vpop.f32.mrb[0].mxu1 }
 0x310   :  { %v278_v8 = vadd.f32 %v271_v6, %v170_v5  ;;  %v355_v9 = vpop.f32.mrb[1].mxu1 }
 0x311   :  { %v274_v10 = vpop.f32.mrb[2].mxu1 }
 0x312   :  { %280 = vst.msk [vmem:[#allocation3] sm:$0xff] %vm33_vm0, %v278_v8  ;;  %v279_v11 = vadd.f32 %v274_v10, %v171_v7  ;;  %v356_v12 = vpop.f32.mrb[3].mxu1 }
 0x314   :  { %281 = vst.msk [vmem:[#allocation3 + $0x8] sm:$0xff] %vm33_vm0, %v279_v11 }
 0x319   :  { %v285_v14 = vld [vmem:[#allocation3] sm:$0xff] }
 0x31a   :  { %v294_v15 = vadd.f32 %v316_v13, %v285_v14 }
 0x31b   :  { %v286_v16 = vld [vmem:[#allocation3 + $0x8] sm:$0xff] }
 0x31c   :  { %296 = vst.msk [vmem:[%s492_s7] sm:$0xff] %vm33_vm0, %v294_v15  ;;  %v295_v17 = vadd.f32 %v316_v13, %v286_v16 }
 0x31e   :  { %297 = vst.msk [vmem:[%s492_s7 + $0x8] sm:$0xff] %vm33_vm0, %v295_v17 }

// kernel: transformer_forward.28
= control target key start
LH: loop header
LB: loop body
LE: loop exit
PB: predicated region body
PF: predicated region fallthrough
CT: control target
= control target key end

     0   :  { %s981_s12 = smov 0   ;;  %s983_s13 = smov 0   ;;  %s1098_s0 = inlined_call_operand.vmem [shape: f32[2,8,32], index: 0, kind: input, shape index: {}]   ;;  %s1099_s1 = inlined_call_operand.vmem [shape: f32[2,8,32], index: 1, kind: input, shape index: {}]   ;;  %s1100_s2 = inlined_call_operand.vmem [shape: f32[2,8,32], index: 2, kind: input, shape index: {}]   ;;  %s1101_s3 = inlined_call_operand.vmem [shape: f32[2,8,32], index: 3, kind: output, shape index: {}]  }
   0x1   :  { %s985_s14 = smov 0  }
   0x2 LB: > { %s25_s15 = sadd.s32 1, %s947_s13  ;;  %p802_p0 = scmp.ge.s32.totalorder %s951_s14, 1  ;;  %s951_s14 = sphi %s985_s14, %s13_s14   ;;  %s947_s13 = sphi %s983_s13, %s1103_s13   ;;  %s943_s12 = sphi %s981_s12, %s1102_s12  }
   0x3   : > { %p27_p1 = scmp.ge.s32.totalorder %s25_s15, 2  ;;  %p173_p2 = scmp.lt.s32.totalorder %s951_s14, 3 }
   0x5   : > { %s1105_s15 = smov (%p27_p1, %s25_s15), 0  ;;  %p174_p3 = pnand %p802_p0, %p173_p2 }
   0x6   : > { %p209_p4 = scmp.lt.s32.totalorder (!%p174_p3), %s943_s12, 1  ;;  %v953_v0 = vmov (!%p174_p3), 0.0   ;;  %vm954_vm0 = vmmov (!%p174_p3), 0   ;;  %vm238_vm1 = vcmask (!%p174_p3), 64512   ;;  %s955_s23 = smov (!%p174_p3), 120   ;;  %vm299_vm2 = vcmask (!%p174_p3), 1043456  }
   0x7   : > { %177 = sbr.rel (%p174_p3) target bundleno = 1167 (0x48f), region = 32  ;;  %833 = vmatprep.subr.bf16.mxu0 (!%p174_p3), %v953_v0  ;;  %835 = vmatprep.mubr.msk.bf16.mxu0 (!%p174_p3), %vm954_vm0, %v953_v0  ;;  %s956_s24 = smov (!%p174_p3), 112   ;;  %vm464_vm3 = vcmask (!%p174_p3), 130112   ;;  %vm581_vm4 = vcmask (!%p174_p3), 195712   ;;  %vm698_vm5 = vcmask (!%p174_p3), 261312  }
   0x8   : > { %839 = vmatprep.subr.bf16.mxu1 (!%p174_p3), %v953_v0  ;;  %841 = vmatprep.mubr.msk.bf16.mxu1 (!%p174_p3), %vm954_vm0, %v953_v0  ;;  %s957_s25 = smov (!%p174_p3), 104   ;;  %s958_s5 = smov (!%p174_p3), 8  }
   0x9   : > { %s959_s6 = smov (!%p174_p3), 16   ;;  %s960_s7 = smov (!%p174_p3), 24  }
   0xe   : > { %s1107_s12 = smov (!%p209_p4, %s943_s12), 1 }
   0xf   : > { %s1005_s16 = sshll.u32 %s1107_s12, 3 }
  0x10   : > { %s219_s19 = scalar_lea.vmem %s1099_s1, %s1005_s16  ;;  %s215_s22 = scalar_lea.vmem %s1098_s0, %s1005_s16 }
  0x11   : > { %v233_v1 = vld [vmem:[%s219_s19] sm:$0xff]  ;;  %s223_s28 = scalar_lea.vmem %s1100_s2, %s1005_s16  ;;  %s1081_s4 = scalar_lea.vmem %s1101_s3, %s1005_s16 }
  0x12   : > { %v236_v2 = vpack.c.bf16 %v233_v1, %v233_v1  ;;  %v232_v4 = vld [vmem:[%s215_s22] sm:$0xff] }
  0x13   : > { %v235_v5 = vpack.c.bf16 %v232_v4, %v232_v4  ;;  %v234_v12 = vld [vmem:[%s223_s28] sm:$0xff] }
  0x14   : > { %v243_v3 = vsel %vm238_vm1, %v236_v2, 0  ;;  %v237_v13 = vpack.c.bf16 %v234_v12, %v234_v12 }
  0x15   : > { %834 = vmatpush3.bf16.xpose.msra.mxu0 %v243_v3  ;;  %347 = vrot.lane.b32.xlu1 %v235_v5, %s955_s23 }
  0x16   : > { %851 = vmatprep.subr.bf16.mxu0 %v953_v0  ;;  %v301_v14 = vsel %vm299_vm2, %v237_v13, 0 }
  0x17   : > { %840 = vmatpush3.bf16.msra.mxu1 %v301_v14 }
  0x18   : > { %845 = vmatprep.subr.bf16.mxu1 %v953_v0 }
  0x19   : > { %468 = vrot.lane.b32.xlu1 %v236_v2, %s956_s24 }
  0x1c   : > { %836 = vmatmul.mubr.msk.bf16.vlgmr.msra.gmra.mrb[0].mxu0 %vm238_vm1, %v235_v5 }
  0x1d   : > { %853 = vmatprep.mubr.msk.bf16.mxu0 %vm954_vm0, %v953_v0  ;;  %466 = vrot.lane.b32.xlu1 %v235_v5, %s956_s24 }
  0x21   : > { %585 = vrot.lane.b32.xlu1 %v236_v2, %s957_s25 }
  0x25   : > { %583 = vrot.lane.b32.xlu1 %v235_v5, %s957_s25 }
  0x87   : > { %v348_v20 = vpop.permute.xlu1 %347 }
  0x8b   : > { %v469_v23 = vpop.permute.xlu1 %468 }
  0x8c   : > { %v474_v24 = vsel %vm238_vm1, %v469_v23, 0 }
  0x8f   : > { %v467_v25 = vpop.permute.xlu1 %466 }
  0x93   : > { %v586_v26 = vpop.permute.xlu1 %585 }
  0x94   : > { %v591_v27 = vsel %vm238_vm1, %v586_v26, 0 }
  0x97   : > { %v584_v28 = vpop.permute.xlu1 %583 }
  0xef   : > { %v279_v6 = vpop.f32.mrb[0].mxu0 }
  0xf0   : > { %v285_v7 = vmul.f32 0.35355338, %v279_v6  ;;  %v837_v8 = vpop.f32.mrb[1].mxu0 }
  0xf1   : > { %v282_v9 = vpop.f32.mrb[2].mxu0 }
  0xf2   : > { %v838_v10 = vpop.f32.mrb[3].mxu0  ;;  %v286_v11 = vsel %vm238_vm1, %v285_v7, -inf }
  0xf3   : > { %287 = vmax.xlane.f32.xlu0 %v286_v11 }
 0x109   : > { %350 = vrot.lane.b32.xlu0 %v236_v2, %s955_s23 }
 0x180   : > { %v288_v15 = vpop.xlane.xlu0 %287 }
 0x181   : > { %v289_v16 = vsub.f32 %v285_v7, %v288_v15 }
 0x183   : > { %v290_v17 = vmul.f32 1.442695, %v289_v16 }
 0x184   : > { %v351_v18 = vpop.permute.xlu0 %350 }
 0x185   : > { %913 = vpow2.f32 %v290_v17  ;;  %v356_v21 = vsel %vm238_vm1, %v351_v18, 0 }
 0x18f   : > { %v1033_v19 = vpop.eup %913 }
 0x190   : > { %v295_v22 = vpack.c.bf16 %v1033_v19, %v1033_v19  ;;  %v292_v12 = vsel %vm238_vm1, %v1033_v19, 0.0 }
 0x192   : > { %842 = vmatmul.mubr.msk.bf16.vlgmr.msra.gmra.mrb[0].mxu1 %vm238_vm1, %v295_v22 }
 0x193   : > { %846 = vmatpush3.bf16.xpose.msra.mxu1 %v356_v21  ;;  %847 = vmatprep.mubr.msk.bf16.mxu1 %vm954_vm0, %v953_v0 }
 0x194   : > { %857 = vmatprep.subr.bf16.mxu1 %v953_v0 }
 0x19a   : > { %848 = vmatmul.mubr.msk.bf16.vlgmr.msra.gmra.mrb[4].mxu1 %vm238_vm1, %v348_v20 }
 0x19b   : > { %858 = vmatpush3.bf16.xpose.msra.mxu1 %v474_v24  ;;  %859 = vmatprep.mubr.msk.bf16.mxu1 %vm954_vm0, %v953_v0 }
 0x19c   : > { %869 = vmatprep.subr.bf16.mxu1 %v953_v0 }
 0x1a2   : > { %860 = vmatmul.mubr.msk.bf16.vlgmr.msra.gmra.mrb[8].mxu1 %vm238_vm1, %v467_v25 }
 0x1a3   : > { %870 = vmatpush3.bf16.xpose.msra.mxu1 %v591_v27  ;;  %871 = vmatprep.mubr.msk.bf16.mxu1 %vm954_vm0, %v953_v0 }
 0x1aa   : > { %872 = vmatmul.mubr.msk.bf16.vlgmr.msra.gmra.mrb[12].mxu1 %vm238_vm1, %v584_v28 }
 0x265   : > { %v1052_v29 = vpop.f32.mrb[0].mxu1 }
 0x266   : > { %v843_v30 = vpop.f32.mrb[1].mxu1 }
 0x267   : > { %v340_v31 = vpop.f32.mrb[2].mxu1 }
 0x268   : > { %v844_v32 = vpop.f32.mrb[3].mxu1 }
 0x26d   : > { %v392_v33 = vpop.f32.mrb[4].mxu1 }
 0x26e   : > { %v398_v34 = vmul.f32 0.35355338, %v392_v33  ;;  %v849_v35 = vpop.f32.mrb[5].mxu1 }
 0x26f   : > { %v395_v36 = vpop.f32.mrb[6].mxu1 }
 0x270   : > { %v850_v37 = vpop.f32.mrb[7].mxu1  ;;  %v399_v38 = vsel %vm238_vm1, %v398_v34, -inf }
 0x271   : > { %400 = vmax.xlane.f32.xlu1 %v399_v38 }
 0x275   : > { %v510_v39 = vpop.f32.mrb[8].mxu1 }
 0x276   : > { %v516_v40 = vmul.f32 0.35355338, %v510_v39  ;;  %v861_v41 = vpop.f32.mrb[9].mxu1 }
 0x277   : > { %v513_v42 = vpop.f32.mrb[10].mxu1 }
 0x278   : > { %v517_v43 = vsel %vm238_vm1, %v516_v40, -inf  ;;  %v862_v44 = vpop.f32.mrb[11].mxu1 }
 0x279   : > { %518 = vmax.xlane.f32.xlu0 %v517_v43 }
 0x27d   : > { %v627_v45 = vpop.f32.mrb[12].mxu1 }
 0x27e   : > { %v873_v46 = vpop.f32.mrb[13].mxu1  ;;  %v633_v49 = vmul.f32 0.35355338, %v627_v45 }
 0x27f   : > { %v630_v47 = vpop.f32.mrb[14].mxu1 }
 0x280   : > { %v874_v48 = vpop.f32.mrb[15].mxu1  ;;  %v634_v50 = vsel %vm238_vm1, %v633_v49, -inf }
 0x282   : > { %527 = vrot.lane.b32.xlu1 %v237_v13, %s956_s24 }
 0x28f   : > { %410 = vrot.lane.b32.xlu0 %v237_v13, %s955_s23 }
 0x2a6   : > { %635 = vmax.xlane.f32.xlu1 %v634_v50 }
 0x2b7   : > { %644 = vrot.lane.b32.xlu1 %v237_v13, %s957_s25 }
 0x2fe   : > { %v401_v51 = vpop.xlane.xlu1 %400 }
 0x2ff   : > { %v402_v52 = vsub.f32 %v398_v34, %v401_v51 }
 0x301   : > { %v403_v53 = vmul.f32 1.442695, %v402_v52 }
 0x302   : > { %v528_v60 = vpop.permute.xlu1 %527 }
 0x303   : > { %915 = vpow2.f32 %v403_v53  ;;  %v533_v63 = vsel %vm299_vm2, %v528_v60, 0 }
 0x306   : > { %v519_v54 = vpop.xlane.xlu0 %518 }
 0x307   : > { %v520_v55 = vsub.f32 %v516_v40, %v519_v54 }
 0x309   : > { %v521_v56 = vmul.f32 1.442695, %v520_v55 }
 0x30a   : > { %v411_v57 = vpop.permute.xlu0 %410 }
 0x30b   : > { %917 = vpow2.f32 %v521_v56  ;;  %v416_v58 = vsel %vm299_vm2, %v411_v57, 0 }
 0x30c   : > { %852 = vmatpush3.bf16.msra.mxu0 %v416_v58 }
 0x30d   : > { %v916_v59 = vpop.eup %915  ;;  %863 = vmatprep.subr.bf16.mxu0 %v953_v0 }
 0x30e   : > { %v405_v61 = vsel %vm238_vm1, %v916_v59, 0.0  ;;  %v408_v62 = vpack.c.bf16 %v916_v59, %v916_v59 }
 0x30f   : > { %406 = vadd.xlane.f32.xlu0 %v405_v61 }
 0x310   : > { %854 = vmatmul.mubr.msk.bf16.vlgmr.msra.gmra.mrb[4].mxu0 %vm238_vm1, %v408_v62 }
 0x311   : > { %864 = vmatpush3.bf16.msra.mxu0 %v533_v63  ;;  %865 = vmatprep.mubr.msk.bf16.mxu0 %vm954_vm0, %v953_v0 }
 0x312   : > { %875 = vmatprep.subr.bf16.mxu0 %v953_v0 }
 0x315   : > { %v918_v1 = vpop.eup %917 }
 0x316   : > { %v523_v2 = vsel %vm238_vm1, %v918_v1, 0.0  ;;  %v526_v3 = vpack.c.bf16 %v918_v1, %v918_v1 }
 0x317   : > { %524 = vadd.xlane.f32.xlu1 %v523_v2 }
 0x318   : > { %866 = vmatmul.mubr.msk.bf16.vlgmr.msra.gmra.mrb[8].mxu0 %vm238_vm1, %v526_v3 }
 0x319   : > { %877 = vmatprep.mubr.msk.bf16.mxu0 %vm954_vm0, %v953_v0 }
 0x333   : > { %v636_v4 = vpop.xlane.xlu1 %635 }
 0x334   : > { %v637_v5 = vsub.f32 %v633_v49, %v636_v4 }
 0x336   : > { %v638_v6 = vmul.f32 1.442695, %v637_v5 }
 0x337   : > { %v645_v7 = vpop.permute.xlu1 %644 }
 0x338   : > { %919 = vpow2.f32 %v638_v6  ;;  %v650_v8 = vsel %vm299_vm2, %v645_v7, 0 }
 0x339   : > { %876 = vmatpush3.bf16.msra.mxu0 %v650_v8 }
 0x342   : > { %v920_v9 = vpop.eup %919 }
 0x343   : > { %v640_v10 = vsel %vm238_vm1, %v920_v9, 0.0  ;;  %v643_v11 = vpack.c.bf16 %v920_v9, %v920_v9 }
 0x344   : > { %641 = vadd.xlane.f32.xlu0 %v640_v10 }
 0x345   : > { %878 = vmatmul.mubr.msk.bf16.vlgmr.msra.gmra.mrb[12].mxu0 %vm238_vm1, %v643_v11 }
 0x348   : > { %293 = vadd.xlane.f32.xlu0 %v292_v12 }
 0x39c   : > { %v407_v0 = vpop.xlane.xlu0 %406 }
 0x3a4   : > { %v525_v15 = vpop.xlane.xlu1 %524 }
 0x3d1   : > { %v642_v13 = vpop.xlane.xlu0 %641 }
 0x3d5   : > { %v294_v14 = vpop.xlane.xlu0 %293 }
 0x3d6   : > { %921 = vrcp.f32 %v294_v14 }
 0x3d7   : > { %923 = vrcp.f32 %v407_v0 }
 0x3d8   : > { %925 = vrcp.f32 %v525_v15 }
 0x3d9   : > { %927 = vrcp.f32 %v642_v13 }
 0x3e0   : > { %v922_v16 = vpop.eup %921 }
 0x3e1   : > { %v344_v17 = vmul.f32 %v922_v16, %v1052_v29  ;;  %v924_v18 = vpop.eup %923 }
 0x3e2   : > { %v926_v24 = vpop.eup %925 }
 0x3e3   : > { %v452_v20 = vpop.f32.mrb[4].mxu0  ;;  %345 = vst.msk [vmem:[%s1081_s4] sm:$0xff] %vm238_vm1, %v344_v17  ;;  %v928_v30 = vpop.eup %927 }
 0x3e4   : > { %v459_v19 = vmul.f32 %v924_v18, %v452_v20  ;;  %v855_v21 = vpop.f32.mrb[5].mxu0 }
 0x3e5   : > { %v455_v22 = vpop.f32.mrb[6].mxu0 }
 0x3e6   : > { %461 = vrot.lane.b32.xlu1 %v459_v19, %s958_s5  ;;  %v856_v23 = vpop.f32.mrb[7].mxu0 }
 0x3eb   : > { %v569_v25 = vpop.f32.mrb[8].mxu0 }
 0x3ec   : > { %v576_v26 = vmul.f32 %v926_v24, %v569_v25  ;;  %v867_v27 = vpop.f32.mrb[9].mxu0 }
 0x3ed   : > { %v572_v28 = vpop.f32.mrb[10].mxu0 }
 0x3ee   : > { %578 = vrot.lane.b32.xlu0 %v576_v26, %s959_s6  ;;  %v868_v29 = vpop.f32.mrb[11].mxu0 }
 0x418   : > { %v686_v31 = vpop.f32.mrb[12].mxu0 }
 0x419   : > { %v693_v32 = vmul.f32 %v928_v30, %v686_v31  ;;  %v879_v33 = vpop.f32.mrb[13].mxu0 }
 0x41a   : > { %v689_v34 = vpop.f32.mrb[14].mxu0 }
 0x41b   : > { %695 = vrot.lane.b32.xlu1 %v693_v32, %s960_s7  ;;  %v880_v35 = vpop.f32.mrb[15].mxu0 }
 0x458   : > { %v462_v36 = vpop.permute.xlu1 %461 }
 0x459   : > { %465 = vst.msk [vmem:[%s1081_s4] sm:$0xff] %vm464_vm3, %v462_v36 }
 0x460   : > { %v579_v37 = vpop.permute.xlu0 %578 }
 0x461   : > { %582 = vst.msk [vmem:[%s1081_s4] sm:$0xff] %vm581_vm4, %v579_v37 }
 0x48d   : > { %v696_v38 = vpop.permute.xlu1 %695 }
 0x48e   : > { %699 = vst.msk [vmem:[%s1081_s4] sm:$0xff] %vm698_vm5, %v696_v38 }
 0x48f PF: > { %s13_s14 = sadd.s32 1, %s951_s14   ;;  %s1102_s12 = smov %s947_s13 }
 0x490   : > { %p10_p5 = scmp.ge.s32.totalorder %s13_s14, 4   ;;  %s1103_s13 = smov %s1105_s15 }
 0x492   :  { %12 = sbr.rel (!%p10_p5) target bundleno = 2 (0x2), region = 68 }

// kernel: transformer_forward.35
= control target key start
LH: loop header
LB: loop body
LE: loop exit
PB: predicated region body
PF: predicated region fallthrough
CT: control target
= control target key end

     0   :  { %vm16_vm0 = vcmask 261120   ;;  %s118_s0 = inlined_call_operand.vmem [shape: f32[16,32], index: 0, kind: input, shape index: {}]   ;;  %s119_s1 = inlined_call_operand.vmem [shape: f32[1,32], index: 1, kind: input, shape index: {}]   ;;  %s120_s2 = inlined_call_operand.vmem [shape: f32[1,32], index: 2, kind: input, shape index: {}]   ;;  %s121_s3 = inlined_call_operand.vmem [shape: f32[16,32], index: 3, kind: output, shape index: {}]  }
   0x1   :  { %v14_v0 = vld [vmem:[%s118_s0] sm:$0xff]  ;;  %v15_v1 = vld [vmem:[%s118_s0 + $0x8] sm:$0xff] }
   0x2   :  { %v17_v2 = vsel %vm16_vm0, %v14_v0, 0.0  ;;  %v20_v3 = vsel %vm16_vm0, %v15_v1, 0.0  ;;  %v68_v21 = vld [vmem:[%s119_s1] ss:$0 sm:$0xff] }
   0x3   :  { %18 = vadd.xlane.f32.xlu0 %v17_v2  ;;  %v69_v23 = vld [vmem:[%s120_s2] ss:$0 sm:$0xff] }
   0x7   :  { %21 = vadd.xlane.f32.xlu0 %v20_v3 }
  0x90   :  { %v19_v4 = vpop.xlane.xlu0 %18 }
  0x91   :  { %v24_v5 = vmul.f32 0.03125, %v19_v4 }
  0x93   :  { %v26_v6 = vsub.f32 %v14_v0, %v24_v5 }
  0x94   :  { %v22_v7 = vpop.xlane.xlu0 %21 }
  0x95   :  { %v25_v8 = vmul.f32 0.03125, %v22_v7  ;;  %v28_v9 = vmul.f32 %v26_v6, %v26_v6 }
  0x97   :  { %v27_v10 = vsub.f32 %v15_v1, %v25_v8  ;;  %v30_v11 = vsel %vm16_vm0, %v28_v9, 0.0 }
  0x98   :  { %31 = vadd.xlane.f32.xlu1 %v30_v11 }
  0x99   :  { %v29_v12 = vmul.f32 %v27_v10, %v27_v10 }
  0x9b   :  { %v33_v13 = vsel %vm16_vm0, %v29_v12, 0.0 }
  0x9c   :  { %34 = vadd.xlane.f32.xlu1 %v33_v13 }
 0x125   :  { %v32_v14 = vpop.xlane.xlu1 %31 }
 0x126   :  { %v36_v15 = vmul.f32 0.03125, %v32_v14 }
 0x128   :  { %v38_v16 = vadd.f32 1e-05, %v36_v15 }
 0x129   :  { %v35_v17 = vpop.xlane.xlu1 %34 }
 0x12a   :  { %70 = vrsqrt.f32 %v38_v16  ;;  %v37_v18 = vmul.f32 0.03125, %v35_v17 }
 0x12c   :  { %v39_v19 = vadd.f32 1e-05, %v37_v18 }
 0x12e   :  { %72 = vrsqrt.f32 %v39_v19 }
 0x134   :  { %v71_v20 = vpop.eup %70 }
 0x135   :  { %v42_v22 = vmul.f32 %v71_v20, %v26_v6 }
 0x137   :  { %v51_v24 = vmul.f32 %v68_v21, %v42_v22 }
 0x138   :  { %v73_v25 = vpop.eup %72 }
 0x139   :  { %v60_v26 = vadd.f32 %v69_v23, %v51_v24  ;;  %v43_v27 = vmul.f32 %v73_v25, %v27_v10 }
 0x13b   :  { %62 = vst.msk [vmem:[%s121_s3] sm:$0xff] %vm16_vm0, %v60_v26  ;;  %v52_v28 = vmul.f32 %v68_v21, %v43_v27 }
 0x13d   :  { %v61_v29 = vadd.f32 %v69_v23, %v52_v28 }
 0x13f   :  { %63 = vst.msk [vmem:[%s121_s3 + $0x8] sm:$0xff] %vm16_vm0, %v61_v29 }

// kernel: transformer_forward.40
= control target key start
LH: loop header
LB: loop body
LE: loop exit
PB: predicated region body
PF: predicated region fallthrough
CT: control target
= control target key end

     0   :  { %v184_v0 = vmov 0.0   ;;  %vm185_vm0 = vmmov 0   ;;  %vm36_vm1 = vcmask 261120   ;;  %s247_s1 = inlined_call_operand.vmem [shape: bf16[32,32], index: 1, kind: input, shape index: {}]   ;;  %s248_s2 = inlined_call_operand.vmem [shape: bf16[32,32], index: 2, kind: input, shape index: {}]   ;;  %s249_s0 = inlined_call_operand.vmem [shape: f32[16,32], index: 0, kind: input, shape index: {}]   ;;  %s250_s3 = inlined_call_operand.vmem [shape: f32[16,32], index: 3, kind: output, shape index: {0}]   ;;  %s251_s4 = inlined_call_operand.vmem [shape: f32[16,32], index: 4, kind: output, shape index: {1}]  }
   0x1   :  { %162 = vmatprep.subr.bf16.mxu0 %v184_v0  ;;  %170 = vmatprep.subr.bf16.mxu1 %v184_v0  ;;  %v180_v1 = vld [vmem:[%s247_s1] sm:$0xff]   ;;  %v182_v3 = vld [vmem:[%s247_s1 + $0x8] sm:$0xff]  }
   0x2   :  { %v181_v2 = vld [vmem:[%s248_s2] sm:$0xff]   ;;  %166 = vmatprep.mubr.msk.bf16.mxu0 %vm185_vm0, %v184_v0  ;;  %174 = vmatprep.mubr.msk.bf16.mxu1 %vm185_vm0, %v184_v0  ;;  %v183_v4 = vld [vmem:[%s248_s2 + $0x8] sm:$0xff]  }
   0x3   :  { %163 = vmatpush3.bf16.msra.mxu0 %v180_v1  ;;  %171 = vmatpush3.bf16.msra.mxu1 %v181_v2  ;;  %v17_v5 = vld [vmem:[%s249_s0] sm:$0xff]  ;;  %v18_v6 = vld [vmem:[%s249_s0 + $0x8] sm:$0xff] }
   0x4   :  { %164 = vmatprep.subr.bf16.mxu0 %v184_v0  ;;  %172 = vmatprep.subr.bf16.mxu1 %v184_v0  ;;  %v19_v7 = vpack.c.bf16 %v18_v6, %v17_v5 }
   0x7   :  { %165 = vmatpush3.bf16.msra.mxu0 %v182_v3  ;;  %173 = vmatpush3.bf16.msra.mxu1 %v183_v4 }
   0xa   :  { %167 = vmatmul.mubr.msk.bf16.vlgmr.msra.gmra.mrb[0].mxu0 %vm36_vm1, %v19_v7  ;;  %175 = vmatmul.mubr.msk.bf16.vlgmr.msra.gmra.mrb[0].mxu1 %vm36_vm1, %v19_v7 }
  0xdd   :  { %v74_v8 = vpop.f32.mrb[0].mxu0  ;;  %v133_v9 = vpop.f32.mrb[0].mxu1 }
  0xde   :  { %81 = vst.msk [vmem:[%s250_s3] sm:$0xff] %vm36_vm1, %v74_v8  ;;  %v168_v10 = vpop.f32.mrb[1].mxu0  ;;  %140 = vst.msk [vmem:[%s251_s4] sm:$0xff] %vm36_vm1, %v133_v9  ;;  %v176_v11 = vpop.f32.mrb[1].mxu1 }
  0xdf   :  { %v77_v12 = vpop.f32.mrb[2].mxu0  ;;  %v136_v13 = vpop.f32.mrb[2].mxu1 }
  0xe0   :  { %82 = vst.msk [vmem:[%s250_s3 + $0x8] sm:$0xff] %vm36_vm1, %v77_v12  ;;  %v169_v14 = vpop.f32.mrb[3].mxu0  ;;  %141 = vst.msk [vmem:[%s251_s4 + $0x8] sm:$0xff] %vm36_vm1, %v136_v13  ;;  %v177_v15 = vpop.f32.mrb[3].mxu1 }

// kernel: transformer_forward.39
= control target key start
LH: loop header
LB: loop body
LE: loop exit
PB: predicated region body
PF: predicated region fallthrough
CT: control target
= control target key end

     0   :  { %vm20_vm0 = vcmask 261120   ;;  %v157_v15 = vmov 0.0   ;;  %vm158_vm1 = vmmov 0   ;;  %s215_s0 = inlined_call_operand.vmem [shape: f32[16,32], index: 0, kind: input, shape index: {}]   ;;  %s216_s3 = inlined_call_operand.vmem [shape: bf16[32,32], index: 3, kind: input, shape index: {}]   ;;  %s217_s1 = inlined_call_operand.vmem [shape: f32[1,32], index: 1, kind: input, shape index: {}]   ;;  %s218_s2 = inlined_call_operand.vmem [shape: f32[1,32], index: 2, kind: input, shape index: {}]   ;;  %s219_s4 = inlined_call_operand.vmem [shape: f32[16,32], index: 4, kind: output, shape index: {}]  }
   0x1   :  { %v18_v0 = vld [vmem:[%s215_s0] sm:$0xff]  ;;  %v19_v1 = vld [vmem:[%s215_s0 + $0x8] sm:$0xff]  ;;  %141 = vmatprep.subr.bf16.mxu0 %v157_v15  ;;  %145 = vmatprep.mubr.msk.bf16.mxu0 %vm158_vm1, %v157_v15 }
   0x2   :  { %v21_v2 = vsel %vm20_vm0, %v18_v0, 0.0  ;;  %v24_v3 = vsel %vm20_vm0, %v19_v1, 0.0  ;;  %v151_v14 = vld [vmem:[%s216_s3] sm:$0xff]   ;;  %v152_v16 = vld [vmem:[%s216_s3 + $0x8] sm:$0xff]  }
   0x3   :  { %22 = vadd.xlane.f32.xlu0 %v21_v2  ;;  %142 = vmatpush3.bf16.msra.mxu0 %v151_v14  ;;  %v133_v25 = vld [vmem:[%s217_s1] ss:$0 sm:$0xff] }
   0x4   :  { %143 = vmatprep.subr.bf16.mxu0 %v157_v15  ;;  %v134_v29 = vld [vmem:[%s218_s2] ss:$0 sm:$0xff] }
   0x7   :  { %25 = vadd.xlane.f32.xlu0 %v24_v3  ;;  %144 = vmatpush3.bf16.msra.mxu0 %v152_v16 }
  0x90   :  { %v23_v4 = vpop.xlane.xlu0 %22 }
  0x91   :  { %v28_v5 = vmul.f32 0.03125, %v23_v4 }
  0x93   :  { %v30_v6 = vsub.f32 %v18_v0, %v28_v5 }
  0x94   :  { %v26_v7 = vpop.xlane.xlu0 %25 }
  0x95   :  { %v29_v8 = vmul.f32 0.03125, %v26_v7  ;;  %v32_v9 = vmul.f32 %v30_v6, %v30_v6 }
  0x97   :  { %v31_v10 = vsub.f32 %v19_v1, %v29_v8  ;;  %v34_v11 = vsel %vm20_vm0, %v32_v9, 0.0 }
  0x98   :  { %35 = vadd.xlane.f32.xlu1 %v34_v11 }
  0x99   :  { %v33_v12 = vmul.f32 %v31_v10, %v31_v10 }
  0x9b   :  { %v37_v13 = vsel %vm20_vm0, %v33_v12, 0.0 }
  0x9c   :  { %38 = vadd.xlane.f32.xlu1 %v37_v13 }
 0x125   :  { %v36_v17 = vpop.xlane.xlu1 %35 }
 0x126   :  { %v40_v18 = vmul.f32 0.03125, %v36_v17 }
 0x128   :  { %v42_v19 = vadd.f32 1e-05, %v40_v18 }
 0x129   :  { %v39_v20 = vpop.xlane.xlu1 %38 }
 0x12a   :  { %153 = vrsqrt.f32 %v42_v19  ;;  %v41_v21 = vmul.f32 0.03125, %v39_v20 }
 0x12c   :  { %v43_v22 = vadd.f32 1e-05, %v41_v21 }
 0x12e   :  { %155 = vrsqrt.f32 %v43_v22 }
 0x134   :  { %v154_v23 = vpop.eup %153 }
 0x135   :  { %v46_v24 = vmul.f32 %v154_v23, %v30_v6 }
 0x137   :  { %v55_v28 = vmul.f32 %v133_v25, %v46_v24 }
 0x138   :  { %v156_v26 = vpop.eup %155 }
 0x139   :  { %v47_v27 = vmul.f32 %v156_v26, %v31_v10  ;;  %v64_v31 = vadd.f32 %v134_v29, %v55_v28 }
 0x13b   :  { %v56_v30 = vmul.f32 %v133_v25, %v47_v27 }
 0x13d   :  { %v65_v32 = vadd.f32 %v134_v29, %v56_v30 }
 0x13f   :  { %v66_v33 = vpack.c.bf16 %v65_v32, %v64_v31 }
 0x141   :  { %146 = vmatmul.mubr.msk.bf16.vlgmr.msra.gmra.mrb[0].mxu0 %vm20_vm0, %v66_v33 }
 0x214   :  { %v120_v34 = vpop.f32.mrb[0].mxu0 }
 0x215   :  { %127 = vst.msk [vmem:[%s219_s4] sm:$0xff] %vm20_vm0, %v120_v34  ;;  %v147_v35 = vpop.f32.mrb[1].mxu0 }
 0x216   :  { %v123_v36 = vpop.f32.mrb[2].mxu0 }
 0x217   :  { %128 = vst.msk [vmem:[%s219_s4 + $0x8] sm:$0xff] %vm20_vm0, %v123_v36  ;;  %v148_v37 = vpop.f32.mrb[3].mxu0 }

// kernel: transformer_forward.37
= control target key start
LH: loop header
LB: loop body
LE: loop exit
PB: predicated region body
PF: predicated region fallthrough
CT: control target
= control target key end

     0   :  { %s993_s12 = smov 0   ;;  %s995_s13 = smov 0   ;;  %s1128_s0 = inlined_call_operand.vmem [shape: f32[2,8,32], index: 0, kind: input, shape index: {}]   ;;  %s1129_s1 = inlined_call_operand.vmem [shape: f32[2,8,32], index: 1, kind: input, shape index: {}]   ;;  %s1130_s2 = inlined_call_operand.vmem [shape: f32[2,8,32], index: 2, kind: input, shape index: {}]   ;;  %s1131_s3 = inlined_call_operand.vmem [shape: f32[2,8,32], index: 3, kind: output, shape index: {}]  }
   0x1   :  { %s997_s14 = smov 0  }
   0x2 LB: > { %s25_s15 = sadd.s32 1, %s959_s13  ;;  %p814_p0 = scmp.ge.s32.totalorder %s963_s14, 1  ;;  %s963_s14 = sphi %s997_s14, %s13_s14   ;;  %s959_s13 = sphi %s995_s13, %s1133_s13   ;;  %s955_s12 = sphi %s993_s12, %s1132_s12  }
   0x3   : > { %p27_p1 = scmp.ge.s32.totalorder %s25_s15, 2  ;;  %p173_p2 = scmp.lt.s32.totalorder %s963_s14, 3 }
   0x5   : > { %s1135_s15 = smov (%p27_p1, %s25_s15), 0  ;;  %p174_p3 = pnand %p814_p0, %p173_p2 }
   0x6   : > { %p209_p4 = scmp.lt.s32.totalorder (!%p174_p3), %s955_s12, 1  ;;  %v965_v0 = vmov (!%p174_p3), 0.0   ;;  %vm966_vm0 = vmmov (!%p174_p3), 0   ;;  %vm246_vm1 = vcmask (!%p174_p3), 64512   ;;  %s967_s23 = smov (!%p174_p3), 120   ;;  %v236_v6 = vlaneseq (!%p174_p3) }
   0x7   : > { %177 = sbr.rel (%p174_p3) target bundleno = 1169 (0x491), region = 32  ;;  %845 = vmatprep.subr.bf16.mxu0 (!%p174_p3), %v965_v0  ;;  %847 = vmatprep.mubr.msk.bf16.mxu0 (!%p174_p3), %vm966_vm0, %v965_v0  ;;  %s968_s24 = smov (!%p174_p3), 112   ;;  %vm308_vm3 = vcmask (!%p174_p3), 1043456   ;;  %vm474_vm4 = vcmask (!%p174_p3), 130112   ;;  %vm592_vm5 = vcmask (!%p174_p3), 195712   ;;  %vm710_vm6 = vcmask (!%p174_p3), 261312  }
   0x8   : > { %851 = vmatprep.subr.bf16.mxu1 (!%p174_p3), %v965_v0  ;;  %853 = vmatprep.mubr.msk.bf16.mxu1 (!%p174_p3), %vm966_vm0, %v965_v0  ;;  %s969_s25 = smov (!%p174_p3), 104   ;;  %v1037_v7 = vshrl.u32 (!%p174_p3), %v236_v6, 7  ;;  %v1039_v8 = vand.u32 (!%p174_p3), 127, %v236_v6  ;;  %s970_s5 = smov (!%p174_p3), 8  }
   0x9   : > { %s971_s6 = smov (!%p174_p3), 16   ;;  %s972_s7 = smov (!%p174_p3), 24  }
   0xa   : > { %vm242_vm2 = vcmp.gt.s32.totalorder (!%p174_p3), %v1039_v8, %v1037_v7 }
   0xe   : > { %s1137_s12 = smov (!%p209_p4, %s955_s12), 1 }
   0xf   : > { %s1017_s16 = sshll.u32 %s1137_s12, 3 }
  0x10   : > { %s219_s19 = scalar_lea.vmem %s1129_s1, %s1017_s16  ;;  %s215_s22 = scalar_lea.vmem %s1128_s0, %s1017_s16 }
  0x11   : > { %v233_v1 = vld [vmem:[%s219_s19] sm:$0xff]  ;;  %s223_s28 = scalar_lea.vmem %s1130_s2, %s1017_s16  ;;  %s1111_s4 = scalar_lea.vmem %s1131_s3, %s1017_s16 }
  0x12   : > { %v244_v2 = vpack.c.bf16 %v233_v1, %v233_v1  ;;  %v232_v4 = vld [vmem:[%s215_s22] sm:$0xff] }
  0x13   : > { %v243_v5 = vpack.c.bf16 %v232_v4, %v232_v4  ;;  %v234_v16 = vld [vmem:[%s223_s28] sm:$0xff] }
  0x14   : > { %v251_v3 = vsel %vm246_vm1, %v244_v2, 0  ;;  %v245_v17 = vpack.c.bf16 %v234_v16, %v234_v16 }
  0x15   : > { %846 = vmatpush3.bf16.xpose.msra.mxu0 %v251_v3  ;;  %356 = vrot.lane.b32.xlu1 %v243_v5, %s967_s23 }
  0x16   : > { %863 = vmatprep.subr.bf16.mxu0 %v965_v0  ;;  %v310_v18 = vsel %vm308_vm3, %v245_v17, 0 }
  0x17   : > { %852 = vmatpush3.bf16.msra.mxu1 %v310_v18 }
  0x18   : > { %857 = vmatprep.subr.bf16.mxu1 %v965_v0 }
  0x19   : > { %478 = vrot.lane.b32.xlu1 %v244_v2, %s968_s24 }
  0x1c   : > { %848 = vmatmul.mubr.msk.bf16.vlgmr.msra.gmra.mrb[0].mxu0 %vm246_vm1, %v243_v5 }
  0x1d   : > { %865 = vmatprep.mubr.msk.bf16.mxu0 %vm966_vm0, %v965_v0  ;;  %476 = vrot.lane.b32.xlu1 %v243_v5, %s968_s24 }
  0x21   : > { %596 = vrot.lane.b32.xlu1 %v244_v2, %s969_s25 }
  0x25   : > { %594 = vrot.lane.b32.xlu1 %v243_v5, %s969_s25 }
  0x87   : > { %v357_v24 = vpop.permute.xlu1 %356 }
  0x8b   : > { %v479_v27 = vpop.permute.xlu1 %478 }
  0x8c   : > { %v484_v28 = vsel %vm246_vm1, %v479_v27, 0 }
  0x8f   : > { %v477_v29 = vpop.permute.xlu1 %476 }
  0x93   : > { %v597_v30 = vpop.permute.xlu1 %596 }
  0x94   : > { %v602_v31 = vsel %vm246_vm1, %v597_v30, 0 }
  0x97   : > { %v595_v32 = vpop.permute.xlu1 %594 }
  0xef   : > { %v287_v9 = vpop.f32.mrb[0].mxu0 }
  0xf0   : > { %v293_v10 = vmul.f32 0.35355338, %v287_v9  ;;  %v849_v11 = vpop.f32.mrb[1].mxu0 }
  0xf1   : > { %v290_v12 = vpop.f32.mrb[2].mxu0 }
  0xf2   : > { %v850_v13 = vpop.f32.mrb[3].mxu0  ;;  %v294_v14 = vsel %vm242_vm2, -1e+30, %v293_v10 }
  0xf3   : > { %v295_v15 = vsel %vm246_vm1, %v294_v14, -inf }
  0xf4   : > { %296 = vmax.xlane.f32.xlu0 %v295_v15 }
 0x10a   : > { %359 = vrot.lane.b32.xlu0 %v244_v2, %s967_s23 }
 0x181   : > { %v297_v19 = vpop.xlane.xlu0 %296 }
 0x182   : > { %v298_v20 = vsub.f32 %v294_v14, %v297_v19 }
 0x184   : > { %v299_v21 = vmul.f32 1.442695, %v298_v20 }
 0x185   : > { %v360_v22 = vpop.permute.xlu0 %359 }
 0x186   : > { %925 = vpow2.f32 %v299_v21  ;;  %v365_v25 = vsel %vm246_vm1, %v360_v22, 0 }
 0x190   : > { %v1054_v23 = vpop.eup %925 }
 0x191   : > { %v304_v26 = vpack.c.bf16 %v1054_v23, %v1054_v23  ;;  %v301_v19 = vsel %vm246_vm1, %v1054_v23, 0.0 }
 0x193   : > { %854 = vmatmul.mubr.msk.bf16.vlgmr.msra.gmra.mrb[0].mxu1 %vm246_vm1, %v304_v26 }
 0x194   : > { %858 = vmatpush3.bf16.xpose.msra.mxu1 %v365_v25  ;;  %859 = vmatprep.mubr.msk.bf16.mxu1 %vm966_vm0, %v965_v0 }
 0x195   : > { %869 = vmatprep.subr.bf16.mxu1 %v965_v0 }
 0x19b   : > { %860 = vmatmul.mubr.msk.bf16.vlgmr.msra.gmra.mrb[4].mxu1 %vm246_vm1, %v357_v24 }
 0x19c   : > { %870 = vmatpush3.bf16.xpose.msra.mxu1 %v484_v28  ;;  %871 = vmatprep.mubr.msk.bf16.mxu1 %vm966_vm0, %v965_v0 }
 0x19d   : > { %881 = vmatprep.subr.bf16.mxu1 %v965_v0 }
 0x1a3   : > { %872 = vmatmul.mubr.msk.bf16.vlgmr.msra.gmra.mrb[8].mxu1 %vm246_vm1, %v477_v29 }
 0x1a4   : > { %882 = vmatpush3.bf16.xpose.msra.mxu1 %v602_v31  ;;  %883 = vmatprep.mubr.msk.bf16.mxu1 %vm966_vm0, %v965_v0 }
 0x1ab   : > { %884 = vmatmul.mubr.msk.bf16.vlgmr.msra.gmra.mrb[12].mxu1 %vm246_vm1, %v595_v32 }
 0x266   : > { %v1073_v33 = vpop.f32.mrb[0].mxu1 }
 0x267   : > { %v855_v34 = vpop.f32.mrb[1].mxu1 }
 0x268   : > { %v349_v35 = vpop.f32.mrb[2].mxu1 }
 0x269   : > { %v856_v36 = vpop.f32.mrb[3].mxu1 }
 0x26e   : > { %v401_v37 = vpop.f32.mrb[4].mxu1 }
 0x26f   : > { %v407_v38 = vmul.f32 0.35355338, %v401_v37  ;;  %v861_v39 = vpop.f32.mrb[5].mxu1 }
 0x270   : > { %v404_v40 = vpop.f32.mrb[6].mxu1 }
 0x271   : > { %v862_v41 = vpop.f32.mrb[7].mxu1  ;;  %v408_v42 = vsel %vm242_vm2, -1e+30, %v407_v38 }
 0x272   : > { %v409_v43 = vsel %vm246_vm1, %v408_v42, -inf }
 0x273   : > { %410 = vmax.xlane.f32.xlu1 %v409_v43 }
 0x276   : > { %v520_v44 = vpop.f32.mrb[8].mxu1 }
 0x277   : > { %v526_v45 = vmul.f32 0.35355338, %v520_v44  ;;  %v873_v46 = vpop.f32.mrb[9].mxu1 }
 0x278   : > { %v523_v47 = vpop.f32.mrb[10].mxu1 }
 0x279   : > { %v527_v48 = vsel %vm242_vm2, -1e+30, %v526_v45  ;;  %v874_v49 = vpop.f32.mrb[11].mxu1 }
 0x27a   : > { %v528_v50 = vsel %vm246_vm1, %v527_v48, -inf }
 0x27b   : > { %529 = vmax.xlane.f32.xlu0 %v528_v50 }
 0x27e   : > { %v638_v51 = vpop.f32.mrb[12].mxu1 }
 0x27f   : > { %v885_v52 = vpop.f32.mrb[13].mxu1  ;;  %v644_v55 = vmul.f32 0.35355338, %v638_v51 }
 0x280   : > { %v641_v53 = vpop.f32.mrb[14].mxu1 }
 0x281   : > { %v886_v54 = vpop.f32.mrb[15].mxu1  ;;  %v645_v56 = vsel %vm242_vm2, -1e+30, %v644_v55 }
 0x282   : > { %v646_v57 = vsel %vm246_vm1, %v645_v56, -inf }
 0x284   : > { %538 = vrot.lane.b32.xlu1 %v245_v17, %s968_s24 }
 0x291   : > { %420 = vrot.lane.b32.xlu0 %v245_v17, %s967_s23 }
 0x2a8   : > { %647 = vmax.xlane.f32.xlu1 %v646_v57 }
 0x2b9   : > { %656 = vrot.lane.b32.xlu1 %v245_v17, %s969_s25 }
 0x300   : > { %v411_v58 = vpop.xlane.xlu1 %410 }
 0x301   : > { %v412_v59 = vsub.f32 %v408_v42, %v411_v58 }
 0x303   : > { %v413_v60 = vmul.f32 1.442695, %v412_v59 }
 0x304   : > { %v539_v4 = vpop.permute.xlu1 %538 }
 0x305   : > { %927 = vpow2.f32 %v413_v60  ;;  %v544_v7 = vsel %vm308_vm3, %v539_v4, 0 }
 0x308   : > { %v530_v61 = vpop.xlane.xlu0 %529 }
 0x309   : > { %v531_v62 = vsub.f32 %v527_v48, %v530_v61 }
 0x30b   : > { %v532_v63 = vmul.f32 1.442695, %v531_v62 }
 0x30c   : > { %v421_v1 = vpop.permute.xlu0 %420 }
 0x30d   : > { %929 = vpow2.f32 %v532_v63  ;;  %v426_v2 = vsel %vm308_vm3, %v421_v1, 0 }
 0x30e   : > { %864 = vmatpush3.bf16.msra.mxu0 %v426_v2 }
 0x30f   : > { %v928_v3 = vpop.eup %927  ;;  %875 = vmatprep.subr.bf16.mxu0 %v965_v0 }
 0x310   : > { %v415_v5 = vsel %vm246_vm1, %v928_v3, 0.0  ;;  %v418_v6 = vpack.c.bf16 %v928_v3, %v928_v3 }
 0x311   : > { %416 = vadd.xlane.f32.xlu0 %v415_v5 }
 0x312   : > { %866 = vmatmul.mubr.msk.bf16.vlgmr.msra.gmra.mrb[4].mxu0 %vm246_vm1, %v418_v6 }
 0x313   : > { %876 = vmatpush3.bf16.msra.mxu0 %v544_v7  ;;  %877 = vmatprep.mubr.msk.bf16.mxu0 %vm966_vm0, %v965_v0 }
 0x314   : > { %887 = vmatprep.subr.bf16.mxu0 %v965_v0 }
 0x317   : > { %v930_v8 = vpop.eup %929 }
 0x318   : > { %v534_v9 = vsel %vm246_vm1, %v930_v8, 0.0  ;;  %v537_v10 = vpack.c.bf16 %v930_v8, %v930_v8 }
 0x319   : > { %535 = vadd.xlane.f32.xlu1 %v534_v9 }
 0x31a   : > { %878 = vmatmul.mubr.msk.bf16.vlgmr.msra.gmra.mrb[8].mxu0 %vm246_vm1, %v537_v10 }
 0x31b   : > { %889 = vmatprep.mubr.msk.bf16.mxu0 %vm966_vm0, %v965_v0 }
 0x335   : > { %v648_v11 = vpop.xlane.xlu1 %647 }
 0x336   : > { %v649_v12 = vsub.f32 %v645_v56, %v648_v11 }
 0x338   : > { %v650_v13 = vmul.f32 1.442695, %v649_v12 }
 0x339   : > { %v657_v14 = vpop.permute.xlu1 %656 }
 0x33a   : > { %931 = vpow2.f32 %v650_v13  ;;  %v662_v15 = vsel %vm308_vm3, %v657_v14, 0 }
 0x33b   : > { %888 = vmatpush3.bf16.msra.mxu0 %v662_v15 }
 0x344   : > { %v932_v16 = vpop.eup %931 }
 0x345   : > { %v652_v17 = vsel %vm246_vm1, %v932_v16, 0.0  ;;  %v655_v18 = vpack.c.bf16 %v932_v16, %v932_v16 }
 0x346   : > { %653 = vadd.xlane.f32.xlu0 %v652_v17 }
 0x347   : > { %890 = vmatmul.mubr.msk.bf16.vlgmr.msra.gmra.mrb[12].mxu0 %vm246_vm1, %v655_v18 }
 0x34a   : > { %302 = vadd.xlane.f32.xlu0 %v301_v19 }
 0x39e   : > { %v417_v0 = vpop.xlane.xlu0 %416 }
 0x3a6   : > { %v536_v22 = vpop.xlane.xlu1 %535 }
 0x3d3   : > { %v654_v20 = vpop.xlane.xlu0 %653 }
 0x3d7   : > { %v303_v21 = vpop.xlane.xlu0 %302 }
 0x3d8   : > { %933 = vrcp.f32 %v303_v21 }
 0x3d9   : > { %935 = vrcp.f32 %v417_v0 }
 0x3da   : > { %937 = vrcp.f32 %v536_v22 }
 0x3db   : > { %939 = vrcp.f32 %v654_v20 }
 0x3e2   : > { %v934_v24 = vpop.eup %933 }
 0x3e3   : > { %v353_v25 = vmul.f32 %v934_v24, %v1073_v33  ;;  %v936_v26 = vpop.eup %935 }
 0x3e4   : > { %v938_v31 = vpop.eup %937 }
 0x3e5   : > { %v462_v27 = vpop.f32.mrb[4].mxu0  ;;  %354 = vst.msk [vmem:[%s1111_s4] sm:$0xff] %vm246_vm1, %v353_v25  ;;  %v940_v37 = vpop.eup %939 }
 0x3e6   : > { %v469_v23 = vmul.f32 %v936_v26, %v462_v27  ;;  %v867_v28 = vpop.f32.mrb[5].mxu0 }
 0x3e7   : > { %v465_v29 = vpop.f32.mrb[6].mxu0 }
 0x3e8   : > { %471 = vrot.lane.b32.xlu1 %v469_v23, %s970_s5  ;;  %v868_v30 = vpop.f32.mrb[7].mxu0 }
 0x3ed   : > { %v580_v32 = vpop.f32.mrb[8].mxu0 }
 0x3ee   : > { %v587_v34 = vmul.f32 %v938_v31, %v580_v32  ;;  %v879_v35 = vpop.f32.mrb[9].mxu0 }
 0x3ef   : > { %v583_v36 = vpop.f32.mrb[10].mxu0 }
 0x3f0   : > { %589 = vrot.lane.b32.xlu0 %v587_v34, %s971_s6  ;;  %v880_v33 = vpop.f32.mrb[11].mxu0 }
 0x41a   : > { %v698_v38 = vpop.f32.mrb[12].mxu0 }
 0x41b   : > { %v705_v39 = vmul.f32 %v940_v37, %v698_v38  ;;  %v891_v40 = vpop.f32.mrb[13].mxu0 }
 0x41c   : > { %v701_v41 = vpop.f32.mrb[14].mxu0 }
 0x41d   : > { %707 = vrot.lane.b32.xlu1 %v705_v39, %s972_s7  ;;  %v892_v42 = vpop.f32.mrb[15].mxu0 }
 0x45a   : > { %v472_v43 = vpop.permute.xlu1 %471 }
 0x45b   : > { %475 = vst.msk [vmem:[%s1111_s4] sm:$0xff] %vm474_vm4, %v472_v43 }
 0x462   : > { %v590_v44 = vpop.permute.xlu0 %589 }
 0x463   : > { %593 = vst.msk [vmem:[%s1111_s4] sm:$0xff] %vm592_vm5, %v590_v44 }
 0x48f   : > { %v708_v45 = vpop.permute.xlu1 %707 }
 0x490   : > { %711 = vst.msk [vmem:[%s1111_s4] sm:$0xff] %vm710_vm6, %v708_v45 }
 0x491 PF: > { %s13_s14 = sadd.s32 1, %s963_s14   ;;  %s1132_s12 = smov %s959_s13 }
 0x492   : > { %p10_p5 = scmp.ge.s32.totalorder %s13_s14, 4   ;;  %s1133_s13 = smov %s1135_s15 }
 0x494   :  { %12 = sbr.rel (!%p10_p5) target bundleno = 2 (0x2), region = 68 }

// kernel: transformer_forward.53
= control target key start
LH: loop header
LB: loop body
LE: loop exit
PB: predicated region body
PF: predicated region fallthrough
CT: control target
= control target key end

     0   :  { %v172_v1 = vmov 0.0   ;;  %vm173_vm0 = vmmov 0   ;;  %vm20_vm1 = vcmask 523264   ;;  %s230_s0 = inlined_call_operand.vmem [shape: f32[16,32], index: 0, kind: input, shape index: {}]   ;;  %s231_s1 = inlined_call_operand.vmem [shape: bf16[32,64], index: 1, kind: input, shape index: {}]   ;;  %s232_s2 = inlined_call_operand.vmem [shape: f32[1,64], index: 2, kind: input, shape index: {}]   ;;  %s233_s3 = inlined_call_operand.hbm [shape: f32[16,64], index: 3, kind: output, shape index: {}]  }
   0x1   :  { %v146_v0 = vld [vmem:[%s231_s1] sm:$0xff]   ;;  %133 = vmatprep.subr.bf16.mxu0 %v172_v1  ;;  %v147_v2 = vld [vmem:[%s231_s1 + $0x8] sm:$0xff]   ;;  %137 = vmatprep.mubr.msk.bf16.mxu0 %vm173_vm0, %v172_v1 }
   0x2   :  { %134 = vmatpush3.bf16.msra.mxu0 %v146_v0  ;;  %v25_v3 = vld [vmem:[%s230_s0] sm:$0xff]  ;;  %v26_v4 = vld [vmem:[%s230_s0 + $0x8] sm:$0xff] }
   0x3   :  { %8 = vsyncpa [#allocation4], 0  ;;  %135 = vmatprep.subr.bf16.mxu0 %v172_v1  ;;  %21 = vst.msk [vmem:[#allocation2] sm:$0xff] %vm20_vm1, %v172_v1  ;;  %v27_v5 = vpack.c.bf16 %v26_v4, %v25_v3  ;;  %vm44_vm2 = vcmask 261120   ;;  %v129_v14 = vld [vmem:[%s232_s2] ss:$0 sm:$0xff] }
   0x4   :  { %22 = vst.msk [vmem:[#allocation2 + $0x8] sm:$0xff] %vm20_vm1, %v172_v1  ;;  %s174_s20 = smov [#allocation3]  }
   0x5   :  { %s115_s21 = sshll.u32 %s174_s20, 4  ;;  %s116_s21 = int_to_ptr.vmem [resolvable:$true] %s115_s21 }
   0x6   :  { %136 = vmatpush3.bf16.msra.mxu0 %v147_v2  ;;  %s148_s22 = scalar_lea.vmem %s116_s21, 256  ;;  %p153_p1 = scmp.lt.s32.totalorder %s116_s21, %s116_s21 }
   0x7   :  { %p149_p0 = scmp.ne.s32.totalorder %s116_s21, %s148_s22  ;;  %p154_p2 = scmp.lt.s32.totalorder %s148_s22, %s148_s22 }
   0x9   :  { %138 = vmatmul.mubr.msk.bf16.vlgmr.msra.gmra.mrb[0].mxu0 %vm44_vm2, %v27_v5  ;;  %p155_p3 = por %p154_p2, %p153_p1 }
   0xa   :  { %v23_v6 = vld [vmem:[#allocation2] sm:$0xff] }
   0xb   :  { %v24_v8 = vld [vmem:[#allocation2 + $0x8] sm:$0xff]  ;;  %p156_p4 = pnand %p155_p3, %p149_p0 }
  0xdc   :  { %v82_v7 = vpop.f32.mrb[0].mxu0 }
  0xdd   :  { %v89_v9 = vadd.f32 %v82_v7, %v23_v6  ;;  %v139_v10 = vpop.f32.mrb[1].mxu0 }
  0xde   :  { %v85_v11 = vpop.f32.mrb[2].mxu0 }
  0xdf   :  { %92 = vst.msk [vmem:[#allocation2] sm:$0xff] %vm20_vm1, %v89_v9  ;;  %v90_v12 = vadd.f32 %v85_v11, %v24_v8  ;;  %v140_v13 = vpop.f32.mrb[3].mxu0 }
  0xe1   :  { %93 = vst.msk [vmem:[#allocation2 + $0x8] sm:$0xff] %vm20_vm1, %v90_v12 }
  0xe6   :  { %v97_v15 = vld [vmem:[#allocation2] sm:$0xff] }
  0xe7   :  { %v106_v16 = vadd.f32 %v129_v14, %v97_v15 }
  0xe8   :  { %v98_v17 = vld [vmem:[#allocation2 + $0x8] sm:$0xff] }
  0xe9   :  { %v107_v18 = vadd.f32 %v129_v14, %v98_v17  ;;  %108 = vst.msk [vmem:[#allocation3] sm:$0xff] %vm20_vm1, %v106_v16 }
  0xeb   :  { %109 = vst.msk [vmem:[#allocation3 + $0x8] sm:$0xff] %vm20_vm1, %v107_v18 }
  0xec   :  { %159 = shalt.err (!%p156_p4)
}
  0xed   :  { %s160_s24 = scalar_lea.hbm %s233_s3, 256 }
  0xee   :  { %p161_p5 = scmp.ne.s32.totalorder %s233_s3, %s160_s24  ;;  %p164_p6 = scmp.lt.u32.totalorder %s160_s24, %s233_s3 }
  0xf0   :  { %p166_p7 = pnand %p164_p6, %p161_p5 }
  0xf2   :  { %169 = shalt.err (!%p166_p7)
}
  0xf3   :  { %s175_s29 = smov 128   ;;  %s176_s30 = smov 8  }
  0xf4   :  { %121 = dma.vmem_to_hbm [thread:$0]  %s116_s21, 256, %s233_s3, [#allocation4], %s175_s29, %s175_s29, %s176_s30  }
  0xf5   :  { %170 = dma.done.wait [#allocation4], 256  }
  0xf6   :  { %171 = vsyncadd [#allocation4], 4294967040 }
  0xf7   :  { %125 = vsyncpa [#allocation4], 1 }

</bundles_post_ra>
